<compile_context>
chip_gen: v6e
topology: v6e:2x2x1
jax: 0.10.0
libtpu: 0.0.40
codegen_flags: <defaults>
</compile_context>

<pallas_src>
import functools

import jax
import jax.numpy as jnp
from jax import lax
from jax.experimental import pallas as pl
from jax.experimental.pallas import tpu as pltpu

LANES = 128                 # vreg lane width
ACC_FOLD = 64               # accumulator sublane rows (8 f32 vregs -> ILP)
CHUNK_ROWS = 512            # rows per inner-loop step (256 KiB f32 temporaries)
MIN_BLOCK_ROWS = CHUNK_ROWS
MAX_BLOCK_BYTES = 8 * 1024 * 1024   # per-input, per-pipeline-buffer tile size
NUM_CORE_SPLIT = 2          # leading "parallel" grid axis (both TCs on v7x)


def _round_up(x, m):
    return ((x + m - 1) // m) * m


def _vmem_limit_bytes():
    limit = 48 * 1024 * 1024
    try:
        cap = pltpu.get_tpu_info().vmem_capacity_bytes
        limit = min(limit, int(cap * 3 // 4))
    except Exception:
        pass
    return limit


def _msle_kernel(true_ref, pred_ref, out_ref, acc_ref, *,
                 valid_rows, block_rows, blocks_per_core, needs_mask):
    c = pl.program_id(0)   # core-split axis ("parallel")
    j = pl.program_id(1)   # reduction axis ("arbitrary")

    @pl.when(j == 0)
    def _():
        acc_ref[...] = jnp.zeros_like(acc_ref)

    # Nominal (unclamped) global row offset of this block; used for masking.
    block_row0 = (c * blocks_per_core + j) * block_rows
    groups = CHUNK_ROWS // ACC_FOLD

    if needs_mask:
        # Hoisted out of the loop (JAX does not CSE broadcast/iota).  Row index
        # of each (fold-group, sublane) pair within a chunk; lane dim kept at 1
        # so the compare is per-row, only the select is per-element.
        local_row = (
            lax.broadcasted_iota(jnp.int32, (groups, ACC_FOLD, 1), 0) * ACC_FOLD
            + lax.broadcasted_iota(jnp.int32, (groups, ACC_FOLD, 1), 1))
    else:
        local_row = None

    def body(g, carry):
        r0 = pl.multiple_of(g * CHUNK_ROWS, CHUNK_ROWS)
        t = true_ref[pl.ds(r0, CHUNK_ROWS), :].astype(jnp.float32)
        p = pred_ref[pl.ds(r0, CHUNK_ROWS), :].astype(jnp.float32)
        # log1p(t) - log1p(p) == log1p((t - p) / (1 + p)): one transcendental
        # per element instead of two (EUP stays off the critical path).
        d = jnp.log1p((t - p) / (1.0 + p))
        # (CHUNK_ROWS,128)->(groups,64,128): groups whole (8,128) tiles, a
        # free view; the sum over axis 0 is pure VPU adds into 8 vregs.
        dd = (d * d).reshape(groups, ACC_FOLD, LANES)
        if needs_mask:
            row = local_row + (block_row0 + r0)
            dd = jnp.where(row < valid_rows, dd, 0.0)
        acc_ref[...] += jnp.sum(dd, axis=0)
        return carry

    lax.fori_loop(0, block_rows // CHUNK_ROWS, body, 0)

    @pl.when(j == pl.num_programs(1) - 1)
    def _():
        out_ref[...] = acc_ref[...]


def msle_loss(true, pred):
    assert true.shape == pred.shape, "true/pred must have identical shapes"
    n = true.size
    itemsize = jnp.dtype(true.dtype).itemsize

    t_flat = true.reshape(-1)
    p_flat = pred.reshape(-1)

    rows = max(pl.cdiv(n, LANES), MIN_BLOCK_ROWS)
    n_padded = rows * LANES
    if n_padded != n:
        # Only hit when n % 128 != 0 or the input is tiny (< 64K elements).
        # Padded zeros are exact: log1p((0 - 0) / (1 + 0)) == 0.
        # TODO(synk): a truly ragged (n % 128 != 0) LARGE input still pays one
        # XLA pad copy; avoiding it would need a 1-D / manual-DMA path.
        pad = n_padded - n
        t_flat = jnp.pad(t_flat, (0, pad))
        p_flat = jnp.pad(p_flat, (0, pad))

    t2 = t_flat.reshape(rows, LANES)   # free: contiguous row-major reshape
    p2 = p_flat.reshape(rows, LANES)

    # ~8 MiB per input per pipeline buffer, rounded to whole chunks.
    max_block_rows = max(
        (MAX_BLOCK_BYTES // (LANES * itemsize)) // CHUNK_ROWS * CHUNK_ROWS,
        CHUNK_ROWS)
    block_rows = min(max_block_rows, (rows // CHUNK_ROWS) * CHUNK_ROWS)
    total_blocks = pl.cdiv(rows, block_rows)
    blocks_per_core = pl.cdiv(total_blocks, NUM_CORE_SPLIT)
    last_block = total_blocks - 1
    # Mask only if some nominal block extends past (or lies beyond) the array.
    needs_mask = (NUM_CORE_SPLIT * blocks_per_core * block_rows) != rows

    kernel = functools.partial(
        _msle_kernel,
        valid_rows=rows,
        block_rows=block_rows,
        blocks_per_core=blocks_per_core,
        needs_mask=needs_mask)

    # Clamp the block index so out-of-range blocks (odd split / tiny inputs)
    # re-read a valid block; their contribution is zeroed by the index mask.
    in_map = lambda c, j: (jnp.minimum(c * blocks_per_core + j, last_block), 0)

    partials = pl.pallas_call(
        kernel,
        out_shape=jax.ShapeDtypeStruct(
            (NUM_CORE_SPLIT, ACC_FOLD, LANES), jnp.float32),
        grid_spec=pltpu.PrefetchScalarGridSpec(
            num_scalar_prefetch=0,
            grid=(NUM_CORE_SPLIT, blocks_per_core),
            in_specs=[
                pl.BlockSpec((block_rows, LANES), in_map),
                pl.BlockSpec((block_rows, LANES), in_map),
            ],
            out_specs=pl.BlockSpec((None, ACC_FOLD, LANES),
                                   lambda c, j: (c, 0, 0)),
            scratch_shapes=[pltpu.VMEM((ACC_FOLD, LANES), jnp.float32)],
        ),
        compiler_params=pltpu.CompilerParams(
            dimension_semantics=("parallel", "arbitrary"),
            vmem_limit_bytes=_vmem_limit_bytes(),
        ),
    )(t2, p2)

    # Tiny epilogue in plain JAX: cross-core + cross-lane reduce and mean.
    return jnp.sum(partials) / jnp.float32(n)


if __name__ == "__main__":
    key = jax.random.PRNGKey(0)
    k1, k2, k3, k4, k5, k6 = jax.random.split(key, 6)

    def ref_msle(t, p):
        return jnp.mean((jnp.log1p(t) - jnp.log1p(p)) ** 2)

    # Primary shape (NCHW-like: batch=2, channels=4, 16x16 spatial).
    shape = (2, 4, 16, 16)
    true = jax.random.uniform(k1, shape, jnp.float32, minval=0.0, maxval=5.0)
    pred = jax.random.uniform(k2, shape, jnp.float32, minval=0.0, maxval=5.0)
    loss = msle_loss(true, pred)
    jax.block_until_ready(loss)
    ref = ref_msle(true, pred)
    assert jnp.allclose(loss, ref, rtol=1e-5, atol=1e-6), (loss, ref)

    # Ragged (n % 128 != 0) shape: exercises the small-pad path.
    shape2 = (3, 5, 7)
    true2 = jax.random.uniform(k3, shape2, jnp.float32, minval=0.0, maxval=5.0)
    pred2 = jax.random.uniform(k4, shape2, jnp.float32, minval=0.0, maxval=5.0)
    loss2 = msle_loss(true2, pred2)
    jax.block_until_ready(loss2)
    ref2 = ref_msle(true2, pred2)
    assert jnp.allclose(loss2, ref2, rtol=1e-5, atol=1e-6), (loss2, ref2)

    # Mid-size shape (128-divisible, no pad copy): exercises the two-core
    # split, the chunked inner loop and the partial-block row mask.
    shape3 = (16, 128, 130)
    true3 = jax.random.uniform(k5, shape3, jnp.float32, minval=0.0, maxval=5.0)
    pred3 = jax.random.uniform(k6, shape3, jnp.float32, minval=0.0, maxval=5.0)
    loss3 = msle_loss(true3, pred3)
    jax.block_until_ready(loss3)
    ref3 = ref_msle(true3, pred3)
    assert jnp.allclose(loss3, ref3, rtol=1e-5, atol=1e-6), (loss3, ref3)

    print("KERNEL_OK")
</pallas_src>

<mosaic_0001>
module attributes {stable_mosaic.version = 11 : i64} {
  func.func @_msle_kernel(%arg0: i32, %arg1: i32, %arg2: memref<512x128xf32, #tpu.memory_space<vmem>>, %arg3: memref<512x128xf32, #tpu.memory_space<vmem>>, %arg4: memref<1x64x128xf32, #tpu.memory_space<vmem>>, %arg5: memref<64x128xf32, #tpu.memory_space<vmem>>) attributes {dimension_semantics = [#tpu.dimension_semantics<parallel>, #tpu.dimension_semantics<arbitrary>], iteration_bounds = array<i64: 2, 1>, scalar_prefetch = 0 : i64, scratch_operands = 1 : i64, tpu.core_type = #tpu.core_type<tc>, window_params = [{transform_indices = @transform_0, window_bounds = array<i64: 512, 128>}, {transform_indices = @transform_1, window_bounds = array<i64: 512, 128>}, {transform_indices = @transform_2, window_bounds = array<i64: 1, 64, 128>}]} {
    %c0_i32 = arith.constant 0 : i32
    %0 = arith.cmpi eq, %arg1, %c0_i32 : i32
    %1 = arith.extui %0 : i1 to i32
    %c0_i32_0 = arith.constant 0 : i32
    %2 = arith.cmpi ne, %1, %c0_i32_0 : i32
    scf.if %2 {
      %cst_14 = arith.constant 0.000000e+00 : f32
      %40 = vector.broadcast %cst_14 : f32 to vector<64x128xf32>
      %c0_15 = arith.constant 0 : index
      %c0_16 = arith.constant 0 : index
      %41 = vector.load %arg5[%c0_15, %c0_16] : memref<64x128xf32, #tpu.memory_space<vmem>>, vector<64x128xf32>
      tpu.vector_store %arg5[%c0_15, %c0_16], %40 {strides = array<i32>} : memref<64x128xf32, #tpu.memory_space<vmem>>, vector<64x128xf32>,
    } else {
    }
    %c1_i32 = arith.constant 1 : i32
    %3 = arith.muli %arg0, %c1_i32 : i32
    %4 = arith.addi %3, %arg1 : i32
    %c512_i32 = arith.constant 512 : i32
    %5 = arith.muli %4, %c512_i32 : i32
    %6 = tpu.iota {dimensions = array<i32: 0>} : vector<8x64x1xi32>
    %c64_i32 = arith.constant 64 : i32
    %7 = vector.broadcast %c64_i32 : i32 to vector<8x64x1xi32>
    %8 = arith.muli %6, %7 : vector<8x64x1xi32>
    %9 = tpu.iota {dimensions = array<i32: 1>} : vector<8x64x1xi32>
    %10 = arith.addi %8, %9 : vector<8x64x1xi32>
    %c0_i32_1 = arith.constant 0 : i32
    %c512_i32_2 = arith.constant 512 : i32
    %11 = arith.muli %c0_i32_1, %c512_i32_2 : i32
    %12 = tpu.assume_multiple %11, 512 : i32
    %13 = arith.index_cast %12 : i32 to index
    %c0 = arith.constant 0 : index
    %14 = vector.load %arg2[%13, %c0] : memref<512x128xf32, #tpu.memory_space<vmem>>, vector<512x128xf32>
    %15 = arith.index_cast %12 : i32 to index
    %c0_3 = arith.constant 0 : index
    %16 = vector.load %arg3[%15, %c0_3] : memref<512x128xf32, #tpu.memory_space<vmem>>, vector<512x128xf32>
    %17 = arith.subf %14, %16 : vector<512x128xf32>
    %cst = arith.constant 1.000000e+00 : f32
    %18 = vector.broadcast %cst : f32 to vector<512x128xf32>
    %19 = arith.addf %18, %16 : vector<512x128xf32>
    %20 = arith.divf %17, %19 : vector<512x128xf32>
    %21 = math.log1p %20 : vector<512x128xf32>
    %22 = arith.mulf %21, %21 : vector<512x128xf32>
    %23 = vector.shape_cast %22 : vector<512x128xf32> to vector<8x64x128xf32>
    %24 = arith.addi %5, %12 : i32
    %25 = vector.broadcast %24 : i32 to vector<8x64x1xi32>
    %26 = arith.addi %10, %25 : vector<8x64x1xi32>
    %c512_i32_4 = arith.constant 512 : i32
    %27 = vector.broadcast %c512_i32_4 : i32 to vector<8x64x1xi32>
    %28 = arith.cmpi slt, %26, %27 : vector<8x64x1xi32>
    %cst_5 = arith.constant 0.000000e+00 : f32
    %29 = vector.shape_cast %28 : vector<8x64x1xi1> to vector<8x64x1xi1>
    %30 = vector.broadcast %29 : vector<8x64x1xi1> to vector<8x64x128xi1>
    %31 = vector.broadcast %cst_5 : f32 to vector<8x64x128xf32>
    %32 = arith.select %30, %23, %31 : vector<8x64x128xi1>, vector<8x64x128xf32>
    %c0_6 = arith.constant 0 : index
    %c0_7 = arith.constant 0 : index
    %33 = vector.load %arg5[%c0_6, %c0_7] : memref<64x128xf32, #tpu.memory_space<vmem>>, vector<64x128xf32>
    %cst_8 = arith.constant dense<0.000000e+00> : vector<64x128xf32>
    %34 = vector.multi_reduction <add>, %32, %cst_8 [0] : vector<8x64x128xf32> to vector<64x128xf32>
    %35 = arith.addf %33, %34 : vector<64x128xf32>
    %c0_9 = arith.constant 0 : index
    %c0_10 = arith.constant 0 : index
    %36 = vector.load %arg5[%c0_9, %c0_10] : memref<64x128xf32, #tpu.memory_space<vmem>>, vector<64x128xf32>
    tpu.vector_store %arg5[%c0_9, %c0_10], %35 {strides = array<i32>} : memref<64x128xf32, #tpu.memory_space<vmem>>, vector<64x128xf32>,
    %c1_i32_11 = arith.constant 1 : i32
    %c0_i32_12 = arith.constant 0 : i32
    %37 = arith.cmpi eq, %arg1, %c0_i32_12 : i32
    %38 = arith.extui %37 : i1 to i32
    %c0_i32_13 = arith.constant 0 : i32
    %39 = arith.cmpi ne, %38, %c0_i32_13 : i32
    scf.if %39 {
      %c0_14 = arith.constant 0 : index
      %c0_15 = arith.constant 0 : index
      %40 = vector.load %arg5[%c0_14, %c0_15] : memref<64x128xf32, #tpu.memory_space<vmem>>, vector<64x128xf32>
      %c0_16 = arith.constant 0 : index
      %c0_17 = arith.constant 0 : index
      %c0_18 = arith.constant 0 : index
      %41 = vector.load %arg4[%c0_16, %c0_17, %c0_18] : memref<1x64x128xf32, #tpu.memory_space<vmem>>, vector<1x64x128xf32>
      %42 = vector.shape_cast %41 : vector<1x64x128xf32> to vector<64x128xf32>
      %43 = vector.shape_cast %40 : vector<64x128xf32> to vector<1x64x128xf32>
      tpu.vector_store %arg4[%c0_16, %c0_17, %c0_18], %43 {strides = array<i32>} : memref<1x64x128xf32, #tpu.memory_space<vmem>>, vector<1x64x128xf32>,
    } else {
    }
    return
  }
  func.func @transform_0(%arg0: i32, %arg1: i32) -> (i32, i32) {
    %c1_i32 = arith.constant 1 : i32
    %0 = arith.muli %arg0, %c1_i32 : i32
    %1 = arith.addi %0, %arg1 : i32
    %c0_i32 = arith.constant 0 : i32
    %2 = arith.minsi %1, %c0_i32 : i32
    %c0_i32_0 = arith.constant 0 : i32
    %c0_i32_1 = arith.constant 0 : i32
    return %2, %c0_i32_0 : i32, i32
  }
  func.func @transform_1(%arg0: i32, %arg1: i32) -> (i32, i32) {
    %c1_i32 = arith.constant 1 : i32
    %0 = arith.muli %arg0, %c1_i32 : i32
    %1 = arith.addi %0, %arg1 : i32
    %c0_i32 = arith.constant 0 : i32
    %2 = arith.minsi %1, %c0_i32 : i32
    %c0_i32_0 = arith.constant 0 : i32
    %c0_i32_1 = arith.constant 0 : i32
    return %2, %c0_i32_0 : i32, i32
  }
  func.func @transform_2(%arg0: i32, %arg1: i32) -> (i32, i32, i32) {
    %c0_i32 = arith.constant 0 : i32
    %c0_i32_0 = arith.constant 0 : i32
    %c0_i32_1 = arith.constant 0 : i32
    return %arg0, %c0_i32, %c0_i32_0 : i32, i32, i32
  }
}

</mosaic_0001>

<bundles_post_ra>
// kernel: tpu_custom_call.1
= control target key start
LH: loop header
LB: loop body
LE: loop exit
PB: predicated region body
PF: predicated region fallthrough
CT: control target
= control target key end

     0   :  { %7 = vsyncpa [#allocation4], 0  ;;  %s5670_s0 = inlined_call_operand.hbm [shape: f32[512,128], index: 0, kind: input, shape index: {}]   ;;  %s5671_s1 = inlined_call_operand.hbm [shape: f32[512,128], index: 1, kind: input, shape index: {}]   ;;  %s5672_s2 = inlined_call_operand.hbm [shape: f32[2,64,128], index: 2, kind: output, shape index: {}]  }
   0x1   :  { %9 = vsyncpa [#allocation4 + $0x1], 0 }
   0x2   :  { %10 = vsyncpa [#allocation7], 0 }
   0x3   :  { %12 = vsyncpa [#allocation7 + $0x1], 0 }
   0x4   :  { %13 = vsyncpa [#allocation5], 0 }
   0x5   :  { %15 = vsyncpa [#allocation5 + $0x1], 0  ;;  %s2441_s9 = smov 0   ;;  %s2443_s10 = smov 0  }
   0x6   :  { %s2445_s11 = smov 0   ;;  %s2447_s12 = smov 0  }
   0x7   :  { %s2449_s13 = smov 0   ;;  %s2451_s14 = smov 0  }
   0x8   :  { %s2453_s15 = smov 0   ;;  %s2455_s16 = smov 0  }
   0x9 LB: > { %s1882_s17 = sadd.s32 4294967295, %s2417_s16   ;;  %s1883_s18 = sadd.s32 4294967294, %s2417_s16   ;;  %s2417_s16 = sphi %s2455_s16, %s21_s16   ;;  %s2413_s15 = sphi %s2453_s15, %s6873_s15   ;;  %s2409_s14 = sphi %s2451_s14, %s6872_s14   ;;  %s2405_s13 = sphi %s2449_s13, %s5660_s13   ;;  %s2401_s12 = sphi %s2447_s12, %s6871_s12   ;;  %s2397_s11 = sphi %s2445_s11, %s6870_s11   ;;  %s2393_s10 = sphi %s2443_s10, %s6869_s10   ;;  %s2389_s9 = sphi %s2441_s9, %s6868_s9  }
   0xa   : > { %s33_s19 = sadd.s32 1, %s2413_s15  ;;  %p2386_p1 = scmp.ne.s32.totalorder %s2405_s13, 0 }
   0xb   : > { %p35_p0 = scmp.ge.s32.totalorder %s33_s19, 2  ;;  %p54_p2 = scmp.eq.s32.totalorder %s2417_s16, 0 }
   0xc   : > { %p59_p3 = scmp.ne.s32.totalorder %s2405_s13, %s2401_s12  ;;  %p60_p5 = scmp.eq.s32.totalorder %s1882_s17, 0 }
   0xd   : > { %s6875_s19 = smov (%p35_p0, %s33_s19), 0  ;;  %p2487_p4 = por %p2386_p1, %p54_p2 }
   0xe   : > { %p2491_p6 = por %p60_p5, %p59_p3  ;;  %s101_s22 = ssub.s32 %s2413_s15, %s6875_s19 }
   0xf   : > { %p102_p7 = scmp.eq.s32.totalorder %s101_s22, 0  ;;  %s104_s23 = sadd.s32 1, %s2397_s11 }
  0x10   : > { %s5858_s21 = scalar_select %p2491_p6, 1, 0 }
  0x11   : > { %s2499_s24 = scalar_select %p102_p7, %s2397_s11, %s104_s23  }
  0x12   : > { %p114_p8 = scmp.ne.s32.totalorder %s2397_s11, %s2393_s10  ;;  %p115_p9 = scmp.eq.s32.totalorder %s1882_s17, 1 }
  0x13   : > { %p120_p10 = scmp.ne.s32.totalorder %s2393_s10, %s2389_s9  ;;  %p121_p11 = scmp.eq.s32.totalorder %s1883_s18, 1 }
  0x14   : > { %p2505_p12 = por %p115_p9, %p114_p8  ;;  %p1922_p1 = scmp.lt.s32.totalorder %s2417_s16, 2 }
  0x15   : > { %p2510_p0 = por %p121_p11, %p120_p10  ;;  %s2419_s27 = smov [#allocation3]  }
  0x16   : > { %s5859_s25 = scalar_select %p2505_p12, 1, 0 }
  0x17   : > { %s5860_s26 = scalar_select %p2510_p0, 1, 0 }
  0x18   : > { %s155_s28 = sshll.u32 %s2419_s27, 4  ;;  %p2517_p2 = pnand %p1922_p1, %p2487_p4  ;;  %s156_s28 = int_to_ptr.vmem [resolvable:$true] %s155_s28 }
  0x19   : > { %s2256_s4 = scalar_lea.hbm %s5670_s0, 8192 }
  0x1a   : > { %p2257_p3 = scmp.ne.s32.totalorder %s5670_s0, %s2256_s4  ;;  %p2258_p5 = pneg %p2517_p2 }
  0x1b   : > { %p2263_p8 = scmp.lt.s32.totalorder %s2256_s4, %s2256_s4 }
  0x1c   : > { %p2259_p7 = pnand %p2258_p5, %p2257_p3 }
  0x1e   : > { %p2260_p4 = pneg %p2259_p7 }
  0x20   : > { %p2265_p9 = pnand %p2263_p8, %p2260_p4 }
  0x22   : > { %2268 = shalt.err (!%p2265_p9)
}
  0x23   : > { %s2269_s7 = scalar_lea.vmem %s156_s28, 8192  ;;  %s2276_s8 = scalar_lea.vmem %s156_s28, 16384 }
  0x24   : > { %p2270_p10 = scmp.ne.s32.totalorder %s156_s28, %s2269_s7  ;;  %p2277_p13 = scmp.lt.s32.totalorder %s156_s28, %s156_s28 }
  0x25   : > { %p2278_p0 = scmp.lt.s32.totalorder %s2276_s8, %s2269_s7 }
  0x26   : > { %p2272_p11 = pnand %p2270_p10, %p2258_p5 }
  0x27   : > { %p2279_p12 = por %p2278_p0, %p2277_p13 }
  0x28   : > { %p2273_p1 = pneg %p2272_p11 }
  0x2a   : > { %p2280_p6 = pnand %p2279_p12, %p2273_p1 }
  0x2c   : > { %2283 = shalt.err (!%p2280_p6)
}
  0x2d   : > { %s2420_s12 = smov 128   ;;  %s2421_s17 = smov 8  }
  0x2e   : > { %1914 = dma.hbm_to_vmem [thread:$0]  (!%p2517_p2), %s5670_s0, 8192, %s156_s28, [#allocation4], %s2420_s12, %s2420_s12, %s2421_s17  }
  0x2f   : > { %p1892_p3 = scmp.ge.s32.totalorder %s2417_s16, 1  ;;  %p187_p7 = scmp.lt.s32.totalorder %s2417_s16, 3 }
  0x30   : > { %s2422_s23 = smov [#allocation6]   ;;  %s2284_s4 = scalar_lea.hbm %s5671_s1, 8192 }
  0x31   : > { %p2542_p4 = pnand %p1892_p3, %p187_p7  ;;  %s179_s27 = sshll.u32 %s2422_s23, 4  ;;  %s180_s27 = int_to_ptr.vmem [resolvable:$true] %s179_s27 }
  0x32   : > { %p2285_p6 = scmp.ne.s32.totalorder %s5671_s1, %s2284_s4  ;;  %p2291_p0 = scmp.lt.s32.totalorder %s2284_s4, %s2284_s4 }
  0x33   : > { %s5862_s22 = scalar_select %p2542_p4, 1, 0 }
  0x34   : > { %p2287_p12 = pnand %p2285_p6, %p2258_p5 }
  0x36   : > { %p2288_p13 = pneg %p2287_p12 }
  0x38   : > { %p2293_p8 = pnand %p2291_p0, %p2288_p13 }
  0x3a   : > { %2296 = shalt.err (!%p2293_p8)
}
  0x3b   : > { %s2297_s28 = scalar_lea.vmem %s180_s27, 8192  ;;  %s2304_s7 = scalar_lea.vmem %s180_s27, 16384 }
  0x3c   : > { %p2298_p9 = scmp.ne.s32.totalorder %s180_s27, %s2297_s28  ;;  %p2305_p1 = scmp.lt.s32.totalorder %s180_s27, %s180_s27 }
  0x3d   : > { %p2306_p3 = scmp.lt.s32.totalorder %s2304_s7, %s2297_s28 }
  0x3e   : > { %p2300_p10 = pnand %p2298_p9, %p2258_p5 }
  0x3f   : > { %p2307_p7 = por %p2306_p3, %p2305_p1 }
  0x40   : > { %p2301_p11 = pneg %p2300_p10 }
  0x42   : > { %p2308_p4 = pnand %p2307_p7, %p2301_p11 }
  0x44   : > { %2311 = shalt.err (!%p2308_p4)
}
  0x45   : > { %1917 = dma.hbm_to_vmem [thread:$0]  (!%p2517_p2), %s5671_s1, 8192, %s180_s27, [#allocation7], %s2420_s12, %s2420_s12, %s2421_s17  }
  0x46   : > { %p5863_p6 = scmp.ne.s32.totalorder %s5862_s22, 0 }
  0x48   : > { %191 = sbr.rel (%p5863_p6) target bundleno = 488 (0x1e8), region = 28 }
  0x4d   : > { %s193_s20 = sand.u32 1, %s2405_s13   ;;  %p5864_p5 = scmp.ne.s32.totalorder %s5858_s21, 0 }
  0x4e   : > { %s1893_s23 = sshll.u32 %s193_s20, 9  ;;  %s194_s30 = scalar_lea.sflag [#allocation4], %s193_s20 }
  0x4f   : > { %s2566_s3 = scalar_lea.vmem [#allocation3], %s1893_s23 }
  0x50   : > { %2375 = dma.done.wait (%p5864_p5), %s194_s30, 8192  }
  0x51   : > { %2377 = vsyncadd (%p5864_p5), %s194_s30, 4294959104  ;;  %s203_s29 = scalar_lea.sflag [#allocation7], %s193_s20  ;;  %s2572_s4 = scalar_lea.vmem [#allocation6], %s1893_s23 }
  0x52   : > { %2379 = dma.done.wait (%p5864_p5), %s203_s29, 8192  }
  0x53   : > { %2381 = vsyncadd (%p5864_p5), %s203_s29, 4294959104  ;;  %v254_v0 = vlaneseq  ;;  %v2716_v47 = vld [vmem:[%s2566_s3] sm:$0xff]  ;;  %v2719_v48 = vld [vmem:[%s2566_s3 + $0x8] sm:$0xff]  ;;  %s1896_s21 = sshll.u32 %s2409_s14, 9  ;;  %s229_s12 = sand.u32 1, %s2393_s10  }
  0x54   : > { %5911 = vst [vmem:[#allocation58_spill] sm:$0xff] %v2716_v47  ;;  %5912 = vst [vmem:[#allocation59_spill] sm:$0xff] %v2719_v48  ;;  %v2734_v53 = vld [vmem:[%s2566_s3 + $0x10] sm:$0xff]  ;;  %v2737_v54 = vld [vmem:[%s2566_s3 + $0x18] sm:$0xff]  ;;  %s5602_s17 = sshll.u32 %s229_s12, 6  ;;  %s1904_s22 = sshll.u32 %s2409_s14, 10 }
  0x55   : > { %v2578_v1 = vshrl.u32 %v254_v0, 7  ;;  %5917 = vst [vmem:[#allocation64_spill] sm:$0xff] %v2734_v53  ;;  %5918 = vst [vmem:[#allocation65_spill] sm:$0xff] %v2737_v54  ;;  %v2752_v59 = vld [vmem:[%s2566_s3 + $0x20] sm:$0xff]  ;;  %v2755_v60 = vld [vmem:[%s2566_s3 + $0x28] sm:$0xff]  ;;  %s231_s27 = scalar_lea.vmem [#allocation8], %s5602_s17  ;;  %s5609_s7 = scalar_lea.hbm %s5672_s2, %s1904_s22 }
  0x56   : > { %5923 = vst [vmem:[#allocation70_spill] sm:$0xff] %v2752_v59  ;;  %5924 = vst [vmem:[#allocation71_spill] sm:$0xff] %v2755_v60  ;;  %v2758_v61 = vld [vmem:[%s2566_s3 + $0x30] sm:$0xff]  ;;  %v3078_v60 = vld [vmem:[%s2572_s4 + $0xf8] sm:$0xff]  ;;  %s1778_s5 = sshll.u32 %s231_s27, 4  ;;  %s5619_s14 = scalar_lea.sflag [#allocation5], %s229_s12  ;;  %s5611_s5 = int_to_ptr.vmem [resolvable:$true] %s1778_s5 }
  0x57   : > { %5865 = vst [vmem:[#allocation12_spill] sm:$0xff] %v2578_v1  ;;  %v2581_v2 = vadd.s32 8, %v2578_v1  ;;  %v2584_v3 = vadd.s32 16, %v2578_v1  ;;  %v2587_v4 = vadd.s32 24, %v2578_v1  ;;  %v2590_v5 = vadd.s32 32, %v2578_v1  ;;  %5925 = vst [vmem:[#allocation72_spill] sm:$0xff] %v2758_v61 }
  0x58   : > { %v2593_v6 = vadd.s32 40, %v2578_v1  ;;  %v2596_v7 = vadd.s32 48, %v2578_v1  ;;  %v2599_v8 = vadd.s32 56, %v2578_v1  ;;  %v2602_v9 = vadd.s32 64, %v2578_v1  ;;  %v3054_v61 = vld [vmem:[%s2572_s4 + $0xe0] sm:$0xff]  ;;  %5999 = vst [vmem:[#allocation146_spill] sm:$0xff] %v3078_v60 }
  0x59   : > { %5866 = vst [vmem:[#allocation13_spill] sm:$0xff] %v2581_v2  ;;  %5867 = vst [vmem:[#allocation14_spill] sm:$0xff] %v2584_v3  ;;  %v2605_v10 = vadd.s32 64, %v2581_v2  ;;  %v2608_v11 = vadd.s32 64, %v2584_v3  ;;  %v2611_v12 = vadd.s32 64, %v2587_v4  ;;  %v2614_v13 = vadd.s32 64, %v2590_v5 }
  0x5a   : > { %5868 = vst [vmem:[#allocation15_spill] sm:$0xff] %v2587_v4  ;;  %5869 = vst [vmem:[#allocation16_spill] sm:$0xff] %v2590_v5  ;;  %v2617_v14 = vadd.s32 64, %v2593_v6  ;;  %v2620_v15 = vadd.s32 64, %v2596_v7  ;;  %v2623_v16 = vadd.s32 64, %v2599_v8  ;;  %v2626_v17 = vadd.s32 128, %v2578_v1 }
  0x5b   : > { %5870 = vst [vmem:[#allocation17_spill] sm:$0xff] %v2593_v6  ;;  %5871 = vst [vmem:[#allocation18_spill] sm:$0xff] %v2596_v7  ;;  %v2629_v18 = vadd.s32 128, %v2581_v2  ;;  %v2632_v19 = vadd.s32 128, %v2584_v3  ;;  %v2635_v20 = vadd.s32 128, %v2587_v4  ;;  %v2638_v21 = vadd.s32 128, %v2590_v5 }
  0x5c   : > { %5872 = vst [vmem:[#allocation19_spill] sm:$0xff] %v2599_v8  ;;  %5873 = vst [vmem:[#allocation20_spill] sm:$0xff] %v2602_v9  ;;  %v2641_v22 = vadd.s32 128, %v2593_v6  ;;  %v2644_v23 = vadd.s32 128, %v2596_v7  ;;  %v2647_v24 = vadd.s32 128, %v2599_v8  ;;  %v2650_v25 = vadd.s32 192, %v2578_v1 }
  0x5d   : > { %5874 = vst [vmem:[#allocation21_spill] sm:$0xff] %v2605_v10  ;;  %5875 = vst [vmem:[#allocation22_spill] sm:$0xff] %v2608_v11  ;;  %v2653_v26 = vadd.s32 192, %v2581_v2  ;;  %v2656_v27 = vadd.s32 192, %v2584_v3  ;;  %v2659_v28 = vadd.s32 192, %v2587_v4  ;;  %v2662_v29 = vadd.s32 192, %v2590_v5 }
  0x5e   : > { %5876 = vst [vmem:[#allocation23_spill] sm:$0xff] %v2611_v12  ;;  %5877 = vst [vmem:[#allocation24_spill] sm:$0xff] %v2614_v13  ;;  %v2665_v30 = vadd.s32 192, %v2593_v6  ;;  %v2668_v31 = vadd.s32 192, %v2596_v7  ;;  %v2671_v32 = vadd.s32 192, %v2599_v8  ;;  %v2674_v33 = vadd.s32 256, %v2578_v1 }
  0x5f   : > { %5878 = vst [vmem:[#allocation25_spill] sm:$0xff] %v2617_v14  ;;  %5879 = vst [vmem:[#allocation26_spill] sm:$0xff] %v2620_v15  ;;  %v2677_v34 = vadd.s32 256, %v2581_v2  ;;  %v2680_v35 = vadd.s32 256, %v2584_v3  ;;  %v2683_v36 = vadd.s32 256, %v2587_v4  ;;  %v2686_v37 = vadd.s32 256, %v2590_v5 }
  0x60   : > { %5880 = vst [vmem:[#allocation27_spill] sm:$0xff] %v2623_v16  ;;  %5881 = vst [vmem:[#allocation28_spill] sm:$0xff] %v2626_v17  ;;  %v2689_v38 = vadd.s32 256, %v2593_v6  ;;  %v2692_v39 = vadd.s32 256, %v2596_v7  ;;  %v2695_v40 = vadd.s32 256, %v2599_v8  ;;  %v2698_v41 = vadd.s32 320, %v2578_v1 }
  0x61   : > { %5882 = vst [vmem:[#allocation29_spill] sm:$0xff] %v2629_v18  ;;  %5883 = vst [vmem:[#allocation30_spill] sm:$0xff] %v2632_v19  ;;  %v2701_v42 = vadd.s32 320, %v2581_v2  ;;  %v2704_v43 = vadd.s32 320, %v2584_v3  ;;  %v2707_v44 = vadd.s32 320, %v2587_v4  ;;  %v2710_v45 = vadd.s32 320, %v2590_v5 }
  0x62   : > { %5884 = vst [vmem:[#allocation31_spill] sm:$0xff] %v2635_v20  ;;  %5885 = vst [vmem:[#allocation32_spill] sm:$0xff] %v2638_v21  ;;  %v2713_v46 = vadd.s32 320, %v2593_v6  ;;  %v2722_v49 = vadd.s32 320, %v2596_v7  ;;  %v2725_v50 = vadd.s32 320, %v2599_v8  ;;  %v2728_v51 = vadd.s32 384, %v2578_v1 }
  0x63   : > { %5886 = vst [vmem:[#allocation33_spill] sm:$0xff] %v2641_v22  ;;  %5887 = vst [vmem:[#allocation34_spill] sm:$0xff] %v2644_v23  ;;  %v2731_v52 = vadd.s32 384, %v2581_v2  ;;  %v2740_v55 = vadd.s32 384, %v2584_v3  ;;  %v2743_v56 = vadd.s32 384, %v2587_v4  ;;  %v2746_v57 = vadd.s32 384, %v2590_v5 }
  0x64   : > { %5888 = vst [vmem:[#allocation35_spill] sm:$0xff] %v2647_v24  ;;  %5889 = vst [vmem:[#allocation36_spill] sm:$0xff] %v2650_v25  ;;  %v2749_v58 = vadd.s32 384, %v2593_v6  ;;  %v2761_v62 = vadd.s32 384, %v2596_v7  ;;  %v2764_v63 = vadd.s32 384, %v2599_v8  ;;  %v2767_v0 = vadd.s32 448, %v2578_v1 }
  0x65   : > { %5890 = vst [vmem:[#allocation37_spill] sm:$0xff] %v2653_v26  ;;  %5891 = vst [vmem:[#allocation38_spill] sm:$0xff] %v2656_v27  ;;  %v2889_v26 = vld [vmem:[%s2566_s3 + $0xb0] sm:$0xff]  ;;  %v2892_v25 = vld [vmem:[%s2566_s3 + $0xb8] sm:$0xff]  ;;  %s2312_s8 = scalar_lea.vmem %s5611_s5, 1024  ;;  %p6865_p4 = scmp.ne.s32.totalorder %s5859_s25, 0 }
  0x66   : > { %5892 = vst [vmem:[#allocation39_spill] sm:$0xff] %v2659_v28  ;;  %5893 = vst [vmem:[#allocation40_spill] sm:$0xff] %v2662_v29  ;;  %v2895_v24 = vld [vmem:[%s2566_s3 + $0xc0] sm:$0xff]  ;;  %v2901_v23 = vld [vmem:[%s2572_s4 + $0x58] sm:$0xff]  ;;  %p2313_p2 = scmp.ne.s32.totalorder %s5611_s5, %s2312_s8  ;;  %s2423_s18 = smov [#allocation8]  }
  0x67   : > { %5894 = vst [vmem:[#allocation41_spill] sm:$0xff] %v2665_v30  ;;  %5895 = vst [vmem:[#allocation42_spill] sm:$0xff] %v2668_v31  ;;  %v2874_v31 = vld [vmem:[%s2572_s4 + $0x40] sm:$0xff]  ;;  %v2898_v30 = vld [vmem:[%s2572_s4 + $0x50] sm:$0xff]  ;;  %s2316_s20 = sshll.u32 %s2423_s18, 4  ;;  %s2317_s20 = int_to_ptr.vmem [resolvable:$false] %s2316_s20 }
  0x68   : > { %5896 = vst [vmem:[#allocation43_spill] sm:$0xff] %v2671_v32  ;;  %5897 = vst [vmem:[#allocation44_spill] sm:$0xff] %v2674_v33  ;;  %v2865_v33 = vld [vmem:[%s2566_s3 + $0xa0] sm:$0xff]  ;;  %v2868_v32 = vld [vmem:[%s2566_s3 + $0xa8] sm:$0xff]  ;;  %p2314_p12 = pnand %p2313_p2, %p6865_p4  ;;  %s2318_s23 = scalar_lea.vmem %s2317_s20, 2048 }
  0x69   : > { %5898 = vst [vmem:[#allocation45_spill] sm:$0xff] %v2677_v34  ;;  %5899 = vst [vmem:[#allocation46_spill] sm:$0xff] %v2680_v35  ;;  %v2862_v34 = vld [vmem:[%s2566_s3 + $0x98] sm:$0xff]  ;;  %v2904_v29 = vld [vmem:[%s2572_s4 + $0x60] sm:$0xff]  ;;  %p2319_p0 = scmp.lt.s32.totalorder %s5611_s5, %s2317_s20  ;;  %p2320_p8 = scmp.lt.s32.totalorder %s2318_s23, %s2312_s8 }
  0x6a   : > { %5900 = vst [vmem:[#allocation47_spill] sm:$0xff] %v2683_v36  ;;  %5901 = vst [vmem:[#allocation48_spill] sm:$0xff] %v2686_v37  ;;  %v2849_v37 = vld [vmem:[%s2572_s4 + $0x30] sm:$0xff]  ;;  %v2916_v19 = vld [vmem:[%s2566_s3 + $0xc8] sm:$0xff]  ;;  %p2315_p13 = pneg %p2314_p12 }
  0x6b   : > { %5902 = vst [vmem:[#allocation49_spill] sm:$0xff] %v2689_v38  ;;  %5903 = vst [vmem:[#allocation50_spill] sm:$0xff] %v2692_v39  ;;  %v2843_v39 = vld [vmem:[%s2572_s4 + $0x20] sm:$0xff]  ;;  %v2846_v38 = vld [vmem:[%s2572_s4 + $0x28] sm:$0xff]  ;;  %p2321_p9 = por %p2320_p8, %p2319_p0 }
  0x6c   : > { %5904 = vst [vmem:[#allocation51_spill] sm:$0xff] %v2695_v40  ;;  %5905 = vst [vmem:[#allocation52_spill] sm:$0xff] %v2698_v41  ;;  %v2837_v41 = vld [vmem:[%s2566_s3 + $0x88] sm:$0xff]  ;;  %v2840_v40 = vld [vmem:[%s2566_s3 + $0x90] sm:$0xff]  ;;  %v2940_v13 = vadd.f32 1.0, %v2843_v39 }
  0x6d   : > { %5906 = vst [vmem:[#allocation53_spill] sm:$0xff] %v2701_v42  ;;  %5907 = vst [vmem:[#allocation54_spill] sm:$0xff] %v2704_v43  ;;  %v2827_v43 = vld [vmem:[%s2572_s4 + $0x18] sm:$0xff]  ;;  %v2919_v18 = vld [vmem:[%s2566_s3 + $0xd0] sm:$0xff]  ;;  %p2322_p10 = pnand %p2321_p9, %p2315_p13 }
  0x6e   : > { %5908 = vst [vmem:[#allocation55_spill] sm:$0xff] %v2707_v44  ;;  %5909 = vst [vmem:[#allocation56_spill] sm:$0xff] %v2710_v45  ;;  %v2818_v45 = vld [vmem:[%s2566_s3 + $0x68] sm:$0xff]  ;;  %v2824_v44 = vld [vmem:[%s2566_s3 + $0x78] sm:$0xff]  ;;  %v2913_v20 = vadd.f32 1.0, %v2827_v43 }
  0x6f   : > { %5910 = vst [vmem:[#allocation57_spill] sm:$0xff] %v2713_v46  ;;  %5913 = vst [vmem:[#allocation60_spill] sm:$0xff] %v2722_v49  ;;  %v2803_v49 = vld [vmem:[%s2566_s3 + $0x58] sm:$0xff]  ;;  %v2809_v46 = vld [vmem:[%s2572_s4 + $0x10] sm:$0xff] }
  0x70   : > { %5914 = vst [vmem:[#allocation61_spill] sm:$0xff] %v2725_v50  ;;  %5915 = vst [vmem:[#allocation62_spill] sm:$0xff] %v2728_v51  ;;  %v2797_v51 = vadd.s32 448, %v2593_v6  ;;  %v2800_v50 = vld [vmem:[%s2566_s3 + $0x50] sm:$0xff]  ;;  %v2871_v42 = vld [vmem:[%s2572_s4 + $0x38] sm:$0xff]  ;;  %v2886_v27 = vadd.f32 1.0, %v2809_v46 }
  0x71   : > { %5916 = vst [vmem:[#allocation63_spill] sm:$0xff] %v2731_v52  ;;  %5919 = vst [vmem:[#allocation66_spill] sm:$0xff] %v2740_v55  ;;  %v2779_v55 = vld [vmem:[%s2566_s3 + $0x48] sm:$0xff]  ;;  %v2922_v17 = vld [vmem:[%s2566_s3 + $0xd8] sm:$0xff]  ;;  %v2967_v6 = vadd.f32 1.0, %v2846_v38 }
  0x72   : > { %5920 = vst [vmem:[#allocation67_spill] sm:$0xff] %v2743_v56  ;;  %5921 = vst [vmem:[#allocation68_spill] sm:$0xff] %v2746_v57  ;;  %v2773_v57 = vld [vmem:[%s2566_s3 + $0x38] sm:$0xff]  ;;  %v2776_v56 = vld [vmem:[%s2566_s3 + $0x40] sm:$0xff] }
  0x73   : > { %5922 = vst [vmem:[#allocation69_spill] sm:$0xff] %v2749_v58  ;;  %5926 = vst [vmem:[#allocation73_spill] sm:$0xff] %v2761_v62  ;;  %v2770_v58 = vadd.s32 448, %v2581_v2  ;;  %v2782_v62 = vld [vmem:[%s2572_s4] sm:$0xff]  ;;  %v2785_v52 = vld [vmem:[%s2572_s4 + $0x8] sm:$0xff] }
  0x74   : > { %5927 = vst [vmem:[#allocation74_spill] sm:$0xff] %v2764_v63  ;;  %5928 = vst [vmem:[#allocation75_spill] sm:$0xff] %v2767_v0  ;;  %v2788_v63 = vadd.s32 448, %v2584_v3  ;;  %v2794_v0 = vadd.s32 448, %v2590_v5  ;;  %v2856_v36 = vadd.f32 1.0, %v2782_v62  ;;  %v2859_v35 = vadd.f32 1.0, %v2785_v52 }
  0x75   : > { %5929 = vst [vmem:[#allocation76_spill] sm:$0xff] %v2770_v58  ;;  %5930 = vst [vmem:[#allocation77_spill] sm:$0xff] %v2773_v57  ;;  %v2791_v58 = vadd.s32 448, %v2587_v4  ;;  %v2925_v28 = vld [vmem:[%s2572_s4 + $0x68] sm:$0xff]  ;;  %v2928_v16 = vld [vmem:[%s2572_s4 + $0x70] sm:$0xff] }
  0x76   : > { %5931 = vst [vmem:[#allocation78_spill] sm:$0xff] %v2776_v56  ;;  %5932 = vst [vmem:[#allocation79_spill] sm:$0xff] %v2779_v55  ;;  %v2931_v22 = vld [vmem:[%s2572_s4 + $0x78] sm:$0xff]  ;;  %v2943_v12 = vld [vmem:[%s2566_s3 + $0xe0] sm:$0xff]  ;;  %2000 = vrcp.f32 %v2856_v36 }
  0x77   : > { %5933 = vst [vmem:[#allocation80_spill] sm:$0xff] %v2782_v62  ;;  %5934 = vst [vmem:[#allocation81_spill] sm:$0xff] %v2785_v52  ;;  %v2946_v11 = vld [vmem:[%s2566_s3 + $0xe8] sm:$0xff]  ;;  %v2949_v10 = vld [vmem:[%s2566_s3 + $0xf0] sm:$0xff]  ;;  %2002 = vrcp.f32 %v2859_v35 }
  0x78   : > { %5935 = vst [vmem:[#allocation82_spill] sm:$0xff] %v2788_v63  ;;  %5936 = vst [vmem:[#allocation83_spill] sm:$0xff] %v2791_v58  ;;  %v2806_v63 = vld [vmem:[%s2566_s3 + $0x60] sm:$0xff]  ;;  %v2812_v58 = vadd.s32 448, %v2596_v7  ;;  %v2955_v9 = vld [vmem:[%s2572_s4 + $0x88] sm:$0xff]  ;;  %2004 = vrcp.f32 %v2886_v27  ;;  %v3198_v27 = vadd.f32 1.0, %v2928_v16 }
  0x79   : > { %5937 = vst [vmem:[#allocation84_spill] sm:$0xff] %v2794_v0  ;;  %5938 = vst [vmem:[#allocation85_spill] sm:$0xff] %v2797_v51  ;;  %v2815_v0 = vadd.s32 448, %v2599_v8  ;;  %v2821_v51 = vld [vmem:[%s2566_s3 + $0x70] sm:$0xff]  ;;  %v2952_v21 = vld [vmem:[%s2572_s4 + $0x80] sm:$0xff]  ;;  %2006 = vrcp.f32 %v2913_v20  ;;  %v3218_v20 = vadd.f32 1.0, %v2931_v22 }
  0x7a   : > { %5939 = vst [vmem:[#allocation86_spill] sm:$0xff] %v2800_v50  ;;  %5940 = vst [vmem:[#allocation87_spill] sm:$0xff] %v2803_v49  ;;  %v2958_v15 = vld [vmem:[%s2572_s4 + $0x90] sm:$0xff]  ;;  %v2970_v5 = vld [vmem:[%s2566_s3 + $0xf8] sm:$0xff]  ;;  %2008 = vrcp.f32 %v2940_v13 }
  0x7b   : > { %5941 = vst [vmem:[#allocation88_spill] sm:$0xff] %v2806_v63  ;;  %5942 = vst [vmem:[#allocation89_spill] sm:$0xff] %v2809_v46  ;;  %v2973_v4 = vld [vmem:[%s2566_s3 + $0x100] sm:$0xff]  ;;  %v2976_v3 = vld [vmem:[%s2566_s3 + $0x108] sm:$0xff]  ;;  %2010 = vrcp.f32 %v2967_v6  ;;  %v529_v13 = vadd.f32 1.0, %v2958_v15 }
  0x7c   : > { %5943 = vst [vmem:[#allocation90_spill] sm:$0xff] %v2812_v58  ;;  %5944 = vst [vmem:[#allocation91_spill] sm:$0xff] %v2815_v0  ;;  %v2834_v0 = vld [vmem:[%s2566_s3 + $0x80] sm:$0xff]  ;;  %v2877_v58 = vld [vmem:[%s2572_s4 + $0x48] sm:$0xff] }
  0x7d   : > { %5945 = vst [vmem:[#allocation92_spill] sm:$0xff] %v2818_v45  ;;  %5946 = vst [vmem:[#allocation93_spill] sm:$0xff] %v2821_v51  ;;  %v2979_v2 = vld [vmem:[%s2572_s4 + $0x98] sm:$0xff]  ;;  %v2982_v14 = vld [vmem:[%s2572_s4 + $0xa0] sm:$0xff]  ;;  %v2994_v51 = vadd.f32 1.0, %v2849_v37 }
  0x7e   : > { %5947 = vst [vmem:[#allocation94_spill] sm:$0xff] %v2824_v44  ;;  %5948 = vst [vmem:[#allocation95_spill] sm:$0xff] %v2827_v43  ;;  %v2985_v8 = vld [vmem:[%s2572_s4 + $0xa8] sm:$0xff]  ;;  %v2997_v45 = vld [vmem:[%s2566_s3 + $0x110] sm:$0xff] }
  0x7f   : > { %5949 = vst [vmem:[#allocation96_spill] sm:$0xff] %v2834_v0  ;;  %5950 = vst [vmem:[#allocation97_spill] sm:$0xff] %v2837_v41  ;;  %v3000_v63 = vld [vmem:[%s2566_s3 + $0x118] sm:$0xff]  ;;  %v3003_v49 = vld [vmem:[%s2572_s4 + $0xb0] sm:$0xff]  ;;  %v3018_v41 = vadd.f32 1.0, %v2871_v42  ;;  %2012 = vrcp.f32 %v2994_v51 }
  0x80   : > { %5951 = vst [vmem:[#allocation98_spill] sm:$0xff] %v2840_v40  ;;  %5952 = vst [vmem:[#allocation99_spill] sm:$0xff] %v2843_v39  ;;  %v3006_v50 = vld [vmem:[%s2572_s4 + $0xb8] sm:$0xff]  ;;  %v3009_v7 = vld [vmem:[%s2572_s4 + $0xc0] sm:$0xff] }
  0x81   : > { %5953 = vst [vmem:[#allocation100_spill] sm:$0xff] %v2846_v38  ;;  %5954 = vst [vmem:[#allocation101_spill] sm:$0xff] %v2849_v37  ;;  %v3021_v0 = vld [vmem:[%s2566_s3 + $0x120] sm:$0xff]  ;;  %v3024_v55 = vld [vmem:[%s2566_s3 + $0x128] sm:$0xff]  ;;  %2014 = vrcp.f32 %v3018_v41 }
  0x82   : > { %5955 = vst [vmem:[#allocation102_spill] sm:$0xff] %v2862_v34  ;;  %5956 = vst [vmem:[#allocation103_spill] sm:$0xff] %v2865_v33  ;;  %v3027_v56 = vld [vmem:[%s2572_s4 + $0xc8] sm:$0xff]  ;;  %v3030_v57 = vld [vmem:[%s2572_s4 + $0xd0] sm:$0xff]  ;;  %v3042_v33 = vadd.f32 1.0, %v2874_v31 }
  0x83   : > { %5957 = vst [vmem:[#allocation104_spill] sm:$0xff] %v2868_v32  ;;  %5958 = vst [vmem:[#allocation105_spill] sm:$0xff] %v2871_v42  ;;  %v3033_v1 = vld [vmem:[%s2572_s4 + $0xd8] sm:$0xff]  ;;  %v3045_v34 = vld [vmem:[%s2566_s3 + $0x130] sm:$0xff] }
  0x84   : > { %5959 = vst [vmem:[#allocation106_spill] sm:$0xff] %v2874_v31  ;;  %5960 = vst [vmem:[#allocation107_spill] sm:$0xff] %v2877_v58  ;;  %v3048_v42 = vld [vmem:[%s2566_s3 + $0x138] sm:$0xff]  ;;  %v3051_v37 = vld [vmem:[%s2566_s3 + $0x140] sm:$0xff]  ;;  %2016 = vrcp.f32 %v3042_v33 }
  0x85   : > { %5961 = vst [vmem:[#allocation108_spill] sm:$0xff] %v2889_v26  ;;  %5962 = vst [vmem:[#allocation109_spill] sm:$0xff] %v2892_v25  ;;  %v3057_v44 = vld [vmem:[%s2572_s4 + $0xe8] sm:$0xff]  ;;  %v3060_v40 = vld [vmem:[%s2572_s4 + $0xf0] sm:$0xff]  ;;  %v3069_v26 = vadd.f32 1.0, %v2877_v58 }
  0x86   : > { %5963 = vst [vmem:[#allocation110_spill] sm:$0xff] %v2895_v24  ;;  %5964 = vst [vmem:[#allocation111_spill] sm:$0xff] %v2898_v30  ;;  %v3072_v31 = vld [vmem:[%s2566_s3 + $0x148] sm:$0xff]  ;;  %v3075_v38 = vld [vmem:[%s2566_s3 + $0x150] sm:$0xff]  ;;  %v3133_v24 = vadd.f32 1.0, %v2904_v29 }
  0x87   : > { %5965 = vst [vmem:[#allocation112_spill] sm:$0xff] %v2901_v23  ;;  %5966 = vst [vmem:[#allocation113_spill] sm:$0xff] %v2904_v29  ;;  %v3081_v39 = vld [vmem:[%s2572_s4 + $0x100] sm:$0xff]  ;;  %v3084_v32 = vld [vmem:[%s2572_s4 + $0x108] sm:$0xff]  ;;  %2018 = vrcp.f32 %v3069_v26 }
  0x88   : > { %5967 = vst [vmem:[#allocation114_spill] sm:$0xff] %v2916_v19  ;;  %5968 = vst [vmem:[#allocation115_spill] sm:$0xff] %v2919_v18  ;;  %v3093_v18 = vadd.f32 1.0, %v2898_v30  ;;  %v3096_v19 = vld [vmem:[%s2566_s3 + $0x158] sm:$0xff]  ;;  %v3099_v58 = vld [vmem:[%s2566_s3 + $0x160] sm:$0xff] }
  0x89   : > { %5969 = vst [vmem:[#allocation116_spill] sm:$0xff] %v2922_v17  ;;  %5970 = vst [vmem:[#allocation117_spill] sm:$0xff] %v2925_v28  ;;  %v3102_v59 = vld [vmem:[%s2572_s4 + $0x110] sm:$0xff]  ;;  %v3105_v43 = vld [vmem:[%s2572_s4 + $0x118] sm:$0xff] }
  0x8a   : > { %5971 = vst [vmem:[#allocation118_spill] sm:$0xff] %v2928_v16  ;;  %5972 = vst [vmem:[#allocation119_spill] sm:$0xff] %v2931_v22  ;;  %v3123_v30 = vld [vmem:[%s2572_s4 + $0x120] sm:$0xff]  ;;  %v3126_v54 = vld [vmem:[%s2572_s4 + $0x128] sm:$0xff]  ;;  %2020 = vrcp.f32 %v3093_v18  ;;  %v537_v18 = vadd.f32 1.0, %v3030_v57 }
  0x8b   : > { %5973 = vst [vmem:[#allocation120_spill] sm:$0xff] %v2943_v12  ;;  %5974 = vst [vmem:[#allocation121_spill] sm:$0xff] %v2946_v11  ;;  %v3117_v11 = vld [vmem:[%s2566_s3 + $0x168] sm:$0xff]  ;;  %v3120_v12 = vld [vmem:[%s2566_s3 + $0x170] sm:$0xff] }
  0x8c   : > { %5975 = vst [vmem:[#allocation122_spill] sm:$0xff] %v2949_v10  ;;  %5976 = vst [vmem:[#allocation123_spill] sm:$0xff] %v2952_v21  ;;  %v3114_v10 = vadd.f32 1.0, %v2901_v23  ;;  %v3146_v23 = vld [vmem:[%s2572_s4 + $0x130] sm:$0xff]  ;;  %v3149_v17 = vld [vmem:[%s2572_s4 + $0x138] sm:$0xff] }
  0x8d   : > { %5977 = vst [vmem:[#allocation124_spill] sm:$0xff] %v2955_v9  ;;  %5978 = vst [vmem:[#allocation125_spill] sm:$0xff] %v2958_v15  ;;  %v3152_v25 = vld [vmem:[%s2572_s4 + $0x140] sm:$0xff]  ;;  %v3163_v29 = vld [vmem:[%s2566_s3 + $0x190] sm:$0xff]  ;;  %v531_v15 = vadd.f32 1.0, %v2982_v14 }
  0x8e   : > { %5979 = vst [vmem:[#allocation126_spill] sm:$0xff] %v2970_v5  ;;  %5980 = vst [vmem:[#allocation127_spill] sm:$0xff] %v2973_v4  ;;  %v3140_v4 = vld [vmem:[%s2566_s3 + $0x180] sm:$0xff]  ;;  %v3143_v5 = vld [vmem:[%s2566_s3 + $0x188] sm:$0xff]  ;;  %2022 = vrcp.f32 %v3114_v10  ;;  %v534_v10 = vadd.f32 1.0, %v3006_v50 }
  0x8f   : > { %5981 = vst [vmem:[#allocation128_spill] sm:$0xff] %v2976_v3  ;;  %5982 = vst [vmem:[#allocation129_spill] sm:$0xff] %v2979_v2  ;;  %v3137_v3 = vld [vmem:[%s2566_s3 + $0x178] sm:$0xff]  ;;  %v3169_v53 = vld [vmem:[%s2572_s4 + $0x148] sm:$0xff]  ;;  %2024 = vrcp.f32 %v3133_v24 }
  0x90   : > { %5983 = vst [vmem:[#allocation130_spill] sm:$0xff] %v2997_v45  ;;  %5984 = vst [vmem:[#allocation131_spill] sm:$0xff] %v3000_v63  ;;  %v3159_v45 = vadd.f32 1.0, %v2925_v28  ;;  %v3166_v46 = vld [vmem:[%s2566_s3 + $0x198] sm:$0xff]  ;;  %v3172_v52 = vld [vmem:[%s2572_s4 + $0x150] sm:$0xff] }
  0x91   : > { %5985 = vst [vmem:[#allocation132_spill] sm:$0xff] %v3009_v7  ;;  %5986 = vst [vmem:[#allocation133_spill] sm:$0xff] %v3021_v0  ;;  %v3185_v0 = vld [vmem:[%s2566_s3 + $0x1a8] sm:$0xff]  ;;  %v3188_v28 = vld [vmem:[%s2572_s4 + $0x158] sm:$0xff] }
  0x92   : > { %5987 = vst [vmem:[#allocation134_spill] sm:$0xff] %v3024_v55  ;;  %5988 = vst [vmem:[#allocation135_spill] sm:$0xff] %v3027_v56  ;;  %v3182_v55 = vld [vmem:[%s2566_s3 + $0x1a0] sm:$0xff]  ;;  %v3202_v36 = vld [vmem:[%s2566_s3 + $0x1b0] sm:$0xff]  ;;  %2026 = vrcp.f32 %v3159_v45 }
  0x93   : > { %5989 = vst [vmem:[#allocation136_spill] sm:$0xff] %v3030_v57  ;;  %5990 = vst [vmem:[#allocation137_spill] sm:$0xff] %v3033_v1  ;;  %v3191_v48 = vld [vmem:[%s2572_s4 + $0x160] sm:$0xff]  ;;  %v3228_v16 = vld [vmem:[%s2566_s3 + $0x1d0] sm:$0xff]  ;;  %2028 = vrcp.f32 %v3198_v27  ;;  %v3376_v27 = vadd.f32 1.0, %v3081_v39 }
  0x94   : > { %5991 = vst [vmem:[#allocation138_spill] sm:$0xff] %v3045_v34  ;;  %5992 = vst [vmem:[#allocation139_spill] sm:$0xff] %v3048_v42  ;;  %v3208_v42 = vld [vmem:[%s2572_s4 + $0x168] sm:$0xff]  ;;  %v3211_v34 = vld [vmem:[%s2572_s4 + $0x170] sm:$0xff]  ;;  %2030 = vrcp.f32 %v3218_v20  ;;  %v3385_v20 = vadd.f32 1.0, %v3102_v59 }
  0x95   : > { %5993 = vst [vmem:[#allocation140_spill] sm:$0xff] %v3051_v37  ;;  %5994 = vst [vmem:[#allocation141_spill] sm:$0xff] %v3054_v61  ;;  %v3205_v37 = vld [vmem:[%s2566_s3 + $0x1b8] sm:$0xff]  ;;  %v3234_v63 = vld [vmem:[%s2572_s4 + $0x180] sm:$0xff] }
  0x96   : > { %5995 = vst [vmem:[#allocation142_spill] sm:$0xff] %v3057_v44  ;;  %5996 = vst [vmem:[#allocation143_spill] sm:$0xff] %v3060_v40  ;;  %v3231_v62 = vld [vmem:[%s2572_s4 + $0x178] sm:$0xff]  ;;  %v3237_v35 = vld [vmem:[%s2572_s4 + $0x188] sm:$0xff] }
  0x97   : > { %5997 = vst [vmem:[#allocation144_spill] sm:$0xff] %v3072_v31  ;;  %5998 = vst [vmem:[#allocation145_spill] sm:$0xff] %v3075_v38  ;;  %v3222_v38 = vld [vmem:[%s2566_s3 + $0x1c0] sm:$0xff]  ;;  %v3225_v31 = vld [vmem:[%s2566_s3 + $0x1c8] sm:$0xff] }
  0x98   : > { %6000 = vst [vmem:[#allocation147_spill] sm:$0xff] %v3081_v39  ;;  %6001 = vst [vmem:[#allocation148_spill] sm:$0xff] %v3084_v32  ;;  %v3248_v22 = vld [vmem:[%s2566_s3 + $0x1d8] sm:$0xff]  ;;  %v3251_v47 = vld [vmem:[%s2566_s3 + $0x1e0] sm:$0xff]  ;;  %v3396_v39 = vadd.f32 1.0, %v3126_v54 }
  0x99   : > { %6002 = vst [vmem:[#allocation149_spill] sm:$0xff] %v3096_v19  ;;  %6003 = vst [vmem:[#allocation150_spill] sm:$0xff] %v3099_v58  ;;  %v3244_v19 = vadd.f32 1.0, %v2952_v21  ;;  %v3273_v21 = vld [vmem:[%s2572_s4 + $0x1a8] sm:$0xff]  ;;  %v3282_v51 = vld [vmem:[%s2566_s3 + $0x1f0] sm:$0xff]  ;;  %v530_v58 = vadd.f32 1.0, %v2979_v2 }
  0x9a   : > { %6004 = vst [vmem:[#allocation151_spill] sm:$0xff] %v3102_v59  ;;  %6005 = vst [vmem:[#allocation152_spill] sm:$0xff] %v3105_v43  ;;  %v3285_v6 = vld [vmem:[%s2572_s4 + $0x1b0] sm:$0xff]  ;;  %v3297_v41 = vld [vmem:[%s2572_s4 + $0x1c0] sm:$0xff]  ;;  %v3361_v2 = vadd.f32 1.0, %v3054_v61  ;;  %v3404_v59 = vadd.f32 1.0, %v3149_v17 }
  0x9b   : > { %6006 = vst [vmem:[#allocation153_spill] sm:$0xff] %v3117_v11  ;;  %6007 = vst [vmem:[#allocation154_spill] sm:$0xff] %v3120_v12  ;;  %v3267_v12 = vld [vmem:[%s2566_s3 + $0x1e8] sm:$0xff]  ;;  %v3270_v11 = vld [vmem:[%s2572_s4 + $0x1a0] sm:$0xff] }
  0x9c   : > { %6008 = vst [vmem:[#allocation155_spill] sm:$0xff] %v3123_v30  ;;  %6009 = vst [vmem:[#allocation156_spill] sm:$0xff] %v3126_v54  ;;  %v3315_v33 = vld [vmem:[%s2572_s4 + $0x1d8] sm:$0xff]  ;;  %v3331_v26 = vld [vmem:[%s2572_s4 + $0x1f0] sm:$0xff]  ;;  %v3415_v54 = vadd.f32 1.0, %v3172_v52 }
  0x9d   : > { %6010 = vst [vmem:[#allocation157_spill] sm:$0xff] %v3137_v3  ;;  %6011 = vst [vmem:[#allocation158_spill] sm:$0xff] %v3140_v4  ;;  %v528_v4 = vadd.f32 1.0, %v2955_v9  ;;  %v3340_v9 = vld [vmem:[%s2572_s4 + $0x1f8] sm:$0xff]  ;;  %v535_v3 = vadd.f32 1.0, %v3009_v7  ;;  %v6060_v7 = vld [vmem:[#allocation80_spill] sm:$0xff] }
  0x9e   : > { %6012 = vst [vmem:[#allocation159_spill] sm:$0xff] %v3143_v5  ;;  %6013 = vst [vmem:[#allocation160_spill] sm:$0xff] %v3146_v23  ;;  %v3288_v5 = vld [vmem:[%s2572_s4 + $0x1b8] sm:$0xff] }
  0x9f   : > { %6014 = vst [vmem:[#allocation161_spill] sm:$0xff] %v3149_v17  ;;  %6015 = vst [vmem:[#allocation162_spill] sm:$0xff] %v3152_v25 }
  0xa0   : > { %6016 = vst [vmem:[#allocation163_spill] sm:$0xff] %v3163_v29  ;;  %6017 = vst [vmem:[#allocation164_spill] sm:$0xff] %v3166_v46  ;;  %v3300_v46 = vld [vmem:[%s2572_s4 + $0x1c8] sm:$0xff]  ;;  %v3303_v29 = vld [vmem:[%s2572_s4 + $0x1d0] sm:$0xff] }
  0xa1   : > { %6018 = vst [vmem:[#allocation165_spill] sm:$0xff] %v3169_v53  ;;  %6019 = vst [vmem:[#allocation166_spill] sm:$0xff] %v3172_v52 }
  0xa2   : > { %6020 = vst [vmem:[#allocation167_spill] sm:$0xff] %v3182_v55  ;;  %6021 = vst [vmem:[#allocation168_spill] sm:$0xff] %v3185_v0  ;;  %v3312_v0 = vld [vmem:[%s2566_s3 + $0x1f8] sm:$0xff]  ;;  %v3318_v55 = vld [vmem:[%s2572_s4 + $0x1e0] sm:$0xff] }
  0xa3   : > { %6022 = vst [vmem:[#allocation169_spill] sm:$0xff] %v3188_v28  ;;  %6023 = vst [vmem:[#allocation170_spill] sm:$0xff] %v3191_v48  ;;  %v3254_v48 = vld [vmem:[%s2572_s4 + $0x190] sm:$0xff]  ;;  %v3257_v28 = vld [vmem:[%s2572_s4 + $0x198] sm:$0xff] }
  0xa4   : > { %6024 = vst [vmem:[#allocation171_spill] sm:$0xff] %v3202_v36  ;;  %6025 = vst [vmem:[#allocation172_spill] sm:$0xff] %v3205_v37  ;;  %v3328_v37 = vld [vmem:[%s2572_s4 + $0x1e8] sm:$0xff]  ;;  %v2001_v36 = vpop.eup %2000  ;;  %2032 = vrcp.f32 %v3244_v19  ;;  %v3399_v19 = vadd.f32 1.0, %v3146_v23 }
  0xa5   : > { %6026 = vst [vmem:[#allocation173_spill] sm:$0xff] %v3208_v42  ;;  %6027 = vst [vmem:[#allocation174_spill] sm:$0xff] %v3211_v34 }
  0xa6   : > { %6028 = vst [vmem:[#allocation175_spill] sm:$0xff] %v3222_v38  ;;  %6029 = vst [vmem:[#allocation176_spill] sm:$0xff] %v3225_v31  ;;  %v3370_v31 = vadd.f32 1.0, %v3060_v40  ;;  %v3373_v38 = vadd.f32 1.0, %v3078_v60  ;;  %v3393_v60 = vadd.f32 1.0, %v3123_v30 }
  0xa7   : > { %6030 = vst [vmem:[#allocation177_spill] sm:$0xff] %v3228_v16  ;;  %6031 = vst [vmem:[#allocation178_spill] sm:$0xff] %v3231_v62  ;;  %v532_v16 = vadd.f32 1.0, %v2985_v8 }
  0xa8   : > { %6032 = vst [vmem:[#allocation179_spill] sm:$0xff] %v3234_v63  ;;  %6033 = vst [vmem:[#allocation180_spill] sm:$0xff] %v3237_v35 }
  0xa9   : > { %6034 = vst [vmem:[#allocation181_spill] sm:$0xff] %v3248_v22  ;;  %6035 = vst [vmem:[#allocation182_spill] sm:$0xff] %v3251_v47  ;;  %v533_v47 = vadd.f32 1.0, %v3003_v49  ;;  %v2003_v22 = vpop.eup %2002  ;;  %2034 = vrcp.f32 %v528_v4  ;;  %v3410_v4 = vadd.f32 1.0, %v3169_v53  ;;  %v3429_v53 = vadd.f32 1.0, %v3211_v34 }
  0xaa   : > { %6036 = vst [vmem:[#allocation183_spill] sm:$0xff] %v3254_v48  ;;  %6037 = vst [vmem:[#allocation184_spill] sm:$0xff] %v3257_v28  ;;  %v3357_v24 = vpop.eup %2004  ;;  %2036 = vrcp.f32 %v529_v13  ;;  %v6053_v23 = vld [vmem:[#allocation169_spill] sm:$0xff]  ;;  %v6054_v13 = vld [vmem:[#allocation170_spill] sm:$0xff]  ;;  %v3448_v34 = vadd.f32 1.0, %v3257_v28 }
  0xab   : > { %6038 = vst [vmem:[#allocation185_spill] sm:$0xff] %v3267_v12  ;;  %6039 = vst [vmem:[#allocation186_spill] sm:$0xff] %v3270_v11  ;;  %v536_v12 = vadd.f32 1.0, %v3027_v56  ;;  %v3367_v45 = vpop.eup %2006  ;;  %2038 = vrcp.f32 %v530_v58  ;;  %v3418_v57 = vadd.f32 1.0, %v6053_v23  ;;  %v3421_v56 = vadd.f32 1.0, %v6054_v13  ;;  %v6064_v28 = vld [vmem:[#allocation81_spill] sm:$0xff] }
  0xac   : > { %6040 = vst [vmem:[#allocation187_spill] sm:$0xff] %v3273_v21  ;;  %6041 = vst [vmem:[#allocation188_spill] sm:$0xff] %v3282_v51  ;;  %v538_v51 = vadd.f32 1.0, %v3033_v1  ;;  %v3379_v61 = vpop.eup %2008  ;;  %v3388_v1 = vadd.f32 1.0, %v3105_v43  ;;  %v3407_v43 = vadd.f32 1.0, %v3152_v25  ;;  %2040 = vrcp.f32 %v531_v15 }
  0xad   : > { %6042 = vst [vmem:[#allocation189_spill] sm:$0xff] %v3285_v6  ;;  %6043 = vst [vmem:[#allocation190_spill] sm:$0xff] %v3288_v5  ;;  %v3390_v40 = vpop.eup %2010  ;;  %v3426_v25 = vadd.f32 1.0, %v3208_v42  ;;  %v3432_v58 = vadd.f32 1.0, %v3231_v62  ;;  %2042 = vrcp.f32 %v532_v16  ;;  %v3437_v23 = vadd.f32 1.0, %v3234_v63  ;;  %v6059_v16 = vld [vmem:[#allocation58_spill] sm:$0xff] }
  0xae   : > { %6044 = vst [vmem:[#allocation191_spill] sm:$0xff] %v3297_v41  ;;  %6045 = vst [vmem:[#allocation192_spill] sm:$0xff] %v3300_v46  ;;  %v3440_v13 = vadd.f32 1.0, %v3237_v35  ;;  %v3443_v15 = vadd.f32 1.0, %v3254_v48  ;;  %v3451_v62 = vadd.f32 1.0, %v3270_v11  ;;  %v3461_v48 = vadd.f32 1.0, %v3273_v21 }
  0xaf   : > { %6046 = vst [vmem:[#allocation193_spill] sm:$0xff] %v3303_v29  ;;  %6047 = vst [vmem:[#allocation194_spill] sm:$0xff] %v3312_v0  ;;  %v3364_v0 = vadd.f32 1.0, %v3057_v44  ;;  %v3382_v44 = vadd.f32 1.0, %v3084_v32  ;;  %v3401_v32 = vpop.eup %2012  ;;  %2044 = vrcp.f32 %v533_v47  ;;  %v3464_v47 = vadd.f32 1.0, %v3285_v6  ;;  %v6076_v21 = vld [vmem:[#allocation95_spill] sm:$0xff] }
  0xb0   : > { %6048 = vst [vmem:[#allocation195_spill] sm:$0xff] %v3315_v33  ;;  %6049 = vst [vmem:[#allocation196_spill] sm:$0xff] %v3318_v55  ;;  %v3412_v30 = vpop.eup %2014  ;;  %2046 = vrcp.f32 %v534_v10 }
  0xb1   : > { %6050 = vst [vmem:[#allocation197_spill] sm:$0xff] %v3328_v37  ;;  %6051 = vst [vmem:[#allocation198_spill] sm:$0xff] %v3331_v26  ;;  %v3423_v17 = vpop.eup %2016  ;;  %2048 = vrcp.f32 %v535_v3 }
  0xb2   : > { %6052 = vst [vmem:[#allocation199_spill] sm:$0xff] %v3340_v9  ;;  %6055 = vst [vmem:[#allocation200_spill] sm:$0xff] %v3432_v58  ;;  %v3434_v52 = vpop.eup %2018  ;;  %v6061_v58 = vsub.f32 %v6059_v16, %v6060_v7  ;;  %v3474_v7 = vadd.f32 1.0, %v3288_v5  ;;  %2050 = vrcp.f32 %v536_v12  ;;  %v3481_v16 = vadd.f32 1.0, %v3300_v46  ;;  %v6072_v5 = vld [vmem:[#allocation89_spill] sm:$0xff] }
  0xb3   : > { %6056 = vst [vmem:[#allocation201_spill] sm:$0xff] %v3440_v13  ;;  %6057 = vst [vmem:[#allocation202_spill] sm:$0xff] %v3443_v15  ;;  %v3445_v42 = vpop.eup %2020  ;;  %v6063_v15 = vld [vmem:[#allocation59_spill] sm:$0xff]  ;;  %2052 = vrcp.f32 %v537_v18  ;;  %v3494_v12 = vadd.f32 1.0, %v3328_v37  ;;  %v3497_v46 = vadd.f32 1.0, %v3331_v26  ;;  %v6071_v18 = vld [vmem:[#allocation64_spill] sm:$0xff] }
  0xb4   : > { %6058 = vst [vmem:[#allocation203_spill] sm:$0xff] %v3448_v34  ;;  %v3456_v63 = vmul.f32 %v2001_v36, %v6061_v58  ;;  %v3458_v35 = vpop.eup %2022  ;;  %v6065_v34 = vsub.f32 %v6063_v15, %v6064_v28  ;;  %v3477_v36 = vadd.f32 1.0, %v3297_v41  ;;  %v3484_v28 = vadd.f32 1.0, %v3303_v29  ;;  %v6075_v37 = vld [vmem:[#allocation65_spill] sm:$0xff] }
  0xb5   : > { %v3471_v11 = vpop.eup %2024  ;;  %v3491_v15 = vadd.f32 1.0, %v3318_v55  ;;  %6068 = vst [vmem:[#allocation81_spill] sm:$0xff] %v3494_v12  ;;  %2054 = vrcp.f32 %v538_v51  ;;  %6069 = vst [vmem:[#allocation204_spill] sm:$0xff] %v3497_v46  ;;  %v3500_v29 = vadd.f32 1.0, %v3340_v9  ;;  %v6073_v6 = vsub.f32 %v6071_v18, %v6072_v5 }
  0xb6   : > { %6062 = vst [vmem:[#allocation58_spill] sm:$0xff] %v3456_v63  ;;  %v3469_v13 = vmul.f32 %v2003_v22, %v6065_v34  ;;  %v706_v10 = vmul.f32 -0.5, %v3456_v63  ;;  %v2027_v58 = vpop.eup %2026  ;;  %v3488_v34 = vadd.f32 1.0, %v3315_v33  ;;  %2056 = vrcp.f32 %v3361_v2 }
  0xb7   : > { %v2029_v22 = vpop.eup %2028  ;;  %6067 = vst [vmem:[#allocation59_spill] sm:$0xff] %v3491_v15  ;;  %6070 = vst [vmem:[#allocation205_spill] sm:$0xff] %v3500_v29  ;;  %v3506_v33 = vmul.f32 %v3357_v24, %v6073_v6  ;;  %v6077_v51 = vsub.f32 %v6075_v37, %v6076_v21  ;;  %2058 = vrcp.f32 %v3364_v0  ;;  %v3519_v9 = vadd.f32 1.0, %v3456_v63  ;;  %v6080_v29 = vld [vmem:[#allocation70_spill] sm:$0xff]  ;;  %v6081_v21 = vld [vmem:[#allocation99_spill] sm:$0xff] }
  0xb8   : > { %6066 = vst [vmem:[#allocation80_spill] sm:$0xff] %v3469_v13  ;;  %v715_v3 = vmul.f32 -0.5, %v3469_v13  ;;  %v2031_v41 = vpop.eup %2030  ;;  %v707_v26 = vadd.f32 1.0, %v706_v10  ;;  %2060 = vrcp.f32 %v3370_v31  ;;  %v6082_v37 = vsub.f32 %v6080_v29, %v6081_v21  ;;  %v6083_v0 = vld [vmem:[#allocation71_spill] sm:$0xff]  ;;  %v6087_v6 = vld [vmem:[#allocation72_spill] sm:$0xff] }
  0xb9   : > { %6074 = vst [vmem:[#allocation64_spill] sm:$0xff] %v3506_v33  ;;  %v3509_v55 = vpop.eup %2032  ;;  %v3515_v12 = vmul.f32 %v3367_v45, %v6077_v51  ;;  %6079 = vst [vmem:[#allocation65_spill] sm:$0xff] %v3519_v9  ;;  %v724_v24 = vmul.f32 -0.5, %v3506_v33  ;;  %v6084_v51 = vld [vmem:[#allocation100_spill] sm:$0xff]  ;;  %2062 = vrcp.f32 %v3373_v38  ;;  %v3538_v31 = vadd.f32 1.0, %v3469_v13  ;;  %v6088_v9 = vld [vmem:[#allocation101_spill] sm:$0xff] }
  0xba   : > { %v2035_v5 = vpop.eup %2034  ;;  %v716_v2 = vadd.f32 1.0, %v715_v3  ;;  %v3528_v45 = vmul.f32 %v3379_v61, %v6082_v37  ;;  %v6085_v46 = vsub.f32 %v6083_v0, %v6084_v51  ;;  %v6089_v15 = vsub.f32 %v6087_v6, %v6088_v9  ;;  %v6091_v37 = vld [vmem:[#allocation105_spill] sm:$0xff]  ;;  %v6096_v6 = vld [vmem:[#allocation106_spill] sm:$0xff] }
  0xbb   : > { %6078 = vst [vmem:[#allocation89_spill] sm:$0xff] %v3515_v12  ;;  %v2037_v18 = vpop.eup %2036  ;;  %6086 = vst [vmem:[#allocation95_spill] sm:$0xff] %v3538_v31  ;;  %2064 = vrcp.f32 %v3376_v27  ;;  %v733_v21 = vmul.f32 -0.5, %v3515_v12  ;;  %v3557_v9 = vmul.f32 %v707_v26, %v3456_v63  ;;  %v6100_v26 = vld [vmem:[#allocation107_spill] sm:$0xff] }
  0xbc   : > { %v3534_v10 = vmul.f32 %v3390_v40, %v6085_v46  ;;  %v2039_v3 = vpop.eup %2038  ;;  %v3544_v29 = vmul.f32 %v3401_v32, %v6089_v15  ;;  %v6090_v46 = vld [vmem:[#allocation77_spill] sm:$0xff]  ;;  %2066 = vrcp.f32 %v3382_v44  ;;  %v3560_v32 = vadd.f32 1.0, %v3506_v33  ;;  %v6095_v15 = vld [vmem:[#allocation78_spill] sm:$0xff] }
  0xbd   : > { %v2041_v40 = vpop.eup %2040  ;;  %v6092_v38 = vsub.f32 %v6090_v46, %v6091_v37  ;;  %6093 = vst [vmem:[#allocation70_spill] sm:$0xff] %v3557_v9  ;;  %v6097_v51 = vsub.f32 %v6095_v15, %v6096_v6  ;;  %2068 = vrcp.f32 %v3385_v20  ;;  %v725_v46 = vadd.f32 1.0, %v724_v24  ;;  %v6099_v37 = vld [vmem:[#allocation79_spill] sm:$0xff] }
  0xbe   : > { %6094 = vst [vmem:[#allocation99_spill] sm:$0xff] %v3560_v32  ;;  %v2043_v27 = vpop.eup %2042  ;;  %2070 = vrcp.f32 %v3388_v1  ;;  %v6103_v20 = vld [vmem:[#allocation111_spill] sm:$0xff]  ;;  %v3589_v24 = vadd.f32 1.0, %v3515_v12  ;;  %v6107_v1 = vld [vmem:[#allocation112_spill] sm:$0xff] }
  0xbf   : > { %v3553_v0 = vmul.f32 %v3412_v30, %v6092_v38  ;;  %v3566_v61 = vmul.f32 %v3423_v17, %v6097_v51  ;;  %v3570_v30 = vmul.f32 %v716_v2, %v3469_v13  ;;  %v2045_v44 = vpop.eup %2044  ;;  %v6101_v38 = vsub.f32 %v6099_v37, %v6100_v26  ;;  %v6102_v51 = vld [vmem:[#allocation86_spill] sm:$0xff]  ;;  %v6106_v26 = vld [vmem:[#allocation87_spill] sm:$0xff] }
  0xc0   : > { %v742_v17 = vmul.f32 -0.5, %v3528_v45  ;;  %v2047_v6 = vpop.eup %2046  ;;  %v6104_v63 = vsub.f32 %v6102_v51, %v6103_v20  ;;  %2072 = vrcp.f32 %v3393_v60  ;;  %6105 = vst [vmem:[#allocation100_spill] sm:$0xff] %v3589_v24  ;;  %v6109_v20 = vld [vmem:[#allocation88_spill] sm:$0xff]  ;;  %v6110_v60 = vld [vmem:[#allocation113_spill] sm:$0xff] }
  0xc1   : > { %6098 = vst [vmem:[#allocation71_spill] sm:$0xff] %v3570_v30  ;;  %v3576_v9 = vmul.f32 %v3434_v52, %v6101_v38  ;;  %v734_v52 = vadd.f32 1.0, %v733_v21  ;;  %v2049_v37 = vpop.eup %2048  ;;  %v6108_v38 = vsub.f32 %v6106_v26, %v6107_v1  ;;  %2074 = vrcp.f32 %v3396_v39  ;;  %v6112_v21 = vld [vmem:[#allocation92_spill] sm:$0xff]  ;;  %v6113_v24 = vld [vmem:[#allocation117_spill] sm:$0xff] }
  0xc2   : > { %v3585_v2 = vmul.f32 %v3445_v42, %v6104_v63  ;;  %v751_v42 = vmul.f32 -0.5, %v3534_v10  ;;  %v2051_v63 = vpop.eup %2050  ;;  %v6111_v30 = vsub.f32 %v6109_v20, %v6110_v60  ;;  %v6114_v32 = vsub.f32 %v6112_v21, %v6113_v24  ;;  %v6116_v1 = vld [vmem:[#allocation93_spill] sm:$0xff] }
  0xc3   : > { %v3595_v15 = vmul.f32 %v3458_v35, %v6108_v38  ;;  %2076 = vrcp.f32 %v3399_v19  ;;  %v3613_v39 = vmul.f32 %v725_v46, %v3506_v33  ;;  %v2053_v35 = vpop.eup %2052  ;;  %v6117_v38 = vld [vmem:[#allocation118_spill] sm:$0xff]  ;;  %v3631_v46 = vmul.f32 %v734_v52, %v3515_v12  ;;  %v6126_v52 = vld [vmem:[#allocation97_spill] sm:$0xff] }
  0xc4   : > { %v3604_v13 = vmul.f32 %v3471_v11, %v6111_v30  ;;  %v3609_v26 = vmul.f32 %v2027_v58, %v6114_v32  ;;  %v6118_v51 = vsub.f32 %v6116_v1, %v6117_v38  ;;  %2078 = vrcp.f32 %v3404_v59  ;;  %v2055_v24 = vpop.eup %2054  ;;  %v6119_v58 = vld [vmem:[#allocation94_spill] sm:$0xff]  ;;  %v6120_v32 = vld [vmem:[#allocation119_spill] sm:$0xff]  ;;  %v6123_v1 = vld [vmem:[#allocation96_spill] sm:$0xff] }
  0xc5   : > { %6115 = vst [vmem:[#allocation72_spill] sm:$0xff] %v3613_v39  ;;  %v3622_v11 = vadd.f32 1.0, %v3528_v45  ;;  %v743_v30 = vadd.f32 1.0, %v742_v17  ;;  %v6121_v20 = vsub.f32 %v6119_v58, %v6120_v32  ;;  %2080 = vrcp.f32 %v3407_v43  ;;  %6122 = vst [vmem:[#allocation101_spill] sm:$0xff] %v3631_v46  ;;  %v6127_v58 = vld [vmem:[#allocation124_spill] sm:$0xff]  ;;  %v6130_v46 = vld [vmem:[#allocation125_spill] sm:$0xff] }
  0xc6   : > { %v3618_v31 = vmul.f32 %v2029_v22, %v6118_v51  ;;  %v2057_v51 = vpop.eup %2056  ;;  %2082 = vrcp.f32 %v3410_v4  ;;  %v3636_v59 = vadd.f32 1.0, %v3534_v10  ;;  %v752_v17 = vadd.f32 1.0, %v751_v42  ;;  %v6129_v42 = vld [vmem:[#allocation98_spill] sm:$0xff] }
  0xc7   : > { %v3627_v19 = vmul.f32 %v2031_v41, %v6121_v20  ;;  %v760_v60 = vmul.f32 -0.5, %v3544_v29  ;;  %v2059_v21 = vpop.eup %2058  ;;  %v6124_v41 = vld [vmem:[#allocation123_spill] sm:$0xff]  ;;  %v6128_v32 = vsub.f32 %v6126_v52, %v6127_v58  ;;  %2084 = vrcp.f32 %v3415_v54 }
  0xc8   : > { %v6125_v38 = vsub.f32 %v6123_v1, %v6124_v41  ;;  %v769_v4 = vmul.f32 -0.5, %v3553_v0  ;;  %v2061_v22 = vpop.eup %2060  ;;  %v6131_v39 = vsub.f32 %v6129_v42, %v6130_v46  ;;  %2086 = vrcp.f32 %v3418_v57  ;;  %v6135_v58 = vld [vmem:[#allocation103_spill] sm:$0xff]  ;;  %v6159_v1 = vld [vmem:[#allocation202_spill] sm:$0xff] }
  0xc9   : > { %v3648_v20 = vmul.f32 %v2035_v5, %v6128_v32  ;;  %v2063_v41 = vpop.eup %2062  ;;  %v6132_v5 = vld [vmem:[#allocation102_spill] sm:$0xff]  ;;  %v6136_v32 = vsub.f32 %v6135_v58, %v2982_v14  ;;  %2088 = vrcp.f32 %v3421_v56  ;;  %v3674_v57 = vadd.f32 1.0, %v3544_v29  ;;  %v6142_v58 = vld [vmem:[#allocation109_spill] sm:$0xff] }
  0xca   : > { %v3643_v43 = vmul.f32 %v3509_v55, %v6125_v38  ;;  %v3655_v12 = vmul.f32 %v2037_v18, %v6131_v39  ;;  %v3659_v55 = vmul.f32 %v743_v30, %v3528_v45  ;;  %v6133_v38 = vld [vmem:[#allocation129_spill] sm:$0xff]  ;;  %v2065_v18 = vpop.eup %2064  ;;  %v6137_v39 = vld [vmem:[#allocation104_spill] sm:$0xff]  ;;  %2090 = vrcp.f32 %v3426_v25 }
  0xcb   : > { %v6134_v52 = vsub.f32 %v6132_v5, %v6133_v38  ;;  %v3670_v33 = vmul.f32 %v2041_v40, %v6136_v32  ;;  %v6138_v30 = vsub.f32 %v6137_v39, %v2985_v8  ;;  %v761_v42 = vadd.f32 1.0, %v760_v60  ;;  %v2067_v14 = vpop.eup %2066  ;;  %v6144_v60 = vld [vmem:[#allocation200_spill] sm:$0xff] }
  0xcc   : > { %2092 = vrcp.f32 %v3429_v53  ;;  %v770_v40 = vadd.f32 1.0, %v769_v4  ;;  %v778_v5 = vmul.f32 -0.5, %v3566_v61  ;;  %v2069_v38 = vpop.eup %2068  ;;  %v6143_v25 = vsub.f32 %v6142_v58, %v3006_v50  ;;  %v6145_v4 = vld [vmem:[#allocation110_spill] sm:$0xff]  ;;  %v6146_v39 = vld [vmem:[#allocation132_spill] sm:$0xff] }
  0xcd   : > { %v3665_v54 = vmul.f32 %v2039_v3, %v6134_v52  ;;  %v3679_v46 = vmul.f32 %v2043_v27, %v6138_v30  ;;  %v3683_v3 = vmul.f32 %v752_v17, %v3534_v10  ;;  %v6140_v52 = vld [vmem:[#allocation108_spill] sm:$0xff]  ;;  %2094 = vrcp.f32 %v6144_v60  ;;  %v2071_v32 = vpop.eup %2070 }
  0xce   : > { %v6141_v8 = vsub.f32 %v6140_v52, %v3003_v49  ;;  %v3696_v17 = vmul.f32 %v2047_v6, %v6143_v25  ;;  %v3700_v53 = vadd.f32 1.0, %v3553_v0  ;;  %v6147_v30 = vsub.f32 %v6145_v4, %v6146_v39  ;;  %v2073_v50 = vpop.eup %2072  ;;  %v6149_v6 = vld [vmem:[#allocation114_spill] sm:$0xff]  ;;  %v6150_v52 = vld [vmem:[#allocation135_spill] sm:$0xff]  ;;  %v6153_v25 = vld [vmem:[#allocation201_spill] sm:$0xff] }
  0xcf   : > { %6139 = vst [vmem:[#allocation77_spill] sm:$0xff] %v3683_v3  ;;  %2096 = vrcp.f32 %v3437_v23  ;;  %v3717_v60 = vmul.f32 %v761_v42, %v3544_v29  ;;  %v2075_v4 = vpop.eup %2074  ;;  %v6155_v23 = vld [vmem:[#allocation115_spill] sm:$0xff]  ;;  %v6156_v39 = vld [vmem:[#allocation136_spill] sm:$0xff] }
  0xd0   : > { %v3691_v27 = vmul.f32 %v2045_v44, %v6141_v8  ;;  %v3705_v56 = vmul.f32 %v2049_v37, %v6147_v30  ;;  %v787_v44 = vmul.f32 -0.5, %v3576_v9  ;;  %v6151_v8 = vsub.f32 %v6149_v6, %v6150_v52  ;;  %v2077_v52 = vpop.eup %2076 }
  0xd1   : > { %2098 = vrcp.f32 %v6153_v25  ;;  %6154 = vst [vmem:[#allocation106_spill] sm:$0xff] %v3717_v60  ;;  %v3720_v37 = vadd.f32 1.0, %v3566_v61  ;;  %v6157_v30 = vsub.f32 %v6155_v23, %v6156_v39  ;;  %v3729_v6 = vmul.f32 %v770_v40, %v3553_v0  ;;  %v6162_v25 = vld [vmem:[#allocation137_spill] sm:$0xff]  ;;  %v6165_v60 = vld [vmem:[#allocation203_spill] sm:$0xff]  ;;  %v6166_v39 = vld [vmem:[#allocation120_spill] sm:$0xff] }
  0xd2   : > { %6148 = vst [vmem:[#allocation105_spill] sm:$0xff] %v3705_v56  ;;  %v3713_v58 = vmul.f32 %v2051_v63, %v6151_v8  ;;  %2100 = vrcp.f32 %v6159_v1  ;;  %v779_v63 = vadd.f32 1.0, %v778_v5  ;;  %v6161_v8 = vld [vmem:[#allocation116_spill] sm:$0xff]  ;;  %v796_v23 = vmul.f32 -0.5, %v3585_v2 }
  0xd3   : > { %v3725_v49 = vmul.f32 %v2053_v35, %v6157_v30  ;;  %6160 = vst [vmem:[#allocation107_spill] sm:$0xff] %v3729_v6  ;;  %v6163_v42 = vsub.f32 %v6161_v8, %v6162_v25  ;;  %2102 = vrcp.f32 %v6165_v60  ;;  %v2079_v35 = vpop.eup %2078  ;;  %v6167_v30 = vld [vmem:[#allocation141_spill] sm:$0xff]  ;;  %v3746_v40 = vadd.f32 1.0, %v3576_v9  ;;  %v6171_v25 = vld [vmem:[#allocation142_spill] sm:$0xff] }
  0xd4   : > { %6152 = vst [vmem:[#allocation78_spill] sm:$0xff] %v3713_v58  ;;  %v6168_v1 = vsub.f32 %v6166_v39, %v6167_v30  ;;  %2104 = vrcp.f32 %v3451_v62  ;;  %v788_v5 = vadd.f32 1.0, %v787_v44  ;;  %v6170_v8 = vld [vmem:[#allocation121_spill] sm:$0xff]  ;;  %v805_v39 = vmul.f32 -0.5, %v3595_v15  ;;  %v6174_v30 = vld [vmem:[#allocation122_spill] sm:$0xff] }
  0xd5   : > { %6158 = vst [vmem:[#allocation79_spill] sm:$0xff] %v3725_v49  ;;  %v3734_v58 = vmul.f32 %v2055_v24, %v6163_v42  ;;  %v2081_v24 = vpop.eup %2080  ;;  %v6172_v60 = vsub.f32 %v6170_v8, %v6171_v25  ;;  %2106 = vrcp.f32 %v3461_v48  ;;  %v6179_v44 = vld [vmem:[#allocation146_spill] sm:$0xff]  ;;  %v6182_v8 = vld [vmem:[#allocation127_spill] sm:$0xff] }
  0xd6   : > { %v3742_v49 = vmul.f32 %v2057_v51, %v6168_v1  ;;  %v2083_v51 = vpop.eup %2082  ;;  %v6175_v1 = vld [vmem:[#allocation143_spill] sm:$0xff]  ;;  %2108 = vrcp.f32 %v3464_v47 }
  0xd7   : > { %6164 = vst [vmem:[#allocation86_spill] sm:$0xff] %v3734_v58  ;;  %v3751_v42 = vmul.f32 %v2059_v21, %v6172_v60  ;;  %v6176_v62 = vsub.f32 %v6174_v30, %v6175_v1  ;;  %v6178_v58 = vld [vmem:[#allocation126_spill] sm:$0xff]  ;;  %v3768_v21 = vmul.f32 %v779_v63, %v3566_v61  ;;  %v2085_v48 = vpop.eup %2084  ;;  %v6183_v25 = vld [vmem:[#allocation147_spill] sm:$0xff]  ;;  %2110 = vrcp.f32 %v3474_v7 }
  0xd8   : > { %6169 = vst [vmem:[#allocation111_spill] sm:$0xff] %v3742_v49  ;;  %v6180_v6 = vsub.f32 %v6178_v58, %v6179_v44  ;;  %v6184_v60 = vsub.f32 %v6182_v8, %v6183_v25  ;;  %v797_v30 = vadd.f32 1.0, %v796_v23  ;;  %v2087_v58 = vpop.eup %2086  ;;  %2112 = vrcp.f32 %v3477_v36  ;;  %v6190_v25 = vld [vmem:[#allocation130_spill] sm:$0xff]  ;;  %v6194_v36 = vld [vmem:[#allocation131_spill] sm:$0xff] }
  0xd9   : > { %6173 = vst [vmem:[#allocation87_spill] sm:$0xff] %v3751_v42  ;;  %v3759_v49 = vmul.f32 %v2061_v22, %v6176_v62  ;;  %v3777_v22 = vadd.f32 1.0, %v3585_v2  ;;  %v3786_v63 = vmul.f32 %v788_v5, %v3576_v9  ;;  %v2089_v62 = vpop.eup %2088  ;;  %2114 = vrcp.f32 %v3481_v16  ;;  %v6195_v5 = vld [vmem:[#allocation152_spill] sm:$0xff]  ;;  %v6230_v42 = vld [vmem:[#allocation65_spill] sm:$0xff] }
  0xda   : > { %v3764_v3 = vmul.f32 %v2063_v41, %v6180_v6  ;;  %v3773_v56 = vmul.f32 %v2065_v18, %v6184_v60  ;;  %v6186_v41 = vld [vmem:[#allocation128_spill] sm:$0xff]  ;;  %v3791_v7 = vadd.f32 1.0, %v3595_v15  ;;  %v806_v23 = vadd.f32 1.0, %v805_v39  ;;  %v2091_v8 = vpop.eup %2090  ;;  %v6199_v39 = vld [vmem:[#allocation155_spill] sm:$0xff] }
  0xdb   : > { %6177 = vst [vmem:[#allocation112_spill] sm:$0xff] %v3759_v49  ;;  %v6187_v6 = vld [vmem:[#allocation148_spill] sm:$0xff]  ;;  %v814_v44 = vmul.f32 -0.5, %v3604_v13  ;;  %2116 = vrcp.f32 %v3484_v28  ;;  %v823_v16 = vmul.f32 -0.5, %v3609_v26  ;;  %v2093_v18 = vpop.eup %2092 }
  0xdc   : > { %6181 = vst [vmem:[#allocation88_spill] sm:$0xff] %v3764_v3  ;;  %6185 = vst [vmem:[#allocation113_spill] sm:$0xff] %v3773_v56  ;;  %v6188_v1 = vsub.f32 %v6186_v41, %v6187_v6  ;;  %v6196_v6 = vsub.f32 %v6194_v36, %v6195_v5  ;;  %2118 = vrcp.f32 %v3488_v34  ;;  %v6206_v5 = vld [vmem:[#allocation138_spill] sm:$0xff]  ;;  %v3828_v34 = vadd.f32 1.0, %v3604_v13 }
  0xde   : > { %v3782_v47 = vmul.f32 %v2067_v14, %v6188_v1  ;;  %v6191_v14 = vld [vmem:[#allocation151_spill] sm:$0xff]  ;;  %v3802_v1 = vmul.f32 %v2071_v32, %v6196_v6  ;;  %v6202_v32 = vld [vmem:[#allocation134_spill] sm:$0xff]  ;;  %v6207_v6 = vld [vmem:[#allocation160_spill] sm:$0xff] }
  0xdf   : > { %v6192_v60 = vsub.f32 %v6190_v25, %v6191_v14  ;;  %v2095_v14 = vpop.eup %2094 }
  0xe0   : > { %6189 = vst [vmem:[#allocation92_spill] sm:$0xff] %v3782_v47  ;;  %6197 = vst [vmem:[#allocation93_spill] sm:$0xff] %v3802_v1  ;;  %v6198_v47 = vld [vmem:[#allocation133_spill] sm:$0xff]  ;;  %v6208_v1 = vsub.f32 %v6206_v5, %v6207_v6  ;;  %v832_v5 = vmul.f32 -0.5, %v3618_v31 }
  0xe1   : > { %v3797_v41 = vmul.f32 %v2069_v38, %v6192_v60  ;;  %v6200_v56 = vsub.f32 %v6198_v47, %v6199_v39  ;;  %v3813_v38 = vmul.f32 %v797_v30, %v3585_v2  ;;  %v6203_v60 = vld [vmem:[#allocation156_spill] sm:$0xff]  ;;  %v6211_v30 = vld [vmem:[#allocation139_spill] sm:$0xff]  ;;  %v6212_v47 = vld [vmem:[#allocation161_spill] sm:$0xff] }
  0xe2   : > { %v6204_v36 = vsub.f32 %v6202_v32, %v6203_v60  ;;  %v6213_v39 = vsub.f32 %v6211_v30, %v6212_v47  ;;  %v815_v32 = vadd.f32 1.0, %v814_v44  ;;  %v6221_v47 = vld [vmem:[#allocation144_spill] sm:$0xff]  ;;  %v6225_v44 = vld [vmem:[#allocation205_spill] sm:$0xff] }
  0xe3   : > { %6193 = vst [vmem:[#allocation117_spill] sm:$0xff] %v3797_v41  ;;  %v3809_v3 = vmul.f32 %v2073_v50, %v6200_v56  ;;  %v3824_v41 = vmul.f32 %v2077_v52, %v6208_v1  ;;  %v6210_v56 = vld [vmem:[#allocation59_spill] sm:$0xff]  ;;  %v2097_v50 = vpop.eup %2096  ;;  %v6216_v52 = vld [vmem:[#allocation204_spill] sm:$0xff] }
  0xe4   : > { %v3819_v28 = vmul.f32 %v2075_v4, %v6204_v36  ;;  %2120 = vrcp.f32 %v6210_v56  ;;  %v3833_v25 = vmul.f32 %v2079_v35, %v6213_v39  ;;  %v3837_v4 = vmul.f32 %v806_v23, %v3595_v15  ;;  %v2099_v60 = vpop.eup %2098  ;;  %v6217_v56 = vld [vmem:[#allocation140_spill] sm:$0xff] }
  0xe5   : > { %6201 = vst [vmem:[#allocation118_spill] sm:$0xff] %v3809_v3  ;;  %6209 = vst [vmem:[#allocation119_spill] sm:$0xff] %v3824_v41  ;;  %v6215_v3 = vld [vmem:[#allocation81_spill] sm:$0xff]  ;;  %v824_v36 = vadd.f32 1.0, %v823_v16  ;;  %v2101_v6 = vpop.eup %2100  ;;  %v6218_v41 = vld [vmem:[#allocation162_spill] sm:$0xff] }
  0xe6   : > { %6205 = vst [vmem:[#allocation94_spill] sm:$0xff] %v3819_v28  ;;  %6214 = vst [vmem:[#allocation96_spill] sm:$0xff] %v3833_v25  ;;  %2122 = vrcp.f32 %v6215_v3  ;;  %v6219_v30 = vsub.f32 %v6217_v56, %v6218_v41  ;;  %v6222_v3 = vld [vmem:[#allocation165_spill] sm:$0xff]  ;;  %v2103_v1 = vpop.eup %2102  ;;  %v6227_v25 = vld [vmem:[#allocation166_spill] sm:$0xff]  ;;  %v841_v41 = vmul.f32 -0.5, %v3627_v19 }
  0xe7   : > { %2124 = vrcp.f32 %v6216_v52  ;;  %v6223_v39 = vsub.f32 %v6221_v47, %v6222_v3  ;;  %v3854_v52 = vadd.f32 1.0, %v3609_v26  ;;  %v6226_v16 = vld [vmem:[#allocation145_spill] sm:$0xff]  ;;  %v2105_v56 = vpop.eup %2104 }
  0xe8   : > { %v3845_v35 = vmul.f32 %v2081_v24, %v6219_v30  ;;  %2126 = vrcp.f32 %v6225_v44  ;;  %v6228_v28 = vsub.f32 %v6226_v16, %v6227_v25  ;;  %v6232_v30 = vld [vmem:[#allocation169_spill] sm:$0xff]  ;;  %v3871_v44 = vmul.f32 %v815_v32, %v3604_v13  ;;  %v2107_v25 = vpop.eup %2106 }
  0xe9   : > { %v3850_v23 = vmul.f32 %v2083_v51, %v6223_v39  ;;  %2128 = vlog2.f32 %v6230_v42  ;;  %v6231_v51 = vld [vmem:[#allocation149_spill] sm:$0xff]  ;;  %v6235_v39 = vld [vmem:[#allocation95_spill] sm:$0xff]  ;;  %v6237_v42 = vld [vmem:[#allocation150_spill] sm:$0xff] }
  0xea   : > { %6220 = vst [vmem:[#allocation123_spill] sm:$0xff] %v3845_v35  ;;  %v3859_v49 = vmul.f32 %v2085_v48, %v6228_v28  ;;  %v6233_v47 = vsub.f32 %v6231_v51, %v6232_v30  ;;  %2130 = vlog2.f32 %v6235_v39  ;;  %6236 = vst [vmem:[#allocation125_spill] sm:$0xff] %v3871_v44  ;;  %v3874_v48 = vadd.f32 1.0, %v3618_v31  ;;  %v6238_v28 = vld [vmem:[#allocation170_spill] sm:$0xff]  ;;  %v2109_v30 = vpop.eup %2108  ;;  %v6244_v39 = vld [vmem:[#allocation173_spill] sm:$0xff] }
  0xeb   : > { %6224 = vst [vmem:[#allocation97_spill] sm:$0xff] %v3850_v23  ;;  %v6239_v16 = vsub.f32 %v6237_v42, %v6238_v28  ;;  %v3883_v51 = vmul.f32 %v824_v36, %v3609_v26  ;;  %v6247_v23 = vld [vmem:[#allocation100_spill] sm:$0xff]  ;;  %v850_v42 = vmul.f32 -0.5, %v3643_v43  ;;  %v6248_v28 = vld [vmem:[#allocation154_spill] sm:$0xff]  ;;  %v3900_v36 = vadd.f32 1.0, %v3627_v19 }
  0xec   : > { %6229 = vst [vmem:[#allocation124_spill] sm:$0xff] %v3859_v49  ;;  %v3867_v3 = vmul.f32 %v2087_v58, %v6233_v47  ;;  %v6241_v49 = vld [vmem:[#allocation99_spill] sm:$0xff]  ;;  %v833_v58 = vadd.f32 1.0, %v832_v5  ;;  %v6243_v47 = vld [vmem:[#allocation153_spill] sm:$0xff]  ;;  %v842_v5 = vadd.f32 1.0, %v841_v41  ;;  %v6261_v41 = vld [vmem:[#allocation180_spill] sm:$0xff] }
  0xed   : > { %v3879_v24 = vmul.f32 %v2089_v62, %v6239_v16  ;;  %2132 = vlog2.f32 %v6241_v49  ;;  %6242 = vst [vmem:[#allocation129_spill] sm:$0xff] %v3883_v51  ;;  %v6245_v32 = vsub.f32 %v6243_v47, %v6244_v39  ;;  %v2111_v62 = vpop.eup %2110  ;;  %v6249_v16 = vld [vmem:[#allocation174_spill] sm:$0xff]  ;;  %v6252_v47 = vld [vmem:[#allocation157_spill] sm:$0xff] }
  0xee   : > { %6234 = vst [vmem:[#allocation98_spill] sm:$0xff] %v3867_v3  ;;  %2134 = vlog2.f32 %v6247_v23  ;;  %v6250_v49 = vsub.f32 %v6248_v28, %v6249_v16  ;;  %v6253_v39 = vld [vmem:[#allocation178_spill] sm:$0xff]  ;;  %v859_v28 = vmul.f32 -0.5, %v3648_v20 }
  0xef   : > { %6240 = vst [vmem:[#allocation102_spill] sm:$0xff] %v3879_v24  ;;  %v3888_v3 = vmul.f32 %v2091_v8, %v6245_v32  ;;  %2136 = vlog2.f32 %v3622_v11  ;;  %v2113_v8 = vpop.eup %2112  ;;  %v6254_v23 = vsub.f32 %v6252_v47, %v6253_v39  ;;  %v6256_v16 = vld [vmem:[#allocation158_spill] sm:$0xff]  ;;  %v6264_v47 = vld [vmem:[#allocation163_spill] sm:$0xff] }
  0xf0   : > { %v3896_v24 = vmul.f32 %v2093_v18, %v6250_v49  ;;  %2138 = vlog2.f32 %v3636_v59  ;;  %v2115_v18 = vpop.eup %2114  ;;  %v6257_v49 = vld [vmem:[#allocation179_spill] sm:$0xff] }
  0xf1   : > { %6246 = vst [vmem:[#allocation103_spill] sm:$0xff] %v3888_v3  ;;  %v3905_v32 = vmul.f32 %v2095_v14, %v6254_v23  ;;  %v6258_v11 = vsub.f32 %v6256_v16, %v6257_v49  ;;  %v6260_v3 = vld [vmem:[#allocation159_spill] sm:$0xff]  ;;  %2140 = vlog2.f32 %v3674_v57  ;;  %v3922_v14 = vmul.f32 %v833_v58, %v3618_v31  ;;  %v2117_v59 = vpop.eup %2116 }
  0xf2   : > { %6251 = vst [vmem:[#allocation104_spill] sm:$0xff] %v3896_v24  ;;  %v6262_v51 = vsub.f32 %v6260_v3, %v6261_v41  ;;  %v6265_v39 = vld [vmem:[#allocation183_spill] sm:$0xff]  ;;  %2142 = vlog2.f32 %v3700_v53  ;;  %v851_v16 = vadd.f32 1.0, %v850_v42  ;;  %v2119_v49 = vpop.eup %2118  ;;  %v6268_v3 = vld [vmem:[#allocation164_spill] sm:$0xff]  ;;  %v3938_v57 = vmul.f32 %v842_v5, %v3627_v19 }
  0xf3   : > { %6255 = vst [vmem:[#allocation108_spill] sm:$0xff] %v3905_v32  ;;  %v3913_v24 = vmul.f32 %v2097_v50, %v6258_v11  ;;  %v6266_v23 = vsub.f32 %v6264_v47, %v6265_v39  ;;  %v847_v50 = vadd.f32 1.0, %v3643_v43  ;;  %2144 = vlog2.f32 %v3720_v37  ;;  %v6273_v39 = vld [vmem:[#allocation167_spill] sm:$0xff]  ;;  %v6277_v37 = vld [vmem:[#allocation168_spill] sm:$0xff] }
  0xf4   : > { %v3918_v44 = vmul.f32 %v2099_v60, %v6262_v51  ;;  %v6269_v60 = vld [vmem:[#allocation184_spill] sm:$0xff]  ;;  %6272 = vst [vmem:[#allocation114_spill] sm:$0xff] %v3938_v57  ;;  %v868_v58 = vmul.f32 -0.5, %v3655_v12  ;;  %2146 = vlog2.f32 %v3746_v40  ;;  %v856_v42 = vadd.f32 1.0, %v3648_v20  ;;  %v6325_v57 = vld [vmem:[#allocation197_spill] sm:$0xff] }
  0xf5   : > { %6259 = vst [vmem:[#allocation109_spill] sm:$0xff] %v3913_v24  ;;  %v3927_v35 = vmul.f32 %v2101_v6, %v6266_v23  ;;  %v6270_v51 = vsub.f32 %v6268_v3, %v6269_v60  ;;  %v2121_v6 = vpop.eup %2120  ;;  %v860_v41 = vadd.f32 1.0, %v859_v28  ;;  %v6274_v23 = vld [vmem:[#allocation186_spill] sm:$0xff]  ;;  %v6278_v60 = vld [vmem:[#allocation187_spill] sm:$0xff]  ;;  %2148 = vlog2.f32 %v3777_v22 }
  0xf6   : > { %6263 = vst [vmem:[#allocation200_spill] sm:$0xff] %v3918_v44  ;;  %v2123_v47 = vpop.eup %2122  ;;  %v6279_v5 = vsub.f32 %v6277_v37, %v6278_v60  ;;  %v877_v28 = vmul.f32 -0.5, %v3665_v54  ;;  %v6285_v44 = vld [vmem:[#allocation171_spill] sm:$0xff]  ;;  %2150 = vlog2.f32 %v3791_v7  ;;  %v6291_v37 = vld [vmem:[#allocation190_spill] sm:$0xff]  ;;  %v865_v7 = vadd.f32 1.0, %v3655_v12 }
  0xf7   : > { %6267 = vst [vmem:[#allocation110_spill] sm:$0xff] %v3927_v35  ;;  %v3934_v11 = vmul.f32 %v2103_v1, %v6270_v51  ;;  %v6275_v1 = vsub.f32 %v6273_v39, %v6274_v23  ;;  %v2125_v53 = vpop.eup %2124  ;;  %v6286_v39 = vld [vmem:[#allocation189_spill] sm:$0xff]  ;;  %2152 = vlog2.f32 %v3828_v34  ;;  %v6321_v24 = vld [vmem:[#allocation182_spill] sm:$0xff] }
  0xf8   : > { %v3952_v51 = vmul.f32 %v2107_v25, %v6279_v5  ;;  %v3969_v25 = vmul.f32 %v851_v16, %v3643_v43  ;;  %v6294_v5 = vld [vmem:[#allocation80_spill] sm:$0xff]  ;;  %v6298_v16 = vld [vmem:[#allocation175_spill] sm:$0xff]  ;;  %v6310_v34 = vld [vmem:[#allocation89_spill] sm:$0xff]  ;;  %2154 = vlog2.f32 %v3854_v52 }
  0xf9   : > { %6271 = vst [vmem:[#allocation132_spill] sm:$0xff] %v3934_v11  ;;  %v3947_v3 = vmul.f32 %v2105_v56, %v6275_v1  ;;  %v6281_v11 = vld [vmem:[#allocation58_spill] sm:$0xff]  ;;  %v6287_v56 = vsub.f32 %v6285_v44, %v6286_v39  ;;  %v6290_v1 = vld [vmem:[#allocation172_spill] sm:$0xff]  ;;  %v869_v44 = vadd.f32 1.0, %v868_v58  ;;  %v6299_v39 = vld [vmem:[#allocation191_spill] sm:$0xff]  ;;  %2156 = vlog2.f32 %v3874_v48 }
  0xfa   : > { %6280 = vst [vmem:[#allocation201_spill] sm:$0xff] %v3952_v51  ;;  %v6282_v35 = vand.u32 2147483647, %v6281_v11  ;;  %6289 = vst [vmem:[#allocation136_spill] sm:$0xff] %v3969_v25  ;;  %v2127_v11 = vpop.eup %2126  ;;  %v6292_v60 = vsub.f32 %v6290_v1, %v6291_v37  ;;  %v6295_v51 = vand.u32 2147483647, %v6294_v5  ;;  %2158 = vlog2.f32 %v3900_v36 }
  0xfb   : > { %6276 = vst [vmem:[#allocation135_spill] sm:$0xff] %v3947_v3  ;;  %v3965_v23 = vmul.f32 %v2109_v30, %v6287_v56  ;;  %v2129_v30 = vpop.eup %2128  ;;  %v6300_v56 = vsub.f32 %v6298_v16, %v6299_v39  ;;  %v6302_v1 = vld [vmem:[#allocation176_spill] sm:$0xff]  ;;  %v6324_v25 = vld [vmem:[#allocation185_spill] sm:$0xff]  ;;  %v6330_v48 = vand.u32 2147483647, %v3534_v10  ;;  %2160 = vlog2.f32 %v847_v50 }
  0xfc   : > { %vm3956_vm0 = vcmp.lt.f32.partialorder %v6282_v35, 0.0004427343  ;;  %v3975_v22 = vmul.f32 %v2111_v62, %v6292_v60  ;;  %vm3979_vm1 = vcmp.lt.f32.partialorder %v6295_v51, 0.0004427343  ;;  %v6303_v62 = vld [vmem:[#allocation192_spill] sm:$0xff]  ;;  %v2131_v39 = vpop.eup %2130  ;;  %2162 = vlog2.f32 %v856_v42 }
  0xfd   : > { %6288 = vst [vmem:[#allocation115_spill] sm:$0xff] %v3965_v23  ;;  %v3988_v35 = vmul.f32 %v2113_v8, %v6300_v56  ;;  %v6304_v37 = vsub.f32 %v6302_v1, %v6303_v62  ;;  %v6306_v51 = vld [vmem:[#allocation64_spill] sm:$0xff]  ;;  %v6311_v23 = vand.u32 2147483647, %v6310_v34  ;;  %v4008_v8 = vmul.f32 %v860_v41, %v3648_v20  ;;  %v2133_v62 = vpop.eup %2132  ;;  %v6318_v34 = vld [vmem:[#allocation181_spill] sm:$0xff] }
  0xfe   : > { %6293 = vst [vmem:[#allocation202_spill] sm:$0xff] %v3975_v22  ;;  %v6307_v5 = vand.u32 2147483647, %v6306_v51  ;;  %v878_v56 = vadd.f32 1.0, %v877_v28  ;;  %v886_v1 = vmul.f32 -0.5, %v3670_v33  ;;  %v6316_v51 = vld [vmem:[#allocation193_spill] sm:$0xff]  ;;  %v2135_v16 = vpop.eup %2134  ;;  %2164 = vlog2.f32 %v865_v7 }
  0xff   : > { %6301 = vst [vmem:[#allocation116_spill] sm:$0xff] %v3988_v35  ;;  %v3993_v60 = vmul.f32 %v2115_v18, %v6304_v37  ;;  %vm4003_vm3 = vcmp.lt.f32.partialorder %v6311_v23, 0.0004427343  ;;  %6314 = vst [vmem:[#allocation203_spill] sm:$0xff] %v4008_v8  ;;  %v874_v18 = vadd.f32 1.0, %v3665_v54  ;;  %v6315_v37 = vld [vmem:[#allocation177_spill] sm:$0xff] }
 0x100   : > { %vm3997_vm2 = vcmp.lt.f32.partialorder %v6307_v5, 0.0004427343  ;;  %v6317_v23 = vsub.f32 %v6315_v37, %v6316_v51  ;;  %v6322_v28 = vld [vmem:[#allocation196_spill] sm:$0xff]  ;;  %v6326_v37 = vsub.f32 %v6324_v25, %v6325_v57  ;;  %v6327_v51 = vand.u32 2147483647, %v3528_v45 }
 0x101   : > { %6305 = vst [vmem:[#allocation137_spill] sm:$0xff] %v3993_v60  ;;  %v6319_v60 = vld [vmem:[#allocation195_spill] sm:$0xff]  ;;  %v6323_v32 = vsub.f32 %v6321_v24, %v6322_v28  ;;  %vm4044_vm5 = vcmp.lt.f32.partialorder %v6330_v48, 0.0004427343  ;;  %v4050_v24 = vmul.f32 %v869_v44, %v3655_v12  ;;  %v6333_v57 = vld [vmem:[#allocation188_spill] sm:$0xff]  ;;  %v4083_v50 = vmul.f32 %v878_v56, %v3665_v54  ;;  %v6348_v48 = vld [vmem:[#allocation194_spill] sm:$0xff] }
 0x102   : > { %v4017_v5 = vmul.f32 %v2117_v59, %v6317_v23  ;;  %v6320_v41 = vsub.f32 %v6318_v34, %v6319_v60  ;;  %v4034_v59 = vmul.f32 %v2123_v47, %v6326_v37  ;;  %vm4038_vm4 = vcmp.lt.f32.partialorder %v6327_v51, 0.0004427343 }
 0x103   : > { %v4029_v8 = vmul.f32 %v2121_v6, %v6323_v32  ;;  %v2137_v32 = vpop.eup %2136  ;;  %v6334_v6 = vld [vmem:[#allocation198_spill] sm:$0xff]  ;;  %v705_v25 = vmul.f32 0.6931472, %v2129_v30  ;;  %v6336_v23 = vand.u32 2147483647, %v3544_v29  ;;  %v883_v34 = vadd.f32 1.0, %v3670_v33 }
 0x104   : > { %v4022_v35 = vmul.f32 %v2119_v49, %v6320_v41  ;;  %v6335_v47 = vsub.f32 %v6333_v57, %v6334_v6  ;;  %v2139_v36 = vpop.eup %2138  ;;  %v6339_v44 = vand.u32 2147483647, %v3553_v0  ;;  %v6345_v29 = vand.u32 2147483647, %v3576_v9 }
 0x105   : > { %vm4059_vm6 = vcmp.lt.f32.partialorder %v6336_v23, 0.0004427343  ;;  %v887_v0 = vadd.f32 1.0, %v886_v1  ;;  %v895_v37 = vmul.f32 -0.5, %v3679_v46  ;;  %v2141_v51 = vpop.eup %2140  ;;  %v6351_v9 = vand.u32 2147483647, %v3585_v2 }
 0x106   : > { %v4055_v45 = vmul.f32 %v2125_v53, %v6335_v47  ;;  %vm4066_vm7 = vcmp.lt.f32.partialorder %v6339_v44, 0.0004427343  ;;  %v6342_v53 = vand.u32 2147483647, %v3566_v61  ;;  %vm4078_vm9 = vcmp.lt.f32.partialorder %v6345_v29, 0.0004427343  ;;  %v2143_v56 = vpop.eup %2142 }
 0x107   : > { %v6349_v61 = vld [vmem:[#allocation199_spill] sm:$0xff]  ;;  %v714_v47 = vmul.f32 0.6931472, %v2131_v39  ;;  %vm4093_vm10 = vcmp.lt.f32.partialorder %v6351_v9, 0.0004427343  ;;  %v892_v42 = vadd.f32 1.0, %v3679_v46  ;;  %2166 = vlog2.f32 %v874_v18  ;;  %v2145_v2 = vpop.eup %2144 }
 0x108   : > { %vm4072_vm8 = vcmp.lt.f32.partialorder %v6342_v53, 0.0004427343  ;;  %v6350_v57 = vsub.f32 %v6348_v48, %v6349_v61  ;;  %v723_v1 = vmul.f32 0.6931472, %v2133_v62  ;;  %v732_v44 = vmul.f32 0.6931472, %v2135_v16  ;;  %v2147_v61 = vpop.eup %2146 }
 0x109   : > { %v6354_v53 = vand.u32 2147483647, %v3595_v15  ;;  %v6357_v39 = vld [vmem:[#allocation70_spill] sm:$0xff]  ;;  %v6359_v7 = vand.u32 2147483647, %v3604_v13  ;;  %v910_v18 = vadd.f32 1.0, %v3696_v17  ;;  %2168 = vlog2.f32 %v883_v34  ;;  %v2149_v9 = vpop.eup %2148 }
 0x10a   : > { %v4089_v6 = vmul.f32 %v2127_v11, %v6350_v57  ;;  %v901_v11 = vadd.f32 1.0, %v3691_v27  ;;  %v4108_v48 = vsel %vm3956_vm0, %v6357_v39, %v705_v25  ;;  %v4120_v57 = vmul.f32 %v887_v0, %v3670_v33  ;;  %v6362_v13 = vld [vmem:[#allocation71_spill] sm:$0xff]  ;;  %v2151_v16 = vpop.eup %2150  ;;  %v6363_v15 = vld [vmem:[#allocation72_spill] sm:$0xff]  ;;  %v6364_v0 = vld [vmem:[#allocation101_spill] sm:$0xff] }
 0x10b   : > { %vm4100_vm11 = vcmp.lt.f32.partialorder %v6354_v53, 0.0004427343  ;;  %6358 = vst [vmem:[#allocation120_spill] sm:$0xff] %v4108_v48  ;;  %vm4112_vm12 = vcmp.lt.f32.partialorder %v6359_v7, 0.0004427343  ;;  %v896_v40 = vadd.f32 1.0, %v895_v37  ;;  %v4126_v53 = vsel %vm3979_vm1, %v6362_v13, %v714_v47  ;;  %v2153_v22 = vpop.eup %2152 }
 0x10c   : > { %v904_v25 = vmul.f32 -0.5, %v3691_v27  ;;  %v741_v39 = vmul.f32 0.6931472, %v2137_v32  ;;  %v750_v7 = vmul.f32 0.6931472, %v2139_v36  ;;  %2170 = vlog2.f32 %v892_v42  ;;  %v6428_v62 = vld [vmem:[#allocation117_spill] sm:$0xff] }
 0x10d   : > { %v4131_v34 = vsel %vm3997_vm2, %v6363_v15, %v723_v1  ;;  %v4136_v37 = vsel %vm4003_vm3, %v6364_v0, %v732_v44  ;;  %v759_v52 = vmul.f32 0.6931472, %v2141_v51  ;;  %v6365_v48 = vand.u32 2147483647, %v3609_v26  ;;  %v6377_v15 = vld [vmem:[#allocation77_spill] sm:$0xff]  ;;  %v6382_v0 = vld [vmem:[#allocation106_spill] sm:$0xff] }
 0x10e   : > { %v6368_v32 = vand.u32 2147483647, %v3618_v31  ;;  %2172 = vlog2.f32 %v901_v11  ;;  %v768_v47 = vmul.f32 0.6931472, %v2143_v56  ;;  %v777_v42 = vmul.f32 0.6931472, %v2145_v2 }
 0x10f   : > { %vm4140_vm13 = vcmp.lt.f32.partialorder %v6365_v48, 0.0004427343  ;;  %v786_v58 = vmul.f32 0.6931472, %v2147_v61  ;;  %v6371_v1 = vand.u32 2147483647, %v3627_v19  ;;  %2174 = vlog2.f32 %v910_v18  ;;  %v2155_v48 = vpop.eup %2154 }
 0x110   : > { %vm4146_vm14 = vcmp.lt.f32.partialorder %v6368_v32, 0.0004427343  ;;  %v795_v26 = vmul.f32 0.6931472, %v2149_v9  ;;  %v6374_v44 = vand.u32 2147483647, %v3643_v43  ;;  %v4163_v11 = vmul.f32 %v896_v40, %v3679_v46  ;;  %v2157_v13 = vpop.eup %2156 }
 0x111   : > { %vm4152_vm15 = vcmp.lt.f32.partialorder %v6371_v1, 0.0004427343  ;;  %v905_v56 = vadd.f32 1.0, %v904_v25  ;;  %v913_v2 = vmul.f32 -0.5, %v3696_v17  ;;  %v4169_v19 = vsel %vm4038_vm4, %v3659_v55, %v741_v39  ;;  %v6381_v25 = vld [vmem:[#allocation105_spill] sm:$0xff]  ;;  %v6386_v32 = vld [vmem:[#allocation107_spill] sm:$0xff] }
 0x112   : > { %vm4158_vm0 = vcmp.lt.f32.partialorder %v6374_v44, 0.0004427343  ;;  %v4174_v43 = vsel %vm4044_vm5, %v6377_v15, %v750_v7  ;;  %v804_v18 = vmul.f32 0.6931472, %v2151_v16  ;;  %v6378_v61 = vand.u32 2147483647, %v3648_v20  ;;  %v2159_v7 = vpop.eup %2158 }
 0x113   : > { %v919_v9 = vadd.f32 1.0, %v6381_v25  ;;  %v4186_v55 = vsel %vm4059_vm6, %v6382_v0, %v759_v52  ;;  %v813_v49 = vmul.f32 0.6931472, %v2153_v22  ;;  %v6383_v60 = vand.u32 2147483647, %v3655_v12  ;;  %v6390_v44 = vld [vmem:[#allocation78_spill] sm:$0xff] }
 0x114   : > { %vm4178_vm1 = vcmp.lt.f32.partialorder %v6378_v61, 0.0004427343  ;;  %v907_v20 = vand.u32 2147483647, %v3691_v27  ;;  %v922_v16 = vmul.f32 -0.5, %v6381_v25  ;;  %v4199_v1 = vsel %vm4066_vm7, %v6386_v32, %v768_v47  ;;  %v2161_v47 = vpop.eup %2160  ;;  %v6391_v0 = vld [vmem:[#allocation125_spill] sm:$0xff] }
 0x115   : > { %vm4190_vm2 = vcmp.lt.f32.partialorder %v6383_v60, 0.0004427343  ;;  %v4204_v52 = vsel %vm4072_vm8, %v3768_v21, %v777_v42  ;;  %v4209_v12 = vsel %vm4078_vm9, %v3786_v63, %v786_v58  ;;  %v6387_v10 = vand.u32 2147483647, %v3665_v54  ;;  %v2163_v42 = vpop.eup %2162 }
 0x116   : > { %v928_v41 = vadd.f32 1.0, %v6390_v44  ;;  %v4221_v30 = vsel %vm4093_vm10, %v3813_v38, %v795_v26  ;;  %v4224_v21 = vmul.f32 %v905_v56, %v3691_v27  ;;  %v914_v28 = vadd.f32 1.0, %v913_v2  ;;  %v2165_v61 = vpop.eup %2164  ;;  %v6392_v26 = vld [vmem:[#allocation79_spill] sm:$0xff] }
 0x117   : > { %vm4213_vm3 = vcmp.lt.f32.partialorder %v6387_v10, 0.0004427343  ;;  %v916_v63 = vand.u32 2147483647, %v3696_v17  ;;  %v4230_v54 = vsel %vm4100_vm11, %v3837_v4, %v804_v18  ;;  %v822_v58 = vmul.f32 0.6931472, %v2155_v48  ;;  %v2167_v2 = vpop.eup %2166 }
 0x118   : > { %v831_v15 = vmul.f32 0.6931472, %v2157_v13  ;;  %2176 = vlog2.f32 %v919_v9  ;;  %v4235_v38 = vsel %vm4112_vm12, %v6391_v0, %v813_v49  ;;  %v840_v27 = vmul.f32 0.6931472, %v2159_v7  ;;  %v6401_v9 = vld [vmem:[#allocation86_spill] sm:$0xff]  ;;  %v2169_v10 = vpop.eup %2168 }
 0x119   : > { %v923_v23 = vadd.f32 1.0, %v922_v16  ;;  %v937_v56 = vadd.f32 1.0, %v6392_v26  ;;  %v849_v60 = vmul.f32 0.6931472, %v2161_v47  ;;  %v6393_v32 = vand.u32 2147483647, %v3670_v33 }
 0x11a   : > { %v6396_v29 = vand.u32 2147483647, %v3679_v46  ;;  %vm4250_vm6 = vcmp.lt.f32.partialorder %v907_v20, 0.0004427343  ;;  %2178 = vlog2.f32 %v928_v41  ;;  %v931_v18 = vmul.f32 -0.5, %v6390_v44  ;;  %v6404_v46 = vld [vmem:[#allocation111_spill] sm:$0xff] }
 0x11b   : > { %vm4240_vm4 = vcmp.lt.f32.partialorder %v6393_v32, 0.0004427343  ;;  %v946_v13 = vadd.f32 1.0, %v6401_v9  ;;  %v858_v33 = vmul.f32 0.6931472, %v2163_v42  ;;  %v915_v49 = vmul.f32 %v914_v28, %v3696_v17  ;;  %v6405_v47 = vld [vmem:[#allocation129_spill] sm:$0xff]  ;;  %v2171_v28 = vpop.eup %2170 }
 0x11c   : > { %vm4246_vm5 = vcmp.lt.f32.partialorder %v6396_v29, 0.0004427343  ;;  %vm4257_vm7 = vcmp.lt.f32.partialorder %v916_v63, 0.0004427343  ;;  %v955_v7 = vadd.f32 1.0, %v6404_v46  ;;  %v4265_v20 = vsel %vm4140_vm13, %v6405_v47, %v822_v58  ;;  %v6406_v63 = vld [vmem:[#allocation114_spill] sm:$0xff]  ;;  %v2173_v58 = vpop.eup %2172 }
 0x11d   : > { %v4270_v41 = vsel %vm4146_vm14, %v3922_v14, %v831_v15  ;;  %v867_v42 = vmul.f32 0.6931472, %v2165_v61  ;;  %v925_v17 = vand.u32 2147483647, %v6381_v25  ;;  %v4276_v0 = vsel %vm4152_vm15, %v6406_v63, %v840_v27  ;;  %v6407_v29 = vld [vmem:[#allocation136_spill] sm:$0xff]  ;;  %v2175_v61 = vpop.eup %2174  ;;  %v6409_v47 = vld [vmem:[#allocation203_spill] sm:$0xff] }
 0x11e   : > { %v876_v32 = vmul.f32 0.6931472, %v2167_v2  ;;  %2180 = vlog2.f32 %v937_v56  ;;  %v940_v3 = vmul.f32 -0.5, %v6392_v26  ;;  %v4282_v36 = vsel %vm4158_vm0, %v6407_v29, %v849_v60  ;;  %v6411_v56 = vld [vmem:[#allocation87_spill] sm:$0xff]  ;;  %v6413_v60 = vld [vmem:[#allocation112_spill] sm:$0xff] }
 0x11f   : > { %6408 = vst [vmem:[#allocation141_spill] sm:$0xff] %v4282_v36  ;;  %v4285_v14 = vmul.f32 %v923_v23, %v6381_v25  ;;  %v932_v15 = vadd.f32 1.0, %v931_v18  ;;  %2182 = vlog2.f32 %v946_v13  ;;  %v4290_v51 = vsel %vm4178_vm1, %v6409_v47, %v858_v33 }
 0x120   : > { %6410 = vst [vmem:[#allocation121_spill] sm:$0xff] %v4290_v51  ;;  %v934_v27 = vand.u32 2147483647, %v6390_v44  ;;  %2184 = vlog2.f32 %v955_v7  ;;  %v964_v2 = vadd.f32 1.0, %v6411_v56  ;;  %v4297_v31 = vsel %vm4190_vm2, %v4050_v24, %v867_v42  ;;  %v6417_v42 = vld [vmem:[#allocation88_spill] sm:$0xff] }
 0x121   : > { %6412 = vst [vmem:[#allocation142_spill] sm:$0xff] %v4297_v31  ;;  %v885_v25 = vmul.f32 0.6931472, %v2169_v10  ;;  %v949_v23 = vmul.f32 -0.5, %v6401_v9  ;;  %v973_v18 = vadd.f32 1.0, %v6413_v60  ;;  %v4304_v40 = vsel %vm4213_vm3, %v4083_v50, %v876_v32 }
 0x122   : > { %6414 = vst [vmem:[#allocation122_spill] sm:$0xff] %v4304_v40  ;;  %v894_v13 = vmul.f32 0.6931472, %v2171_v28  ;;  %v903_v33 = vmul.f32 0.6931472, %v2173_v58  ;;  %v941_v63 = vadd.f32 1.0, %v940_v3  ;;  %v933_v24 = vmul.f32 %v932_v15, %v6390_v44 }
 0x123   : > { %vm4306_vm8 = vcmp.lt.f32.partialorder %v925_v17, 0.0004427343  ;;  %v912_v39 = vmul.f32 0.6931472, %v2175_v61  ;;  %v943_v10 = vand.u32 2147483647, %v6392_v26  ;;  %2186 = vlog2.f32 %v964_v2 }
 0x124   : > { %v982_v29 = vadd.f32 1.0, %v6417_v42  ;;  %vm4313_vm9 = vcmp.lt.f32.partialorder %v934_v27, 0.0004427343  ;;  %v952_v50 = vand.u32 2147483647, %v6401_v9  ;;  %v958_v22 = vmul.f32 -0.5, %v6404_v46 }
 0x125   : > { %v6420_v17 = vld [vmem:[#allocation113_spill] sm:$0xff]  ;;  %v950_v32 = vadd.f32 1.0, %v949_v23  ;;  %v961_v3 = vand.u32 2147483647, %v6404_v46  ;;  %v967_v44 = vmul.f32 -0.5, %v6411_v56  ;;  %2188 = vlog2.f32 %v973_v18  ;;  %v2177_v58 = vpop.eup %2176 }
 0x126   : > { %v991_v28 = vadd.f32 1.0, %v6420_v17  ;;  %v4325_v15 = vsel %vm4240_vm4, %v4120_v57, %v885_v25  ;;  %v4330_v61 = vsel %vm4246_vm5, %v4163_v11, %v894_v13  ;;  %v4335_v27 = vsel %vm4250_vm6, %v4224_v21, %v903_v33  ;;  %v6427_v11 = vld [vmem:[#allocation92_spill] sm:$0xff] }
 0x127   : > { %6421 = vst [vmem:[#allocation143_spill] sm:$0xff] %v4325_v15  ;;  %6422 = vst [vmem:[#allocation126_spill] sm:$0xff] %v4330_v61  ;;  %v942_v2 = vmul.f32 %v941_v63, %v6392_v26  ;;  %v4340_v23 = vsel %vm4257_vm7, %v915_v49, %v912_v39  ;;  %vm4342_vm10 = vcmp.lt.f32.partialorder %v943_v10, 0.0004427343  ;;  %v976_v57 = vmul.f32 -0.5, %v6413_v60  ;;  %v2179_v25 = vpop.eup %2178 }
 0x128   : > { %6423 = vst [vmem:[#allocation146_spill] sm:$0xff] %v4335_v27  ;;  %6424 = vst [vmem:[#allocation127_spill] sm:$0xff] %v4340_v23  ;;  %2190 = vlog2.f32 %v982_v29  ;;  %v1000_v48 = vadd.f32 1.0, %v6427_v11  ;;  %v959_v18 = vadd.f32 1.0, %v958_v22  ;;  %v985_v21 = vmul.f32 -0.5, %v6417_v42 }
 0x129   : > { %2192 = vlog2.f32 %v991_v28  ;;  %v1009_v26 = vadd.f32 1.0, %v6428_v62  ;;  %v921_v13 = vmul.f32 0.6931472, %v2177_v58  ;;  %v951_v49 = vmul.f32 %v950_v32, %v6401_v9 }
 0x12a   : > { %vm4351_vm11 = vcmp.lt.f32.partialorder %v952_v50, 0.0004427343  ;;  %vm4355_vm12 = vcmp.lt.f32.partialorder %v961_v3, 0.0004427343  ;;  %v968_v63 = vadd.f32 1.0, %v967_v44  ;;  %v994_v29 = vmul.f32 -0.5, %v6420_v17 }
 0x12b   : > { %v970_v39 = vand.u32 2147483647, %v6411_v56  ;;  %v979_v10 = vand.u32 2147483647, %v6413_v60  ;;  %v1003_v22 = vmul.f32 -0.5, %v6427_v11  ;;  %v2181_v28 = vpop.eup %2180  ;;  %v977_v9 = vadd.f32 1.0, %v976_v57 }
 0x12c   : > { %v930_v58 = vmul.f32 0.6931472, %v2179_v25  ;;  %2194 = vlog2.f32 %v1000_v48  ;;  %v6433_v50 = vld [vmem:[#allocation93_spill] sm:$0xff]  ;;  %v2183_v23 = vpop.eup %2182  ;;  %v960_v3 = vmul.f32 %v959_v18, %v6404_v46  ;;  %v986_v27 = vadd.f32 1.0, %v985_v21  ;;  %v6435_v48 = vld [vmem:[#allocation118_spill] sm:$0xff] }
 0x12d   : > { %v1018_v32 = vadd.f32 1.0, %v6433_v50  ;;  %v988_v44 = vand.u32 2147483647, %v6417_v42  ;;  %2196 = vlog2.f32 %v1009_v26  ;;  %v2185_v61 = vpop.eup %2184  ;;  %v4369_v15 = vsel %vm4306_vm8, %v4285_v14, %v921_v13  ;;  %v6441_v26 = vld [vmem:[#allocation94_spill] sm:$0xff] }
 0x12e   : > { %6434 = vst [vmem:[#allocation147_spill] sm:$0xff] %v4369_v15  ;;  %v969_v40 = vmul.f32 %v968_v63, %v6411_v56  ;;  %v997_v57 = vand.u32 2147483647, %v6420_v17  ;;  %v1027_v25 = vadd.f32 1.0, %v6435_v48  ;;  %v939_v31 = vmul.f32 0.6931472, %v2181_v28 }
 0x12f   : > { %vm4374_vm13 = vcmp.lt.f32.partialorder %v970_v39, 0.0004427343  ;;  %vm4378_vm14 = vcmp.lt.f32.partialorder %v979_v10, 0.0004427343  ;;  %v995_v18 = vadd.f32 1.0, %v994_v29  ;;  %v1004_v21 = vadd.f32 1.0, %v1003_v22 }
 0x130   : > { %v1012_v14 = vmul.f32 -0.5, %v6428_v62  ;;  %v4385_v56 = vsel %vm4313_vm9, %v933_v24, %v930_v58  ;;  %v978_v7 = vmul.f32 %v977_v9, %v6413_v60  ;;  %2198 = vlog2.f32 %v1018_v32  ;;  %v2187_v22 = vpop.eup %2186 }
 0x131   : > { %6440 = vst [vmem:[#allocation128_spill] sm:$0xff] %v4385_v56  ;;  %v1036_v13 = vadd.f32 1.0, %v6441_v26  ;;  %v948_v63 = vmul.f32 0.6931472, %v2183_v23  ;;  %v957_v39 = vmul.f32 0.6931472, %v2185_v61  ;;  %v987_v10 = vmul.f32 %v986_v27, %v6417_v42 }
 0x132   : > { %vm4390_vm15 = vcmp.lt.f32.partialorder %v988_v44, 0.0004427343  ;;  %v1021_v29 = vmul.f32 -0.5, %v6433_v50  ;;  %vm4395_vm0 = vcmp.lt.f32.partialorder %v997_v57, 0.0004427343  ;;  %2200 = vlog2.f32 %v1027_v25  ;;  %v6446_v23 = vld [vmem:[#allocation119_spill] sm:$0xff]  ;;  %v2189_v58 = vpop.eup %2188 }
 0x133   : > { %v1006_v60 = vand.u32 2147483647, %v6427_v11  ;;  %v1015_v24 = vand.u32 2147483647, %v6428_v62  ;;  %v1045_v61 = vadd.f32 1.0, %v6446_v23  ;;  %v4404_v42 = vsel %vm4342_vm10, %v942_v2, %v939_v31  ;;  %v6448_v56 = vld [vmem:[#allocation96_spill] sm:$0xff] }
 0x134   : > { %6447 = vst [vmem:[#allocation148_spill] sm:$0xff] %v4404_v42  ;;  %v996_v27 = vmul.f32 %v995_v18, %v6420_v17  ;;  %v4408_v9 = vmul.f32 %v1004_v21, %v6427_v11  ;;  %v1013_v32 = vadd.f32 1.0, %v1012_v14  ;;  %v1030_v44 = vmul.f32 -0.5, %v6435_v48 }
 0x135   : > { %2202 = vlog2.f32 %v1036_v13  ;;  %v1039_v57 = vmul.f32 -0.5, %v6441_v26  ;;  %v1054_v25 = vadd.f32 1.0, %v6448_v56  ;;  %v2191_v15 = vpop.eup %2190  ;;  %v4415_v36 = vsel %vm4351_vm11, %v951_v49, %v948_v63  ;;  %v6455_v49 = vld [vmem:[#allocation123_spill] sm:$0xff]  ;;  %v6456_v63 = vld [vmem:[#allocation97_spill] sm:$0xff] }
 0x136   : > { %6449 = vst [vmem:[#allocation130_spill] sm:$0xff] %v4415_v36  ;;  %v4419_v31 = vsel %vm4355_vm12, %v960_v3, %v957_v39  ;;  %v1022_v17 = vadd.f32 1.0, %v1021_v29  ;;  %v1024_v2 = vand.u32 2147483647, %v6433_v50  ;;  %v2193_v4 = vpop.eup %2192  ;;  %v966_v11 = vmul.f32 0.6931472, %v2187_v22 }
 0x137   : > { %6450 = vst [vmem:[#allocation151_spill] sm:$0xff] %v4419_v31  ;;  %v975_v18 = vmul.f32 0.6931472, %v2189_v58  ;;  %vm4422_vm1 = vcmp.lt.f32.partialorder %v1006_v60, 0.0004427343  ;;  %2204 = vlog2.f32 %v1045_v61  ;;  %v1063_v16 = vadd.f32 1.0, %v6455_v49 }
 0x138   : > { %vm4426_vm2 = vcmp.lt.f32.partialorder %v1015_v24, 0.0004427343  ;;  %v1014_v33 = vmul.f32 %v1013_v32, %v6428_v62  ;;  %v1033_v3 = vand.u32 2147483647, %v6435_v48  ;;  %v1048_v13 = vmul.f32 -0.5, %v6446_v23 }
 0x139   : > { %v1072_v39 = vadd.f32 1.0, %v6456_v63  ;;  %v984_v29 = vmul.f32 0.6931472, %v2191_v15  ;;  %v1031_v22 = vadd.f32 1.0, %v1030_v44  ;;  %v1040_v60 = vadd.f32 1.0, %v1039_v57  ;;  %v2195_v58 = vpop.eup %2194  ;;  %v6460_v44 = vld [vmem:[#allocation124_spill] sm:$0xff] }
 0x13a   : > { %2206 = vlog2.f32 %v1054_v25  ;;  %v993_v24 = vmul.f32 0.6931472, %v2193_v4  ;;  %v1023_v31 = vmul.f32 %v1022_v17, %v6433_v50  ;;  %vm4436_vm3 = vcmp.lt.f32.partialorder %v1024_v2, 0.0004427343  ;;  %v2197_v36 = vpop.eup %2196 }
 0x13b   : > { %v1042_v62 = vand.u32 2147483647, %v6441_v26  ;;  %v1057_v32 = vmul.f32 -0.5, %v6448_v56  ;;  %v4444_v42 = vsel %vm4374_vm13, %v969_v40, %v966_v11  ;;  %v4448_v15 = vsel %vm4378_vm14, %v978_v7, %v975_v18  ;;  %v6464_v7 = vld [vmem:[#allocation98_spill] sm:$0xff] }
 0x13c   : > { %6459 = vst [vmem:[#allocation131_spill] sm:$0xff] %v4448_v15  ;;  %2208 = vlog2.f32 %v1063_v16  ;;  %v1081_v50 = vadd.f32 1.0, %v6460_v44  ;;  %vm4451_vm4 = vcmp.lt.f32.partialorder %v1033_v3, 0.0004427343  ;;  %v1049_v25 = vadd.f32 1.0, %v1048_v13 }
 0x13d   : > { %v1051_v17 = vand.u32 2147483647, %v6446_v23  ;;  %v1066_v2 = vmul.f32 -0.5, %v6455_v49  ;;  %2210 = vlog2.f32 %v1072_v39  ;;  %v4459_v51 = vsel %vm4390_vm15, %v987_v10, %v984_v29  ;;  %v2199_v11 = vpop.eup %2198 }
 0x13e   : > { %6463 = vst [vmem:[#allocation152_spill] sm:$0xff] %v4459_v51  ;;  %v1032_v40 = vmul.f32 %v1031_v22, %v6435_v48  ;;  %v1041_v46 = vmul.f32 %v1040_v60, %v6441_v26  ;;  %v1090_v4 = vadd.f32 1.0, %v6464_v7  ;;  %v4466_v18 = vsel %vm4395_vm0, %v996_v27, %v993_v24  ;;  %v6468_v26 = vld [vmem:[#allocation102_spill] sm:$0xff] }
 0x13f   : > { %6465 = vst [vmem:[#allocation133_spill] sm:$0xff] %v4466_v18  ;;  %v1002_v16 = vmul.f32 0.6931472, %v2195_v58  ;;  %v1011_v3 = vmul.f32 0.6931472, %v2197_v36  ;;  %v1058_v28 = vadd.f32 1.0, %v1057_v32  ;;  %2212 = vlog2.f32 %v1081_v50  ;;  %v2201_v29 = vpop.eup %2200 }
 0x140   : > { %vm4468_vm5 = vcmp.lt.f32.partialorder %v1042_v62, 0.0004427343  ;;  %v1060_v10 = vand.u32 2147483647, %v6448_v56  ;;  %v1075_v48 = vmul.f32 -0.5, %v6456_v63  ;;  %v1099_v39 = vadd.f32 1.0, %v6468_v26 }
 0x141   : > { %v1050_v22 = vmul.f32 %v1049_v25, %v6446_v23  ;;  %vm4476_vm6 = vcmp.lt.f32.partialorder %v1051_v17, 0.0004427343  ;;  %v1067_v36 = vadd.f32 1.0, %v1066_v2  ;;  %v1069_v27 = vand.u32 2147483647, %v6455_v49  ;;  %v6473_v17 = vld [vmem:[#allocation103_spill] sm:$0xff] }
 0x142   : > { %v1084_v60 = vmul.f32 -0.5, %v6460_v44  ;;  %v1020_v58 = vmul.f32 0.6931472, %v2199_v11  ;;  %v1078_v24 = vand.u32 2147483647, %v6456_v63  ;;  %2214 = vlog2.f32 %v1090_v4  ;;  %v2203_v32 = vpop.eup %2202 }
 0x143   : > { %v1093_v62 = vmul.f32 -0.5, %v6464_v7  ;;  %v4487_v23 = vsel %vm4422_vm1, %v4408_v9, %v1002_v16  ;;  %v4491_v50 = vsel %vm4426_vm2, %v1014_v33, %v1011_v3  ;;  %v1059_v25 = vmul.f32 %v1058_v28, %v6448_v56  ;;  %v6476_v33 = vld [vmem:[#allocation104_spill] sm:$0xff] }
 0x144   : > { %6471 = vst [vmem:[#allocation155_spill] sm:$0xff] %v4487_v23  ;;  %6472 = vst [vmem:[#allocation134_spill] sm:$0xff] %v4491_v50  ;;  %v1108_v2 = vadd.f32 1.0, %v6473_v17  ;;  %v1029_v11 = vmul.f32 0.6931472, %v2201_v29  ;;  %v1076_v4 = vadd.f32 1.0, %v1075_v48  ;;  %2216 = vlog2.f32 %v1099_v39  ;;  %v2205_v21 = vpop.eup %2204 }
 0x145   : > { %vm4495_vm7 = vcmp.lt.f32.partialorder %v1060_v10, 0.0004427343  ;;  %v1102_v51 = vmul.f32 -0.5, %v6468_v26  ;;  %v1068_v9 = vmul.f32 %v1067_v36, %v6455_v49  ;;  %v1085_v16 = vadd.f32 1.0, %v1084_v60  ;;  %v6482_v60 = vld [vmem:[#allocation108_spill] sm:$0xff] }
 0x146   : > { %v1087_v14 = vand.u32 2147483647, %v6460_v44  ;;  %v1117_v3 = vadd.f32 1.0, %v6476_v33  ;;  %v4505_v56 = vsel %vm4436_vm3, %v1023_v31, %v1020_v58  ;;  %v1038_v28 = vmul.f32 0.6931472, %v2203_v32 }
 0x147   : > { %6477 = vst [vmem:[#allocation156_spill] sm:$0xff] %v4505_v56  ;;  %vm4507_vm8 = vcmp.lt.f32.partialorder %v1069_v27, 0.0004427343  ;;  %vm4511_vm9 = vcmp.lt.f32.partialorder %v1078_v24, 0.0004427343  ;;  %v1094_v39 = vadd.f32 1.0, %v1093_v62  ;;  %v2207_v49 = vpop.eup %2206  ;;  %2218 = vlog2.f32 %v1108_v2 }
 0x148   : > { %v1096_v29 = vand.u32 2147483647, %v6464_v7  ;;  %v1111_v36 = vmul.f32 -0.5, %v6473_v17  ;;  %v1126_v61 = vadd.f32 1.0, %v6482_v60  ;;  %v4520_v31 = vsel %vm4451_vm4, %v1032_v40, %v1029_v11 }
 0x149   : > { %6483 = vst [vmem:[#allocation138_spill] sm:$0xff] %v4520_v31  ;;  %v1047_v27 = vmul.f32 0.6931472, %v2205_v21  ;;  %v1077_v58 = vmul.f32 %v1076_v4, %v6456_v63  ;;  %v1103_v24 = vadd.f32 1.0, %v1102_v51  ;;  %v2209_v32 = vpop.eup %2208  ;;  %v1086_v56 = vmul.f32 %v1085_v16, %v6460_v44  ;;  %v6487_v51 = vld [vmem:[#allocation109_spill] sm:$0xff]  ;;  %v6490_v16 = vld [vmem:[#allocation200_spill] sm:$0xff] }
 0x14a   : > { %vm4524_vm10 = vcmp.lt.f32.partialorder %v1087_v14, 0.0004427343  ;;  %v1105_v2 = vand.u32 2147483647, %v6468_v26  ;;  %2220 = vlog2.f32 %v1117_v3  ;;  %v1120_v50 = vmul.f32 -0.5, %v6476_v33  ;;  %v2211_v23 = vpop.eup %2210  ;;  %v6492_v3 = vld [vmem:[#allocation110_spill] sm:$0xff] }
 0x14b   : > { %v4532_v57 = vsel %vm4468_vm5, %v1041_v46, %v1038_v28  ;;  %v1056_v40 = vmul.f32 0.6931472, %v2207_v49  ;;  %v1095_v63 = vmul.f32 %v1094_v39, %v6464_v7  ;;  %v1135_v11 = vadd.f32 1.0, %v6487_v51 }
 0x14c   : > { %6486 = vst [vmem:[#allocation160_spill] sm:$0xff] %v4532_v57  ;;  %vm4536_vm11 = vcmp.lt.f32.partialorder %v1096_v29, 0.0004427343  ;;  %v1112_v4 = vadd.f32 1.0, %v1111_v36  ;;  %2222 = vlog2.f32 %v1126_v61  ;;  %v1129_v21 = vmul.f32 -0.5, %v6482_v60  ;;  %v2213_v39 = vpop.eup %2212 }
 0x14d   : > { %v1144_v14 = vadd.f32 1.0, %v6490_v16  ;;  %v4544_v13 = vsel %vm4476_vm6, %v1050_v22, %v1047_v27  ;;  %v1104_v46 = vmul.f32 %v1103_v24, %v6468_v26  ;;  %v1114_v7 = vand.u32 2147483647, %v6473_v17  ;;  %v6495_v26 = vld [vmem:[#allocation132_spill] sm:$0xff] }
 0x14e   : > { %6491 = vst [vmem:[#allocation59_spill] sm:$0xff] %v4544_v13  ;;  %v1153_v28 = vadd.f32 1.0, %v6492_v3  ;;  %v1065_v49 = vmul.f32 0.6931472, %v2209_v32  ;;  %v1074_v29 = vmul.f32 0.6931472, %v2211_v23  ;;  %2224 = vlog2.f32 %v1135_v11 }
 0x14f   : > { %vm4549_vm12 = vcmp.lt.f32.partialorder %v1105_v2, 0.0004427343  ;;  %v1121_v61 = vadd.f32 1.0, %v1120_v50  ;;  %v1138_v57 = vmul.f32 -0.5, %v6487_v51  ;;  %v1123_v47 = vand.u32 2147483647, %v6476_v33  ;;  %v2215_v24 = vpop.eup %2214 }
 0x150   : > { %v1147_v22 = vmul.f32 -0.5, %v6490_v16  ;;  %v1162_v27 = vadd.f32 1.0, %v6495_v26  ;;  %v4559_v13 = vsel %vm4495_vm7, %v1059_v25, %v1056_v40  ;;  %v1113_v23 = vmul.f32 %v1112_v4, %v6473_v17 }
 0x151   : > { %v1130_v32 = vadd.f32 1.0, %v1129_v21  ;;  %2226 = vlog2.f32 %v1144_v14  ;;  %v1083_v2 = vmul.f32 0.6931472, %v2213_v39  ;;  %vm4562_vm13 = vcmp.lt.f32.partialorder %v1114_v7, 0.0004427343  ;;  %v2217_v15 = vpop.eup %2216  ;;  %v6502_v7 = vld [vmem:[#allocation135_spill] sm:$0xff] }
 0x152   : > { %v1132_v11 = vand.u32 2147483647, %v6482_v60  ;;  %2228 = vlog2.f32 %v1153_v28  ;;  %v1156_v31 = vmul.f32 -0.5, %v6492_v3  ;;  %v4570_v18 = vsel %vm4507_vm8, %v1068_v9, %v1065_v49 }
 0x153   : > { %6498 = vst [vmem:[#allocation139_spill] sm:$0xff] %v4570_v18  ;;  %v4574_v25 = vsel %vm4511_vm9, %v1077_v58, %v1074_v29  ;;  %v1122_v17 = vmul.f32 %v1121_v61, %v6476_v33  ;;  %v1139_v40 = vadd.f32 1.0, %v1138_v57  ;;  %v1092_v4 = vmul.f32 0.6931472, %v2215_v24  ;;  %v6503_v58 = vld [vmem:[#allocation201_spill] sm:$0xff]  ;;  %v6507_v24 = vld [vmem:[#allocation115_spill] sm:$0xff] }
 0x154   : > { %6499 = vst [vmem:[#allocation161_spill] sm:$0xff] %v4574_v25  ;;  %vm4577_vm14 = vcmp.lt.f32.partialorder %v1123_v47, 0.0004427343  ;;  %v1148_v14 = vadd.f32 1.0, %v1147_v22  ;;  %2230 = vlog2.f32 %v1162_v27  ;;  %v1171_v28 = vadd.f32 1.0, %v6502_v7  ;;  %v2219_v49 = vpop.eup %2218 }
 0x155   : > { %v1131_v10 = vmul.f32 %v1130_v32, %v6482_v60  ;;  %v1141_v9 = vand.u32 2147483647, %v6487_v51  ;;  %v1150_v48 = vand.u32 2147483647, %v6490_v16  ;;  %v1180_v39 = vadd.f32 1.0, %v6503_v58 }
 0x156   : > { %v4588_v33 = vsel %vm4524_vm10, %v1086_v56, %v1083_v2  ;;  %v1101_v57 = vmul.f32 0.6931472, %v2217_v15  ;;  %vm4590_vm15 = vcmp.lt.f32.partialorder %v1132_v11, 0.0004427343  ;;  %v1157_v61 = vadd.f32 1.0, %v1156_v31  ;;  %v6509_v31 = vld [vmem:[#allocation202_spill] sm:$0xff] }
 0x157   : > { %6504 = vst [vmem:[#allocation81_spill] sm:$0xff] %v4588_v33  ;;  %v1165_v47 = vmul.f32 -0.5, %v6495_v26  ;;  %v4596_v60 = vmul.f32 %v1139_v40, %v6487_v51  ;;  %v1159_v22 = vand.u32 2147483647, %v6492_v3  ;;  %v1174_v27 = vmul.f32 -0.5, %v6502_v7  ;;  %v2221_v62 = vpop.eup %2220  ;;  %v6512_v33 = vld [vmem:[#allocation116_spill] sm:$0xff] }
 0x158   : > { %v1189_v32 = vadd.f32 1.0, %v6507_v24  ;;  %v4603_v15 = vsel %vm4536_vm11, %v1095_v63, %v1092_v4  ;;  %v4606_v56 = vmul.f32 %v1148_v14, %v6490_v16  ;;  %2232 = vlog2.f32 %v1171_v28 }
 0x159   : > { %6508 = vst [vmem:[#allocation204_spill] sm:$0xff] %v4603_v15  ;;  %v1198_v2 = vadd.f32 1.0, %v6509_v31  ;;  %v1110_v11 = vmul.f32 0.6931472, %v2219_v49  ;;  %vm4609_vm0 = vcmp.lt.f32.partialorder %v1141_v9, 0.0004427343  ;;  %2234 = vlog2.f32 %v1180_v39  ;;  %v2223_v18 = vpop.eup %2222 }
 0x15a   : > { %v1168_v40 = vand.u32 2147483647, %v6495_v26  ;;  %v1207_v25 = vadd.f32 1.0, %v6512_v33  ;;  %v4617_v63 = vsel %vm4549_vm12, %v1104_v46, %v1101_v57  ;;  %vm4619_vm1 = vcmp.lt.f32.partialorder %v1150_v48, 0.0004427343  ;;  %v6518_v48 = vld [vmem:[#allocation137_spill] sm:$0xff] }
 0x15b   : > { %6513 = vst [vmem:[#allocation140_spill] sm:$0xff] %v4617_v63  ;;  %v1158_v16 = vmul.f32 %v1157_v61, %v6492_v3  ;;  %v1166_v4 = vadd.f32 1.0, %v1165_v47  ;;  %v1183_v14 = vmul.f32 -0.5, %v6503_v58  ;;  %v1119_v28 = vmul.f32 0.6931472, %v2221_v62  ;;  %v2225_v57 = vpop.eup %2224 }
 0x15c   : > { %vm4625_vm2 = vcmp.lt.f32.partialorder %v1159_v22, 0.0004427343  ;;  %v1175_v39 = vadd.f32 1.0, %v1174_v27  ;;  %2236 = vlog2.f32 %v1189_v32  ;;  %v1177_v36 = vand.u32 2147483647, %v6502_v7 }
 0x15d   : > { %v1192_v46 = vmul.f32 -0.5, %v6507_v24  ;;  %2238 = vlog2.f32 %v1198_v2  ;;  %v1216_v49 = vadd.f32 1.0, %v6518_v48  ;;  %v4634_v3 = vsel %vm4562_vm13, %v1113_v23, %v1110_v11 }
 0x15e   : > { %v1128_v61 = vmul.f32 0.6931472, %v2223_v18  ;;  %vm4636_vm3 = vcmp.lt.f32.partialorder %v1168_v40, 0.0004427343  ;;  %v1201_v22 = vmul.f32 -0.5, %v6509_v31  ;;  %2240 = vlog2.f32 %v1207_v25  ;;  %v2227_v27 = vpop.eup %2226 }
 0x15f   : > { %v1167_v32 = vmul.f32 %v1166_v4, %v6495_v26  ;;  %v1184_v62 = vadd.f32 1.0, %v1183_v14  ;;  %v1210_v2 = vmul.f32 -0.5, %v6512_v33  ;;  %v1225_v63 = vadd.f32 1.0, %v4017_v5  ;;  %v2229_v15 = vpop.eup %2228 }
 0x160   : > { %v4646_v23 = vsel %vm4577_vm14, %v1122_v17, %v1119_v28  ;;  %v4649_v50 = vmul.f32 %v1175_v39, %v6502_v7  ;;  %v1186_v18 = vand.u32 2147483647, %v6503_v58  ;;  %2242 = vlog2.f32 %v1216_v49 }
 0x161   : > { %v1137_v25 = vmul.f32 0.6931472, %v2225_v57  ;;  %v1193_v11 = vadd.f32 1.0, %v1192_v46  ;;  %v1195_v26 = vand.u32 2147483647, %v6507_v24  ;;  %v1234_v40 = vadd.f32 1.0, %v4022_v35  ;;  %v2231_v4 = vpop.eup %2230 }
 0x162   : > { %v4656_v14 = vsel %vm4590_vm15, %v1131_v10, %v1128_v61  ;;  %v1146_v21 = vmul.f32 0.6931472, %v2227_v27  ;;  %v1202_v17 = vadd.f32 1.0, %v1201_v22  ;;  %2244 = vlog2.f32 %v1225_v63  ;;  %v6587_v46 = vld [vmem:[#allocation151_spill] sm:$0xff] }
 0x163   : > { %6521 = vst [vmem:[#allocation162_spill] sm:$0xff] %v4656_v14  ;;  %v1155_v28 = vmul.f32 0.6931472, %v2229_v15  ;;  %v1185_v7 = vmul.f32 %v1184_v62, %v6503_v58  ;;  %v1204_v39 = vand.u32 2147483647, %v6509_v31  ;;  %v1211_v49 = vadd.f32 1.0, %v1210_v2 }
 0x164   : > { %vm4660_vm4 = vcmp.lt.f32.partialorder %v1177_v36, 0.0004427343  ;;  %vm4664_vm5 = vcmp.lt.f32.partialorder %v1186_v18, 0.0004427343  ;;  %v1213_v10 = vand.u32 2147483647, %v6512_v33  ;;  %2246 = vlog2.f32 %v1234_v40 }
 0x165   : > { %v1219_v29 = vmul.f32 -0.5, %v6518_v48  ;;  %v1243_v15 = vadd.f32 1.0, %v4029_v8  ;;  %v4674_v58 = vsel %vm4609_vm0, %v4596_v60, %v1137_v25  ;;  %v1164_v63 = vmul.f32 0.6931472, %v2231_v4  ;;  %v2233_v22 = vpop.eup %2232 }
 0x166   : > { %6526 = vst [vmem:[#allocation144_spill] sm:$0xff] %v4674_v58  ;;  %v1194_v36 = vmul.f32 %v1193_v11, %v6507_v24  ;;  %v1222_v61 = vand.u32 2147483647, %v6518_v48  ;;  %v4681_v27 = vsel %vm4619_vm1, %v4606_v56, %v1146_v21  ;;  %vm4683_vm6 = vcmp.lt.f32.partialorder %v1195_v26, 0.0004427343  ;;  %v2235_v18 = vpop.eup %2234 }
 0x167   : > { %6527 = vst [vmem:[#allocation165_spill] sm:$0xff] %v4681_v27  ;;  %v1203_v2 = vmul.f32 %v1202_v17, %v6509_v31  ;;  %v1228_v60 = vmul.f32 -0.5, %v4017_v5  ;;  %v1252_v51 = vadd.f32 1.0, %v4034_v59  ;;  %v4692_v24 = vsel %vm4625_vm2, %v1158_v16, %v1155_v28 }
 0x168   : > { %6530 = vst [vmem:[#allocation205_spill] sm:$0xff] %v4692_v24  ;;  %vm4694_vm7 = vcmp.lt.f32.partialorder %v1204_v39, 0.0004427343  ;;  %v1212_v56 = vmul.f32 %v1211_v49, %v6512_v33  ;;  %v1231_v44 = vand.u32 2147483647, %v4017_v5  ;;  %2248 = vlog2.f32 %v1243_v15 }
 0x169   : > { %vm4700_vm8 = vcmp.lt.f32.partialorder %v1213_v10, 0.0004427343  ;;  %v1220_v11 = vadd.f32 1.0, %v1219_v29  ;;  %v1237_v26 = vmul.f32 -0.5, %v4022_v35  ;;  %v1261_v9 = vadd.f32 1.0, %v4055_v45  ;;  %v2237_v16 = vpop.eup %2236 }
 0x16a   : > { %v4708_v40 = vsel %vm4636_vm3, %v1167_v32, %v1164_v63  ;;  %vm4710_vm9 = vcmp.lt.f32.partialorder %v1222_v61, 0.0004427343  ;;  %v1246_v33 = vmul.f32 -0.5, %v4029_v8  ;;  %2250 = vlog2.f32 %v1252_v51  ;;  %v2239_v21 = vpop.eup %2238 }
 0x16b   : > { %6535 = vst [vmem:[#allocation145_spill] sm:$0xff] %v4708_v40  ;;  %v1173_v17 = vmul.f32 0.6931472, %v2233_v22  ;;  %v1182_v28 = vmul.f32 0.6931472, %v2235_v18  ;;  %v1229_v39 = vadd.f32 1.0, %v1228_v60  ;;  %v2241_v10 = vpop.eup %2240  ;;  %2252 = vlog2.f32 %v1261_v9 }
 0x16c   : > { %v1255_v49 = vmul.f32 -0.5, %v4034_v59  ;;  %vm4716_vm10 = vcmp.lt.f32.partialorder %v1231_v44, 0.0004427343  ;;  %v1264_v47 = vmul.f32 -0.5, %v4055_v45  ;;  %v1270_v32 = vadd.f32 1.0, %v4089_v6 }
 0x16d   : > { %v1221_v15 = vmul.f32 %v1220_v11, %v6518_v48  ;;  %v1238_v63 = vadd.f32 1.0, %v1237_v26  ;;  %v1240_v61 = vand.u32 2147483647, %v4022_v35  ;;  %v1249_v22 = vand.u32 2147483647, %v4029_v8  ;;  %v2243_v60 = vpop.eup %2242 }
 0x16e   : > { %v1191_v51 = vmul.f32 0.6931472, %v2237_v16  ;;  %v1247_v18 = vadd.f32 1.0, %v1246_v33  ;;  %v1258_v44 = vand.u32 2147483647, %v4034_v59  ;;  %v1273_v40 = vmul.f32 -0.5, %v4089_v6 }
 0x16f   : > { %v1200_v24 = vmul.f32 0.6931472, %v2239_v21  ;;  %v1209_v9 = vmul.f32 0.6931472, %v2241_v10  ;;  %v1256_v27 = vadd.f32 1.0, %v1255_v49  ;;  %2254 = vlog2.f32 %v1270_v32  ;;  %v2245_v58 = vpop.eup %2244 }
 0x170   : > { %v4730_v48 = vsel %vm4660_vm4, %v4649_v50, %v1173_v17  ;;  %v4734_v11 = vsel %vm4664_vm5, %v1185_v7, %v1182_v28  ;;  %v1230_v26 = vmul.f32 %v1229_v39, %v4017_v5  ;;  %v1265_v16 = vadd.f32 1.0, %v1264_v47 }
 0x171   : > { %v1218_v33 = vmul.f32 0.6931472, %v2243_v60  ;;  %v1239_v14 = vmul.f32 %v1238_v63, %v4022_v35  ;;  %vm4738_vm11 = vcmp.lt.f32.partialorder %v1240_v61, 0.0004427343  ;;  %v1267_v49 = vand.u32 2147483647, %v4055_v45  ;;  %v2247_v10 = vpop.eup %2246 }
 0x172   : > { %v4745_v50 = vsel %vm4683_vm6, %v1194_v36, %v1191_v51  ;;  %v1248_v7 = vmul.f32 %v1247_v18, %v4029_v8  ;;  %vm4748_vm12 = vcmp.lt.f32.partialorder %v1249_v22, 0.0004427343  ;;  %v1274_v5 = vadd.f32 1.0, %v1273_v40  ;;  %v6546_v40 = vld [vmem:[#allocation120_spill] sm:$0xff]  ;;  %v6563_v61 = vld [vmem:[#allocation141_spill] sm:$0xff]  ;;  %v6567_v60 = vld [vmem:[#allocation142_spill] sm:$0xff] }
 0x173   : > { %v4754_v35 = vsel %vm4694_vm7, %v1203_v2, %v1200_v24  ;;  %v4758_v57 = vsel %vm4700_vm8, %v1212_v56, %v1209_v9  ;;  %v1227_v17 = vmul.f32 0.6931472, %v2245_v58  ;;  %v1257_v62 = vmul.f32 %v1256_v27, %v4034_v59  ;;  %v6565_v22 = vld [vmem:[#allocation121_spill] sm:$0xff]  ;;  %v6569_v51 = vld [vmem:[#allocation122_spill] sm:$0xff]  ;;  %v6571_v18 = vld [vmem:[#allocation143_spill] sm:$0xff] }
 0x174   : > { %vm4761_vm13 = vcmp.lt.f32.partialorder %v1258_v44, 0.0004427343  ;;  %v1266_v8 = vmul.f32 %v1265_v16, %v4055_v45  ;;  %v1276_v28 = vand.u32 2147483647, %v4089_v6  ;;  %v4769_v25 = vmul.f32 %v6546_v40, %v6546_v40  ;;  %v6573_v44 = vld [vmem:[#allocation126_spill] sm:$0xff]  ;;  %v6581_v40 = vld [vmem:[#allocation128_spill] sm:$0xff] }
 0x175   : > { %v4773_v2 = vmul.f32 %v4126_v53, %v4126_v53  ;;  %v2249_v24 = vpop.eup %2248  ;;  %v4777_v59 = vsel %vm4710_vm9, %v1221_v15, %v1218_v33  ;;  %v1236_v58 = vmul.f32 0.6931472, %v2247_v10  ;;  %vm4779_vm14 = vcmp.lt.f32.partialorder %v1267_v49, 0.0004427343  ;;  %v6577_v10 = vld [vmem:[#allocation127_spill] sm:$0xff] }
 0x176   : > { %v4785_v45 = vmul.f32 %v4131_v34, %v4131_v34  ;;  %v4789_v56 = vmul.f32 %v4136_v37, %v4136_v37  ;;  %v1275_v53 = vmul.f32 %v1274_v5, %v4089_v6  ;;  %v4794_v31 = vmul.f32 %v4169_v19, %v4169_v19  ;;  %v6596_v36 = vld [vmem:[#allocation155_spill] sm:$0xff] }
 0x177   : > { %v4798_v4 = vmul.f32 %v4174_v43, %v4174_v43  ;;  %v4802_v39 = vmul.f32 %v4186_v55, %v4186_v55  ;;  %v2251_v34 = vpop.eup %2250  ;;  %v4806_v47 = vsel %vm4716_vm10, %v1230_v26, %v1227_v17  ;;  %v4810_v6 = vmul.f32 %v4199_v1, %v4199_v1  ;;  %v6575_v26 = vld [vmem:[#allocation146_spill] sm:$0xff]  ;;  %v6579_v17 = vld [vmem:[#allocation147_spill] sm:$0xff] }
 0x178   : > { %6549 = vst [vmem:[#allocation166_spill] sm:$0xff] %v4794_v31  ;;  %v4814_v37 = vmul.f32 %v4204_v52, %v4204_v52  ;;  %v4818_v19 = vmul.f32 %v4209_v12, %v4209_v12  ;;  %v1245_v43 = vmul.f32 0.6931472, %v2249_v24  ;;  %vm4820_vm15 = vcmp.lt.f32.partialorder %v1276_v28, 0.0004427343  ;;  %v2253_v32 = vpop.eup %2252  ;;  %v6701_v31 = vld [vmem:[#allocation69_spill] sm:$0xff] }
 0x179   : > { %6550 = vst [vmem:[#allocation65_spill] sm:$0xff] %v4798_v4  ;;  %6551 = vst [vmem:[#allocation149_spill] sm:$0xff] %v4802_v39  ;;  %v4826_v29 = vmul.f32 %v4221_v30, %v4221_v30  ;;  %v4830_v1 = vmul.f32 %v4230_v54, %v4230_v54  ;;  %v4834_v52 = vmul.f32 %v4235_v38, %v4235_v38  ;;  %v1254_v63 = vmul.f32 0.6931472, %v2251_v34  ;;  %v6697_v39 = vld [vmem:[#allocation67_spill] sm:$0xff]  ;;  %v6699_v4 = vld [vmem:[#allocation68_spill] sm:$0xff] }
 0x17a   : > { %6552 = vst [vmem:[#allocation169_spill] sm:$0xff] %v4810_v6  ;;  %6553 = vst [vmem:[#allocation95_spill] sm:$0xff] %v4814_v37  ;;  %v1242_v12 = vsel %vm4738_vm11, %v1239_v14, %v1236_v58  ;;  %v4840_v15 = vmul.f32 %v4265_v20, %v4265_v20  ;;  %v4844_v30 = vmul.f32 %v4270_v41, %v4270_v41  ;;  %v1263_v49 = vmul.f32 0.6931472, %v2253_v32  ;;  %v6583_v58 = vld [vmem:[#allocation148_spill] sm:$0xff]  ;;  %v6693_v37 = vld [vmem:[#allocation63_spill] sm:$0xff] }
 0x17b   : > { %6554 = vst [vmem:[#allocation150_spill] sm:$0xff] %v4818_v19  ;;  %6557 = vst [vmem:[#allocation170_spill] sm:$0xff] %v4826_v29  ;;  %v4848_v54 = vmul.f32 %v4276_v0, %v4276_v0  ;;  %v4852_v38 = vmul.f32 %v6563_v61, %v6563_v61  ;;  %v4856_v14 = vmul.f32 %v6565_v22, %v6565_v22  ;;  %v6585_v61 = vld [vmem:[#allocation130_spill] sm:$0xff]  ;;  %v6690_v29 = vld [vmem:[#allocation61_spill] sm:$0xff] }
 0x17c   : > { %6558 = vst [vmem:[#allocation99_spill] sm:$0xff] %v4830_v1  ;;  %6559 = vst [vmem:[#allocation153_spill] sm:$0xff] %v4834_v52  ;;  %v4860_v20 = vmul.f32 %v6567_v60, %v6567_v60  ;;  %v4864_v41 = vmul.f32 %v6569_v51, %v6569_v51  ;;  %v4868_v0 = vmul.f32 %v6571_v18, %v6571_v18  ;;  %v2255_v33 = vpop.eup %2254  ;;  %v6590_v60 = vld [vmem:[#allocation131_spill] sm:$0xff]  ;;  %v6592_v18 = vld [vmem:[#allocation152_spill] sm:$0xff] }
 0x17d   : > { %6560 = vst [vmem:[#allocation173_spill] sm:$0xff] %v4840_v15  ;;  %6561 = vst [vmem:[#allocation100_spill] sm:$0xff] %v4844_v30  ;;  %v4872_v9 = vmul.f32 %v6573_v44, %v6573_v44  ;;  %v4876_v16 = vmul.f32 %v6575_v26, %v6575_v26  ;;  %v1251_v21 = vsel %vm4748_vm12, %v1248_v7, %v1245_v43  ;;  %v1272_v26 = vmul.f32 0.6931472, %v2255_v33  ;;  %v6602_v33 = vld [vmem:[#allocation138_spill] sm:$0xff]  ;;  %v6686_v30 = vld [vmem:[#allocation55_spill] sm:$0xff] }
 0x17e   : > { %6562 = vst [vmem:[#allocation154_spill] sm:$0xff] %v4848_v54  ;;  %6564 = vst [vmem:[#allocation174_spill] sm:$0xff] %v4852_v38  ;;  %v4882_v5 = vmul.f32 %v6577_v10, %v6577_v10  ;;  %v4886_v28 = vmul.f32 %v6579_v17, %v6579_v17  ;;  %v4890_v24 = vmul.f32 %v6581_v40, %v6581_v40  ;;  %v6594_v10 = vld [vmem:[#allocation133_spill] sm:$0xff]  ;;  %v6685_v54 = vld [vmem:[#allocation54_spill] sm:$0xff] }
 0x17f   : > { %6566 = vst [vmem:[#allocation157_spill] sm:$0xff] %v4856_v14  ;;  %6568 = vst [vmem:[#allocation178_spill] sm:$0xff] %v4860_v20  ;;  %v4894_v34 = vmul.f32 %v6583_v58, %v6583_v58  ;;  %v4898_v7 = vmul.f32 %v6585_v61, %v6585_v61  ;;  %v4902_v43 = vmul.f32 %v6587_v46, %v6587_v46  ;;  %v6600_v58 = vld [vmem:[#allocation156_spill] sm:$0xff]  ;;  %v6682_v20 = vld [vmem:[#allocation51_spill] sm:$0xff] }
 0x180   : > { %6570 = vst [vmem:[#allocation158_spill] sm:$0xff] %v4864_v41  ;;  %6572 = vst [vmem:[#allocation179_spill] sm:$0xff] %v4868_v0  ;;  %v1260_v32 = vsel %vm4761_vm13, %v1257_v62, %v1254_v63  ;;  %v4908_v22 = vmul.f32 %v4444_v42, %v4444_v42  ;;  %v4912_v51 = vmul.f32 %v6590_v60, %v6590_v60  ;;  %v6598_v63 = vld [vmem:[#allocation134_spill] sm:$0xff]  ;;  %v6604_v60 = vld [vmem:[#allocation160_spill] sm:$0xff] }
 0x181   : > { %6574 = vst [vmem:[#allocation159_spill] sm:$0xff] %v4872_v9  ;;  %6576 = vst [vmem:[#allocation180_spill] sm:$0xff] %v4876_v16  ;;  %v4916_v44 = vmul.f32 %v6592_v18, %v6592_v18  ;;  %v4920_v17 = vmul.f32 %v6594_v10, %v6594_v10  ;;  %v4924_v62 = vmul.f32 %v6596_v36, %v6596_v36  ;;  %v6606_v10 = vld [vmem:[#allocation59_spill] sm:$0xff]  ;;  %v6679_v9 = vld [vmem:[#allocation48_spill] sm:$0xff] }
 0x182   : > { %6578 = vst [vmem:[#allocation163_spill] sm:$0xff] %v4882_v5  ;;  %6580 = vst [vmem:[#allocation183_spill] sm:$0xff] %v4886_v28  ;;  %v4928_v42 = vmul.f32 %v6598_v63, %v6598_v63  ;;  %v1269_v40 = vsel %vm4779_vm14, %v1266_v8, %v1263_v49  ;;  %v4934_v61 = vmul.f32 %v6600_v58, %v6600_v58  ;;  %v6609_v8 = vld [vmem:[#allocation139_spill] sm:$0xff]  ;;  %v6611_v63 = vld [vmem:[#allocation161_spill] sm:$0xff] }
 0x183   : > { %6582 = vst [vmem:[#allocation164_spill] sm:$0xff] %v4890_v24  ;;  %6584 = vst [vmem:[#allocation184_spill] sm:$0xff] %v4894_v34  ;;  %v4938_v46 = vmul.f32 %v6602_v33, %v6602_v33  ;;  %v4942_v18 = vmul.f32 %v6604_v60, %v6604_v60  ;;  %v4946_v36 = vmul.f32 %v6606_v10, %v6606_v10  ;;  %v6613_v33 = vld [vmem:[#allocation81_spill] sm:$0xff]  ;;  %v6674_v34 = vld [vmem:[#allocation43_spill] sm:$0xff] }
 0x184   : > { %6586 = vst [vmem:[#allocation167_spill] sm:$0xff] %v4898_v7  ;;  %6588 = vst [vmem:[#allocation186_spill] sm:$0xff] %v4902_v43  ;;  %v4950_v27 = vmul.f32 %v4559_v13, %v4559_v13  ;;  %v4954_v49 = vmul.f32 %v6609_v8, %v6609_v8  ;;  %v4958_v58 = vmul.f32 %v6611_v63, %v6611_v63  ;;  %v6672_v43 = vld [vmem:[#allocation41_spill] sm:$0xff]  ;;  %v6673_v7 = vld [vmem:[#allocation42_spill] sm:$0xff] }
 0x185   : > { %6589 = vst [vmem:[#allocation168_spill] sm:$0xff] %v4908_v22  ;;  %6591 = vst [vmem:[#allocation187_spill] sm:$0xff] %v4912_v51  ;;  %v4963_v60 = vmul.f32 %v6613_v33, %v6613_v33  ;;  %v4975_v8 = vmul.f32 %v4634_v3, %v4634_v3  ;;  %v1278_v63 = vsel %vm4820_vm15, %v1275_v53, %v1272_v26  ;;  %v6621_v33 = vld [vmem:[#allocation162_spill] sm:$0xff]  ;;  %v6627_v3 = vld [vmem:[#allocation205_spill] sm:$0xff] }
 0x186   : > { %6593 = vst [vmem:[#allocation58_spill] sm:$0xff] %v4916_v44  ;;  %6595 = vst [vmem:[#allocation171_spill] sm:$0xff] %v4920_v17  ;;  %v4997_v55 = vmul.f32 %v6627_v3, %v6627_v3  ;;  %v6629_v53 = vld [vmem:[#allocation145_spill] sm:$0xff]  ;;  %v5005_v26 = vmul.f32 %v4730_v48, %v4730_v48  ;;  %v5019_v3 = vstv %s1896_s21  ;;  %v5027_v48 = vmul.f32 %v4777_v59, %v4777_v59  ;;  %v6669_v44 = vld [vmem:[#allocation38_spill] sm:$0xff] }
 0x187   : > { %6597 = vst [vmem:[#allocation189_spill] sm:$0xff] %v4924_v62  ;;  %6599 = vst [vmem:[#allocation172_spill] sm:$0xff] %v4928_v42  ;;  %v6644_v59 = vld [vmem:[#allocation13_spill] sm:$0xff]  ;;  %v6666_v42 = vld [vmem:[#allocation35_spill] sm:$0xff] }
 0x188   : > { %6601 = vst [vmem:[#allocation190_spill] sm:$0xff] %v4934_v61  ;;  %6603 = vst [vmem:[#allocation80_spill] sm:$0xff] %v4938_v46  ;;  %v6664_v46 = vld [vmem:[#allocation33_spill] sm:$0xff]  ;;  %v6665_v61 = vld [vmem:[#allocation34_spill] sm:$0xff] }
 0x189   : > { %6605 = vst [vmem:[#allocation175_spill] sm:$0xff] %v4942_v18  ;;  %6607 = vst [vmem:[#allocation191_spill] sm:$0xff] %v4946_v36  ;;  %v6615_v18 = vld [vmem:[#allocation204_spill] sm:$0xff]  ;;  %v6668_v17 = vld [vmem:[#allocation37_spill] sm:$0xff] }
 0x18a   : > { %6608 = vst [vmem:[#allocation176_spill] sm:$0xff] %v4950_v27  ;;  %6610 = vst [vmem:[#allocation192_spill] sm:$0xff] %v4954_v49  ;;  %v4967_v10 = vmul.f32 %v6615_v18, %v6615_v18  ;;  %v6617_v36 = vld [vmem:[#allocation140_spill] sm:$0xff]  ;;  %v6662_v49 = vld [vmem:[#allocation31_spill] sm:$0xff] }
 0x18b   : > { %6612 = vst [vmem:[#allocation64_spill] sm:$0xff] %v4958_v58  ;;  %6614 = vst [vmem:[#allocation89_spill] sm:$0xff] %v4963_v60  ;;  %v4971_v13 = vmul.f32 %v6617_v36, %v6617_v36  ;;  %v4981_v58 = vmul.f32 %v4646_v23, %v4646_v23  ;;  %v4985_v60 = vmul.f32 %v6621_v33, %v6621_v33  ;;  %v6623_v18 = vld [vmem:[#allocation144_spill] sm:$0xff]  ;;  %v6625_v36 = vld [vmem:[#allocation165_spill] sm:$0xff] }
 0x18c   : > { %6616 = vst [vmem:[#allocation177_spill] sm:$0xff] %v4967_v10  ;;  %6619 = vst [vmem:[#allocation181_spill] sm:$0xff] %v4975_v8  ;;  %v4989_v10 = vmul.f32 %v6623_v18, %v6623_v18  ;;  %v5001_v23 = vmul.f32 %v6629_v53, %v6629_v53  ;;  %v5009_v33 = vmul.f32 %v4734_v11, %v4734_v11  ;;  %v6661_v8 = vld [vmem:[#allocation30_spill] sm:$0xff]  ;;  %v6663_v27 = vld [vmem:[#allocation32_spill] sm:$0xff] }
 0x18d   : > { %6618 = vst [vmem:[#allocation193_spill] sm:$0xff] %v4971_v13  ;;  %6620 = vst [vmem:[#allocation195_spill] sm:$0xff] %v4981_v58  ;;  %v4993_v13 = vmul.f32 %v6625_v36, %v6625_v36  ;;  %v5013_v18 = vmul.f32 %v4745_v50, %v4745_v50  ;;  %v5017_v36 = vmul.f32 %v4754_v35, %v4754_v35  ;;  %v6660_v58 = vld [vmem:[#allocation29_spill] sm:$0xff]  ;;  %v6667_v62 = vld [vmem:[#allocation36_spill] sm:$0xff] }
 0x18e   : > { %6622 = vst [vmem:[#allocation182_spill] sm:$0xff] %v4985_v60  ;;  %6624 = vst [vmem:[#allocation196_spill] sm:$0xff] %v4989_v10  ;;  %v5023_v53 = vmul.f32 %v4758_v57, %v4758_v57  ;;  %v5031_v11 = vmul.f32 %v4806_v47, %v4806_v47  ;;  %v5033_v50 = vmul.f32 %v1242_v12, %v1242_v12  ;;  %v6643_v57 = vld [vmem:[#allocation12_spill] sm:$0xff]  ;;  %v6645_v47 = vld [vmem:[#allocation14_spill] sm:$0xff] }
 0x18f   : > { %6626 = vst [vmem:[#allocation185_spill] sm:$0xff] %v4993_v13  ;;  %6628 = vst [vmem:[#allocation197_spill] sm:$0xff] %v4997_v55  ;;  %v5037_v35 = vmul.f32 %v1260_v32, %v1260_v32  ;;  %v5053_v12 = vadd.s32 %v5019_v3, %v6645_v47  ;;  %v6656_v55 = vld [vmem:[#allocation25_spill] sm:$0xff]  ;;  %v6657_v13 = vld [vmem:[#allocation26_spill] sm:$0xff] }
 0x190   : > { %6630 = vst [vmem:[#allocation188_spill] sm:$0xff] %v5001_v23  ;;  %6631 = vst [vmem:[#allocation198_spill] sm:$0xff] %v5005_v26  ;;  %v6654_v26 = vld [vmem:[#allocation23_spill] sm:$0xff]  ;;  %v6655_v23 = vld [vmem:[#allocation24_spill] sm:$0xff] }
 0x191   : > { %6632 = vst [vmem:[#allocation194_spill] sm:$0xff] %v5009_v33  ;;  %6633 = vst [vmem:[#allocation199_spill] sm:$0xff] %v5013_v18  ;;  %v5035_v18 = vmul.f32 %v1251_v21, %v1251_v21  ;;  %v5041_v33 = vmul.f32 %v1278_v63, %v1278_v63  ;;  %v6646_v21 = vld [vmem:[#allocation15_spill] sm:$0xff]  ;;  %v6659_v60 = vld [vmem:[#allocation28_spill] sm:$0xff]  ;;  %vm1411_vm2 = vcmp.lt.s32.totalorder %v5053_v12, 512 }
 0x192   : > { %6634 = vst [vmem:[#allocation70_spill] sm:$0xff] %v5017_v36  ;;  %6635 = vst [vmem:[#allocation71_spill] sm:$0xff] %v5023_v53  ;;  %v5039_v36 = vmul.f32 %v1269_v40, %v1269_v40  ;;  %v5045_v53 = vadd.s32 %v5019_v3, %v6643_v57  ;;  %v5057_v32 = vadd.s32 %v5019_v3, %v6646_v21  ;;  %v6647_v40 = vld [vmem:[#allocation16_spill] sm:$0xff]  ;;  %v6658_v10 = vld [vmem:[#allocation27_spill] sm:$0xff] }
 0x193   : > { %6636 = vst [vmem:[#allocation72_spill] sm:$0xff] %v5027_v48  ;;  %6637 = vst [vmem:[#allocation101_spill] sm:$0xff] %v5031_v11  ;;  %v5049_v48 = vadd.s32 %v5019_v3, %v6644_v59  ;;  %v5061_v63 = vadd.s32 %v5019_v3, %v6647_v40  ;;  %v6653_v11 = vld [vmem:[#allocation22_spill] sm:$0xff]  ;;  %v6670_v51 = vld [vmem:[#allocation39_spill] sm:$0xff] }
 0x194   : > { %6638 = vst [vmem:[#allocation77_spill] sm:$0xff] %v5033_v50  ;;  %6639 = vst [vmem:[#allocation105_spill] sm:$0xff] %v5035_v18  ;;  %v6651_v18 = vld [vmem:[#allocation20_spill] sm:$0xff]  ;;  %v6652_v50 = vld [vmem:[#allocation21_spill] sm:$0xff]  ;;  %vm1409_vm0 = vcmp.lt.s32.totalorder %v5045_v53, 512  ;;  %vm1412_vm3 = vcmp.lt.s32.totalorder %v5057_v32, 512 }
 0x195   : > { %6640 = vst [vmem:[#allocation106_spill] sm:$0xff] %v5037_v35  ;;  %6641 = vst [vmem:[#allocation107_spill] sm:$0xff] %v5039_v36  ;;  %v6649_v36 = vld [vmem:[#allocation18_spill] sm:$0xff]  ;;  %v6650_v35 = vld [vmem:[#allocation19_spill] sm:$0xff]  ;;  %v5077_v21 = vadd.s32 %v5019_v3, %v6651_v18  ;;  %v5081_v40 = vadd.s32 %v5019_v3, %v6652_v50  ;;  %v5097_v18 = vadd.s32 %v5019_v3, %v6656_v55  ;;  %vm1410_vm1 = vcmp.lt.s32.totalorder %v5049_v48, 512 }
 0x196   : > { %6642 = vst [vmem:[#allocation78_spill] sm:$0xff] %v5041_v33  ;;  %v6648_v33 = vld [vmem:[#allocation17_spill] sm:$0xff]  ;;  %v5069_v59 = vadd.s32 %v5019_v3, %v6649_v36  ;;  %v5073_v47 = vadd.s32 %v5019_v3, %v6650_v35  ;;  %v5089_v36 = vadd.s32 %v5019_v3, %v6654_v26  ;;  %v5093_v35 = vadd.s32 %v5019_v3, %v6655_v23  ;;  %v6671_v22 = vld [vmem:[#allocation40_spill] sm:$0xff]  ;;  %v6677_v5 = vld [vmem:[#allocation46_spill] sm:$0xff] }
 0x197   : > { %v5065_v57 = vadd.s32 %v5019_v3, %v6648_v33  ;;  %v5085_v33 = vadd.s32 %v5019_v3, %v6653_v11  ;;  %v5101_v50 = vadd.s32 %v5019_v3, %v6657_v13  ;;  %v5105_v11 = vadd.s32 %v5019_v3, %v6658_v10  ;;  %v6675_v24 = vld [vmem:[#allocation44_spill] sm:$0xff]  ;;  %v6676_v28 = vld [vmem:[#allocation45_spill] sm:$0xff]  ;;  %v6678_v16 = vld [vmem:[#allocation47_spill] sm:$0xff] }
 0x198   : > { %v5109_v26 = vadd.s32 %v5019_v3, %v6659_v60  ;;  %v5113_v23 = vadd.s32 %v5019_v3, %v6660_v58  ;;  %v5117_v55 = vadd.s32 %v5019_v3, %v6661_v8  ;;  %v5121_v13 = vadd.s32 %v5019_v3, %v6662_v49  ;;  %v6680_v0 = vld [vmem:[#allocation49_spill] sm:$0xff]  ;;  %v6681_v41 = vld [vmem:[#allocation50_spill] sm:$0xff]  ;;  %v6683_v14 = vld [vmem:[#allocation52_spill] sm:$0xff] }
 0x199   : > { %v5125_v10 = vadd.s32 %v5019_v3, %v6663_v27  ;;  %v5129_v60 = vadd.s32 %v5019_v3, %v6664_v46  ;;  %v5133_v58 = vadd.s32 %v5019_v3, %v6665_v61  ;;  %v5137_v8 = vadd.s32 %v5019_v3, %v6666_v42  ;;  %v6684_v38 = vld [vmem:[#allocation53_spill] sm:$0xff]  ;;  %v6687_v15 = vld [vmem:[#allocation56_spill] sm:$0xff]  ;;  %v6691_v19 = vld [vmem:[#allocation62_spill] sm:$0xff] }
 0x19a   : > { %v5141_v49 = vadd.s32 %v5019_v3, %v6667_v62  ;;  %v5145_v27 = vadd.s32 %v5019_v3, %v6668_v17  ;;  %v5149_v46 = vadd.s32 %v5019_v3, %v6669_v44  ;;  %v5153_v61 = vadd.s32 %v5019_v3, %v6670_v51  ;;  %v6688_v52 = vld [vmem:[#allocation57_spill] sm:$0xff]  ;;  %v6689_v1 = vld [vmem:[#allocation60_spill] sm:$0xff]  ;;  %v6695_v6 = vld [vmem:[#allocation66_spill] sm:$0xff] }
 0x19b   : > { %v5157_v42 = vadd.s32 %v5019_v3, %v6671_v22  ;;  %v5161_v62 = vadd.s32 %v5019_v3, %v6672_v43  ;;  %v5165_v17 = vadd.s32 %v5019_v3, %v6673_v7  ;;  %v5169_v44 = vadd.s32 %v5019_v3, %v6674_v34 }
 0x19c   : > { %v5173_v51 = vadd.s32 %v5019_v3, %v6675_v24  ;;  %v5177_v22 = vadd.s32 %v5019_v3, %v6676_v28  ;;  %v5181_v43 = vadd.s32 %v5019_v3, %v6677_v5  ;;  %v5185_v7 = vadd.s32 %v5019_v3, %v6678_v16 }
 0x19d   : > { %v5189_v34 = vadd.s32 %v5019_v3, %v6679_v9  ;;  %v5193_v24 = vadd.s32 %v5019_v3, %v6680_v0  ;;  %v5197_v28 = vadd.s32 %v5019_v3, %v6681_v41  ;;  %v5201_v5 = vadd.s32 %v5019_v3, %v6682_v20 }
 0x19e   : > { %v5205_v16 = vadd.s32 %v5019_v3, %v6683_v14  ;;  %v5209_v9 = vadd.s32 %v5019_v3, %v6684_v38  ;;  %v5213_v0 = vadd.s32 %v5019_v3, %v6685_v54  ;;  %v5217_v41 = vadd.s32 %v5019_v3, %v6686_v30 }
 0x19f   : > { %v5221_v20 = vadd.s32 %v5019_v3, %v6687_v15  ;;  %v5225_v14 = vadd.s32 %v5019_v3, %v6688_v52  ;;  %v5229_v38 = vadd.s32 %v5019_v3, %v6689_v1  ;;  %v5233_v54 = vadd.s32 %v5019_v3, %v6690_v29 }
 0x1a0   : > { %v5237_v30 = vadd.s32 %v5019_v3, %v6691_v19  ;;  %v5241_v15 = vadd.s32 %v5019_v3, %v6693_v37  ;;  %v5245_v52 = vadd.s32 %v5019_v3, %v6695_v6  ;;  %v5249_v1 = vadd.s32 %v5019_v3, %v6697_v39 }
 0x1a1   : > { %v5253_v29 = vadd.s32 %v5019_v3, %v6699_v4  ;;  %v5257_v19 = vadd.s32 %v5019_v3, %v6701_v31  ;;  %vm1413_vm4 = vcmp.lt.s32.totalorder %v5061_v63, 512  ;;  %vm1414_vm5 = vcmp.lt.s32.totalorder %v5065_v57, 512  ;;  %v6738_v57 = vld [vmem:[#allocation95_spill] sm:$0xff] }
 0x1a2   : > { %6692 = vst [vmem:[#allocation125_spill] sm:$0xff] %v5237_v30  ;;  %6694 = vst [vmem:[#allocation79_spill] sm:$0xff] %v5241_v15  ;;  %v6703_v30 = vld [vmem:[#allocation73_spill] sm:$0xff]  ;;  %v6705_v15 = vld [vmem:[#allocation74_spill] sm:$0xff]  ;;  %vm1447_vm8 = vcmp.lt.s32.totalorder %v5197_v28, 512  ;;  %vm1448_vm9 = vcmp.lt.s32.totalorder %v5201_v5, 512 }
 0x1a3   : > { %6696 = vst [vmem:[#allocation86_spill] sm:$0xff] %v5245_v52  ;;  %6698 = vst [vmem:[#allocation111_spill] sm:$0xff] %v5249_v1  ;;  %v5261_v37 = vadd.s32 %v5019_v3, %v6703_v30  ;;  %v5265_v6 = vadd.s32 %v5019_v3, %v6705_v15  ;;  %v6707_v52 = vld [vmem:[#allocation75_spill] sm:$0xff]  ;;  %v6709_v1 = vld [vmem:[#allocation76_spill] sm:$0xff]  ;;  %vm1449_vm10 = vcmp.lt.s32.totalorder %v5205_v16, 512  ;;  %vm1450_vm11 = vcmp.lt.s32.totalorder %v5209_v9, 512 }
 0x1a4   : > { %6700 = vst [vmem:[#allocation129_spill] sm:$0xff] %v5253_v29  ;;  %6702 = vst [vmem:[#allocation114_spill] sm:$0xff] %v5257_v19  ;;  %v5269_v39 = vadd.s32 %v5019_v3, %v6707_v52  ;;  %v5273_v4 = vadd.s32 %v5019_v3, %v6709_v1  ;;  %v6711_v29 = vld [vmem:[#allocation82_spill] sm:$0xff]  ;;  %v6712_v19 = vld [vmem:[#allocation83_spill] sm:$0xff]  ;;  %vm1451_vm12 = vcmp.lt.s32.totalorder %v5213_v0, 512  ;;  %vm1452_vm13 = vcmp.lt.s32.totalorder %v5217_v41, 512 }
 0x1a5   : > { %6704 = vst [vmem:[#allocation136_spill] sm:$0xff] %v5261_v37  ;;  %6706 = vst [vmem:[#allocation203_spill] sm:$0xff] %v5265_v6  ;;  %v5277_v31 = vadd.s32 %v5019_v3, %v6711_v29  ;;  %v5281_v30 = vadd.s32 %v5019_v3, %v6712_v19  ;;  %v6713_v37 = vld [vmem:[#allocation84_spill] sm:$0xff]  ;;  %v6714_v6 = vld [vmem:[#allocation85_spill] sm:$0xff]  ;;  %vm1453_vm14 = vcmp.lt.s32.totalorder %v5221_v20, 512  ;;  %v5355_v19 = vsel %vm1410_vm1, %v4773_v2, 0.0 }
 0x1a6   : > { %6708 = vst [vmem:[#allocation87_spill] sm:$0xff] %v5269_v39  ;;  %6710 = vst [vmem:[#allocation112_spill] sm:$0xff] %v5273_v4  ;;  %v5285_v15 = vadd.s32 %v5019_v3, %v6713_v37  ;;  %v5289_v52 = vadd.s32 %v5019_v3, %v6714_v6  ;;  %v6715_v39 = vld [vmem:[#allocation90_spill] sm:$0xff]  ;;  %v6716_v4 = vld [vmem:[#allocation91_spill] sm:$0xff]  ;;  %v5360_v37 = vsel %vm1411_vm2, %v4785_v45, 0.0  ;;  %v5365_v6 = vsel %vm1412_vm3, %v4789_v56, 0.0 }
 0x1a7   : > { %v5293_v1 = vadd.s32 %v5019_v3, %v6715_v39  ;;  %v5297_v29 = vadd.s32 %v5019_v3, %v6716_v4  ;;  %v5350_v3 = vsel %vm1409_vm0, %v4769_v25, 0.0  ;;  %6717 = vst [vmem:[#allocation88_spill] sm:$0xff] %v5355_v19  ;;  %6718 = vst [vmem:[#allocation113_spill] sm:$0xff] %v5360_v37  ;;  %v6724_v2 = vld [vmem:[#allocation166_spill] sm:$0xff]  ;;  %v6726_v45 = vld [vmem:[#allocation65_spill] sm:$0xff]  ;;  %vm6729_vm1 = vcmp.lt.s32.totalorder %v5069_v59, 512 }
 0x1a8   : > { %6719 = vst [vmem:[#allocation92_spill] sm:$0xff] %v5365_v6  ;;  %v5374_v48 = vsel %vm1413_vm4, %v6724_v2, 0.0  ;;  %v5379_v12 = vsel %vm1414_vm5, %v6726_v45, 0.0  ;;  %v6728_v56 = vld [vmem:[#allocation149_spill] sm:$0xff]  ;;  %vm6732_vm2 = vcmp.lt.s32.totalorder %v5073_v47, 512  ;;  %vm6739_vm5 = vcmp.lt.s32.totalorder %v5077_v21, 512 }
 0x1a9   : > { %v6720_v39 = vld [vmem:[#allocation125_spill] sm:$0xff]  ;;  %v6721_v53 = vld [vmem:[#allocation79_spill] sm:$0xff]  ;;  %6725 = vst [vmem:[#allocation117_spill] sm:$0xff] %v5374_v48  ;;  %6727 = vst [vmem:[#allocation93_spill] sm:$0xff] %v5379_v12  ;;  %v5384_v32 = vsel %vm6729_vm1, %v6728_v56, 0.0  ;;  %v5398_v45 = vsel %vm6739_vm5, %v6738_v57, 0.0 }
 0x1aa   : > { %vm1457_vm7 = vcmp.lt.s32.totalorder %v6720_v39, 512  ;;  %v6722_v25 = vld [vmem:[#allocation86_spill] sm:$0xff]  ;;  %v6723_v4 = vld [vmem:[#allocation111_spill] sm:$0xff]  ;;  %6730 = vst [vmem:[#allocation118_spill] sm:$0xff] %v5384_v32  ;;  %v6731_v6 = vld [vmem:[#allocation169_spill] sm:$0xff]  ;;  %vm6742_vm1 = vcmp.lt.s32.totalorder %v5081_v40, 512 }
 0x1ab   : > { %v5389_v37 = vsel %vm6732_vm2, %v6731_v6, 0.0  ;;  %v6734_v19 = vld [vmem:[#allocation129_spill] sm:$0xff]  ;;  %v6735_v63 = vld [vmem:[#allocation114_spill] sm:$0xff]  ;;  %6740 = vst [vmem:[#allocation119_spill] sm:$0xff] %v5398_v45  ;;  %vm6745_vm2 = vcmp.lt.s32.totalorder %v5085_v33, 512  ;;  %vm6748_vm15 = vcmp.lt.s32.totalorder %v5089_v36, 512 }
 0x1ac   : > { %6733 = vst [vmem:[#allocation94_spill] sm:$0xff] %v5389_v37  ;;  %v6736_v2 = vld [vmem:[#allocation136_spill] sm:$0xff]  ;;  %v6737_v48 = vld [vmem:[#allocation203_spill] sm:$0xff]  ;;  %v6741_v59 = vld [vmem:[#allocation150_spill] sm:$0xff]  ;;  %vm6759_vm6 = vcmp.lt.s32.totalorder %v5105_v11, 512  ;;  %vm1469_vm4 = vcmp.lt.s32.totalorder %v5285_v15, 512 }
 0x1ad   : > { %v5403_v56 = vsel %vm6742_vm1, %v6741_v59, 0.0  ;;  %v6744_v47 = vld [vmem:[#allocation170_spill] sm:$0xff]  ;;  %v6747_v37 = vld [vmem:[#allocation99_spill] sm:$0xff]  ;;  %v6751_v21 = vld [vmem:[#allocation112_spill] sm:$0xff]  ;;  %vm6753_vm1 = vcmp.lt.s32.totalorder %v5093_v35, 512  ;;  %vm1470_vm3 = vcmp.lt.s32.totalorder %v5289_v52, 512 }
 0x1ae   : > { %6743 = vst [vmem:[#allocation96_spill] sm:$0xff] %v5403_v56  ;;  %v5408_v6 = vsel %vm6745_vm2, %v6744_v47, 0.0  ;;  %v5413_v32 = vsel %vm6748_vm15, %v6747_v37, 0.0  ;;  %v6750_v12 = vld [vmem:[#allocation87_spill] sm:$0xff]  ;;  %v6752_v40 = vld [vmem:[#allocation153_spill] sm:$0xff]  ;;  %vm6755_vm2 = vcmp.lt.s32.totalorder %v5097_v18, 512 }
 0x1af   : > { %6746 = vst [vmem:[#allocation123_spill] sm:$0xff] %v5408_v6  ;;  %6749 = vst [vmem:[#allocation97_spill] sm:$0xff] %v5413_v32  ;;  %v1613_v57 = vsel %vm6753_vm1, %v6752_v40, 0.0  ;;  %v6754_v33 = vld [vmem:[#allocation173_spill] sm:$0xff]  ;;  %v6756_v47 = vld [vmem:[#allocation100_spill] sm:$0xff]  ;;  %vm6757_vm15 = vcmp.lt.s32.totalorder %v5101_v50, 512 }
 0x1b0   : > { %v1614_v59 = vsel %vm6755_vm2, %v6754_v33, 0.0  ;;  %v1615_v36 = vsel %vm6757_vm15, %v6756_v47, 0.0  ;;  %v6758_v37 = vld [vmem:[#allocation154_spill] sm:$0xff]  ;;  %vm6761_vm0 = vcmp.lt.s32.totalorder %v5109_v26, 512  ;;  %v6762_v40 = vld [vmem:[#allocation157_spill] sm:$0xff]  ;;  %vm6763_vm2 = vcmp.lt.s32.totalorder %v5113_v23, 512 }
 0x1b1   : > { %v1616_v32 = vsel %vm6759_vm6, %v6758_v37, 0.0  ;;  %v6760_v35 = vld [vmem:[#allocation174_spill] sm:$0xff]  ;;  %v1618_v50 = vsel %vm6763_vm2, %v6762_v40, 0.0  ;;  %vm6765_vm15 = vcmp.lt.s32.totalorder %v5117_v55, 512  ;;  %vm6767_vm6 = vcmp.lt.s32.totalorder %v5121_v13, 512  ;;  %v6768_v6 = vld [vmem:[#allocation179_spill] sm:$0xff] }
 0x1b2   : > { %v1617_v18 = vsel %vm6761_vm0, %v6760_v35, 0.0  ;;  %v6764_v33 = vld [vmem:[#allocation178_spill] sm:$0xff]  ;;  %vm6769_vm5 = vcmp.lt.s32.totalorder %v5125_v10, 512  ;;  %v6770_v45 = vld [vmem:[#allocation159_spill] sm:$0xff]  ;;  %vm6771_vm1 = vcmp.lt.s32.totalorder %v5129_v60, 512  ;;  %v6772_v35 = vld [vmem:[#allocation180_spill] sm:$0xff] }
 0x1b3   : > { %v1619_v11 = vsel %vm6765_vm15, %v6764_v33, 0.0  ;;  %v6766_v47 = vld [vmem:[#allocation158_spill] sm:$0xff]  ;;  %v1621_v56 = vsel %vm6769_vm5, %v6768_v6, 0.0  ;;  %v1622_v26 = vsel %vm6771_vm1, %v6770_v45, 0.0  ;;  %vm6773_vm0 = vcmp.lt.s32.totalorder %v5133_v58, 512  ;;  %v6774_v40 = vld [vmem:[#allocation163_spill] sm:$0xff] }
 0x1b4   : > { %v1620_v37 = vsel %vm6767_vm6, %v6766_v47, 0.0  ;;  %v1623_v23 = vsel %vm6773_vm0, %v6772_v35, 0.0  ;;  %vm6775_vm2 = vcmp.lt.s32.totalorder %v5137_v8, 512  ;;  %v6776_v33 = vld [vmem:[#allocation183_spill] sm:$0xff]  ;;  %vm6777_vm15 = vcmp.lt.s32.totalorder %v5141_v49, 512  ;;  %v6778_v47 = vld [vmem:[#allocation164_spill] sm:$0xff] }
 0x1b5   : > { %v1624_v55 = vsel %vm6775_vm2, %v6774_v40, 0.0  ;;  %v1625_v13 = vsel %vm6777_vm15, %v6776_v33, 0.0  ;;  %vm6779_vm6 = vcmp.lt.s32.totalorder %v5145_v27, 512  ;;  %v6780_v6 = vld [vmem:[#allocation184_spill] sm:$0xff]  ;;  %vm6781_vm5 = vcmp.lt.s32.totalorder %v5149_v46, 512  ;;  %v6782_v45 = vld [vmem:[#allocation167_spill] sm:$0xff] }
 0x1b6   : > { %v1626_v10 = vsel %vm6779_vm6, %v6778_v47, 0.0  ;;  %v1627_v60 = vsel %vm6781_vm5, %v6780_v6, 0.0  ;;  %vm6783_vm1 = vcmp.lt.s32.totalorder %v5153_v61, 512  ;;  %v6784_v35 = vld [vmem:[#allocation186_spill] sm:$0xff]  ;;  %vm6785_vm0 = vcmp.lt.s32.totalorder %v5157_v42, 512  ;;  %v6786_v40 = vld [vmem:[#allocation168_spill] sm:$0xff] }
 0x1b7   : > { %v1628_v58 = vsel %vm6783_vm1, %v6782_v45, 0.0  ;;  %v1629_v8 = vsel %vm6785_vm0, %v6784_v35, 0.0  ;;  %vm6787_vm2 = vcmp.lt.s32.totalorder %v5161_v62, 512  ;;  %v6788_v33 = vld [vmem:[#allocation187_spill] sm:$0xff]  ;;  %vm6789_vm15 = vcmp.lt.s32.totalorder %v5165_v17, 512  ;;  %v6790_v47 = vld [vmem:[#allocation58_spill] sm:$0xff] }
 0x1b8   : > { %v1630_v49 = vsel %vm6787_vm2, %v6786_v40, 0.0  ;;  %v1631_v27 = vsel %vm6789_vm15, %v6788_v33, 0.0  ;;  %vm6791_vm6 = vcmp.lt.s32.totalorder %v5169_v44, 512  ;;  %v6792_v6 = vld [vmem:[#allocation171_spill] sm:$0xff]  ;;  %vm6793_vm5 = vcmp.lt.s32.totalorder %v5173_v51, 512  ;;  %v6794_v45 = vld [vmem:[#allocation189_spill] sm:$0xff] }
 0x1b9   : > { %v1632_v46 = vsel %vm6791_vm6, %v6790_v47, 0.0  ;;  %v1633_v61 = vsel %vm6793_vm5, %v6792_v6, 0.0  ;;  %vm6795_vm1 = vcmp.lt.s32.totalorder %v5177_v22, 512  ;;  %v6796_v35 = vld [vmem:[#allocation172_spill] sm:$0xff]  ;;  %vm6797_vm0 = vcmp.lt.s32.totalorder %v5181_v43, 512  ;;  %v6798_v40 = vld [vmem:[#allocation190_spill] sm:$0xff] }
 0x1ba   : > { %v1634_v42 = vsel %vm6795_vm1, %v6794_v45, 0.0  ;;  %v1635_v62 = vsel %vm6797_vm0, %v6796_v35, 0.0  ;;  %vm6799_vm2 = vcmp.lt.s32.totalorder %v5185_v7, 512  ;;  %v6800_v33 = vld [vmem:[#allocation80_spill] sm:$0xff]  ;;  %vm6801_vm15 = vcmp.lt.s32.totalorder %v5189_v34, 512  ;;  %v6802_v47 = vld [vmem:[#allocation175_spill] sm:$0xff] }
 0x1bb   : > { %v1636_v17 = vsel %vm6799_vm2, %v6798_v40, 0.0  ;;  %v1637_v44 = vsel %vm6801_vm15, %v6800_v33, 0.0  ;;  %vm6803_vm6 = vcmp.lt.s32.totalorder %v5193_v24, 512  ;;  %v6804_v6 = vld [vmem:[#allocation191_spill] sm:$0xff]  ;;  %v6805_v45 = vld [vmem:[#allocation176_spill] sm:$0xff]  ;;  %v6808_v33 = vld [vmem:[#allocation89_spill] sm:$0xff] }
 0x1bc   : > { %v1638_v51 = vsel %vm6803_vm6, %v6802_v47, 0.0  ;;  %v1639_v22 = vsel %vm1447_vm8, %v6804_v6, 0.0  ;;  %v1640_v43 = vsel %vm1448_vm9, %v6805_v45, 0.0  ;;  %v6806_v35 = vld [vmem:[#allocation192_spill] sm:$0xff]  ;;  %v1643_v24 = vsel %vm1451_vm12, %v6808_v33, 0.0  ;;  %v6809_v47 = vld [vmem:[#allocation177_spill] sm:$0xff] }
 0x1bd   : > { %v1641_v7 = vsel %vm1449_vm10, %v6806_v35, 0.0  ;;  %v6807_v40 = vld [vmem:[#allocation64_spill] sm:$0xff]  ;;  %v1644_v28 = vsel %vm1452_vm13, %v6809_v47, 0.0  ;;  %v6810_v6 = vld [vmem:[#allocation193_spill] sm:$0xff]  ;;  %vm6812_vm8 = vcmp.lt.s32.totalorder %v5225_v14, 512  ;;  %v6813_v35 = vld [vmem:[#allocation195_spill] sm:$0xff] }
 0x1be   : > { %v1642_v34 = vsel %vm1450_vm11, %v6807_v40, 0.0  ;;  %v1645_v5 = vsel %vm1453_vm14, %v6810_v6, 0.0  ;;  %v6811_v45 = vld [vmem:[#allocation181_spill] sm:$0xff]  ;;  %vm6814_vm9 = vcmp.lt.s32.totalorder %v5229_v38, 512  ;;  %v6815_v40 = vld [vmem:[#allocation182_spill] sm:$0xff]  ;;  %vm6816_vm10 = vcmp.lt.s32.totalorder %v5233_v54, 512 }
 0x1bf   : > { %v1646_v16 = vsel %vm6812_vm8, %v6811_v45, 0.0  ;;  %v1647_v9 = vsel %vm6814_vm9, %v6813_v35, 0.0  ;;  %v1648_v0 = vsel %vm6816_vm10, %v6815_v40, 0.0  ;;  %v6817_v33 = vld [vmem:[#allocation196_spill] sm:$0xff]  ;;  %v6818_v47 = vld [vmem:[#allocation185_spill] sm:$0xff]  ;;  %vm6819_vm11 = vcmp.lt.s32.totalorder %v6721_v53, 512 }
 0x1c0   : > { %v1649_v41 = vsel %vm1457_vm7, %v6817_v33, 0.0  ;;  %v1650_v20 = vsel %vm6819_vm11, %v6818_v47, 0.0  ;;  %v6820_v6 = vld [vmem:[#allocation197_spill] sm:$0xff]  ;;  %vm6821_vm12 = vcmp.lt.s32.totalorder %v6722_v25, 512  ;;  %v6822_v45 = vld [vmem:[#allocation188_spill] sm:$0xff]  ;;  %vm6823_vm13 = vcmp.lt.s32.totalorder %v6723_v4, 512 }
 0x1c1   : > { %v1651_v14 = vsel %vm6821_vm12, %v6820_v6, 0.0  ;;  %v1652_v38 = vsel %vm6823_vm13, %v6822_v45, 0.0  ;;  %v6824_v35 = vld [vmem:[#allocation198_spill] sm:$0xff]  ;;  %vm6825_vm14 = vcmp.lt.s32.totalorder %v6734_v19, 512  ;;  %vm6827_vm7 = vcmp.lt.s32.totalorder %v6735_v63, 512  ;;  %v6828_v33 = vld [vmem:[#allocation199_spill] sm:$0xff] }
 0x1c2   : > { %v1653_v54 = vsel %vm6825_vm14, %v6824_v35, 0.0  ;;  %v6826_v40 = vld [vmem:[#allocation194_spill] sm:$0xff]  ;;  %vm6829_vm5 = vcmp.lt.s32.totalorder %v6736_v2, 512  ;;  %vm6831_vm1 = vcmp.lt.s32.totalorder %v6737_v48, 512  ;;  %v6832_v6 = vld [vmem:[#allocation71_spill] sm:$0xff]  ;;  %vm6833_vm0 = vcmp.lt.s32.totalorder %v6750_v12, 512 }
 0x1c3   : > { %v1654_v39 = vsel %vm6827_vm7, %v6826_v40, 0.0  ;;  %v1655_v53 = vsel %vm6829_vm5, %v6828_v33, 0.0  ;;  %v6830_v47 = vld [vmem:[#allocation70_spill] sm:$0xff]  ;;  %v1657_v4 = vsel %vm6833_vm0, %v6832_v6, 0.0  ;;  %v6834_v45 = vld [vmem:[#allocation72_spill] sm:$0xff]  ;;  %vm6835_vm2 = vcmp.lt.s32.totalorder %v6751_v21, 512 }
 0x1c4   : > { %v1656_v25 = vsel %vm6831_vm1, %v6830_v47, 0.0  ;;  %v1658_v19 = vsel %vm6835_vm2, %v6834_v45, 0.0  ;;  %v6836_v35 = vld [vmem:[#allocation101_spill] sm:$0xff]  ;;  %vm6837_vm15 = vcmp.lt.s32.totalorder %v5277_v31, 512  ;;  %vm6839_vm6 = vcmp.lt.s32.totalorder %v5281_v30, 512  ;;  %v6842_v47 = vld [vmem:[#allocation106_spill] sm:$0xff] }
 0x1c5   : > { %v1659_v63 = vsel %vm6837_vm15, %v6836_v35, 0.0  ;;  %v6838_v40 = vld [vmem:[#allocation77_spill] sm:$0xff]  ;;  %v5575_v12 = vsel %vm1470_vm3, %v6842_v47, 0.0  ;;  %v6844_v21 = vld [vmem:[#allocation107_spill] sm:$0xff]  ;;  %vm6845_vm8 = vcmp.lt.s32.totalorder %v5293_v1, 512  ;;  %v6847_v6 = vld [vmem:[#allocation78_spill] sm:$0xff] }
 0x1c6   : > { %v1660_v2 = vsel %vm6839_vm6, %v6838_v40, 0.0  ;;  %v6840_v33 = vld [vmem:[#allocation105_spill] sm:$0xff]  ;;  %6843 = vst [vmem:[#allocation98_spill] sm:$0xff] %v5575_v12  ;;  %v5580_v31 = vsel %vm6845_vm8, %v6844_v21, 0.0  ;;  %vm6848_vm9 = vcmp.lt.s32.totalorder %v5297_v29, 512  ;;  %v6850_v15 = vld [vmem:[#allocation119_spill] sm:$0xff] }
 0x1c7   : > { %v5570_v48 = vsel %vm1469_vm4, %v6840_v33, 0.0  ;;  %6846 = vst [vmem:[#allocation102_spill] sm:$0xff] %v5580_v31  ;;  %v5585_v30 = vsel %vm6848_vm9, %v6847_v6, 0.0  ;;  %v1673_v45 = vadd.f32 %v6850_v15, %v5350_v3  ;;  %v6851_v35 = vld [vmem:[#allocation88_spill] sm:$0xff]  ;;  %v6853_v33 = vld [vmem:[#allocation113_spill] sm:$0xff]  ;;  %v6854_v47 = vld [vmem:[#allocation123_spill] sm:$0xff] }
 0x1c8   : > { %6841 = vst [vmem:[#allocation124_spill] sm:$0xff] %v5570_v48  ;;  %6849 = vst [vmem:[#allocation103_spill] sm:$0xff] %v5585_v30  ;;  %v6852_v40 = vld [vmem:[#allocation96_spill] sm:$0xff]  ;;  %v1687_v12 = vadd.f32 %v6854_v47, %v6853_v33  ;;  %v6856_v1 = vld [vmem:[#allocation97_spill] sm:$0xff] }
 0x1c9   : > { %v1680_v52 = vadd.f32 %v6852_v40, %v6851_v35  ;;  %v6855_v48 = vld [vmem:[#allocation92_spill] sm:$0xff]  ;;  %v6857_v31 = vld [vmem:[#allocation117_spill] sm:$0xff]  ;;  %v6859_v3 = vld [vmem:[#allocation118_spill] sm:$0xff]  ;;  %v1674_v33 = vadd.f32 %v1673_v45, %v1617_v18 }
 0x1ca   : > { %v1694_v21 = vadd.f32 %v6856_v1, %v6855_v48  ;;  %v1701_v29 = vadd.f32 %v1613_v57, %v6857_v31  ;;  %v6858_v6 = vld [vmem:[#allocation93_spill] sm:$0xff]  ;;  %v1715_v15 = vadd.f32 %v1615_v36, %v6859_v3  ;;  %v6860_v35 = vld [vmem:[#allocation94_spill] sm:$0xff]  ;;  %v1688_v1 = vadd.f32 %v1687_v12, %v1619_v11 }
 0x1cb   : > { %v1708_v30 = vadd.f32 %v1614_v59, %v6858_v6  ;;  %v1722_v40 = vadd.f32 %v1616_v32, %v6860_v35  ;;  %v1681_v47 = vadd.f32 %v1680_v52, %v1618_v50  ;;  %v1675_v3 = vadd.f32 %v1674_v33, %v1625_v13 }
 0x1cc   : > { %v1695_v48 = vadd.f32 %v1694_v21, %v1620_v37  ;;  %v1702_v31 = vadd.f32 %v1701_v29, %v1621_v56  ;;  %v1716_v6 = vadd.f32 %v1715_v15, %v1623_v23  ;;  %v1689_v32 = vadd.f32 %v1688_v1, %v1627_v60 }
 0x1cd   : > { %v1709_v57 = vadd.f32 %v1708_v30, %v1622_v26  ;;  %v1723_v59 = vadd.f32 %v1722_v40, %v1624_v55  ;;  %v1682_v36 = vadd.f32 %v1681_v47, %v1626_v10  ;;  %v1676_v11 = vadd.f32 %v1675_v3, %v1633_v61 }
 0x1ce   : > { %v1696_v35 = vadd.f32 %v1695_v48, %v1628_v58  ;;  %v1703_v18 = vadd.f32 %v1702_v31, %v1629_v8  ;;  %v1717_v50 = vadd.f32 %v1716_v6, %v1631_v27  ;;  %v1690_v37 = vadd.f32 %v1689_v32, %v1635_v62 }
 0x1cf   : > { %v1710_v45 = vadd.f32 %v1709_v57, %v1630_v49  ;;  %v1724_v52 = vadd.f32 %v1723_v59, %v1632_v46  ;;  %v1683_v12 = vadd.f32 %v1682_v36, %v1634_v42  ;;  %v1677_v23 = vadd.f32 %v1676_v11, %v1641_v7 }
 0x1d0   : > { %v1697_v21 = vadd.f32 %v1696_v35, %v1636_v17  ;;  %v1704_v29 = vadd.f32 %v1703_v18, %v1637_v44  ;;  %v1718_v26 = vadd.f32 %v1717_v50, %v1639_v22  ;;  %v1691_v13 = vadd.f32 %v1690_v37, %v1643_v24  ;;  %v6861_v24 = vld [vmem:[#allocation124_spill] sm:$0xff] }
 0x1d1   : > { %v1711_v56 = vadd.f32 %v1710_v45, %v1638_v51  ;;  %v1725_v30 = vadd.f32 %v1724_v52, %v1640_v43  ;;  %v1684_v55 = vadd.f32 %v1683_v12, %v1642_v34  ;;  %v1678_v27 = vadd.f32 %v1677_v23, %v1649_v41  ;;  %v6864_v41 = vld [vmem:[#allocation103_spill] sm:$0xff] }
 0x1d2   : > { %v1698_v10 = vadd.f32 %v1697_v21, %v1644_v28  ;;  %v1705_v60 = vadd.f32 %v1704_v29, %v1645_v5  ;;  %v1719_v8 = vadd.f32 %v1718_v26, %v1647_v9  ;;  %v1692_v61 = vadd.f32 %v1691_v13, %v1651_v14  ;;  %v6862_v5 = vld [vmem:[#allocation98_spill] sm:$0xff] }
 0x1d3   : > { %v1712_v58 = vadd.f32 %v1711_v56, %v1646_v16  ;;  %v1726_v49 = vadd.f32 %v1725_v30, %v1648_v0  ;;  %v1685_v46 = vadd.f32 %v1684_v55, %v1650_v20  ;;  %v1679_v22 = vadd.f32 %v1678_v27, %v1657_v4  ;;  %v6863_v9 = vld [vmem:[#allocation102_spill] sm:$0xff] }
 0x1d4   : > { %v1699_v42 = vadd.f32 %v1698_v10, %v1652_v38  ;;  %v1706_v62 = vadd.f32 %v1705_v60, %v1653_v54  ;;  %v1720_v44 = vadd.f32 %v1719_v8, %v1655_v53  ;;  %v1693_v7 = vadd.f32 %v1692_v61, %v1659_v63 }
 0x1d5   : > { %v1713_v17 = vadd.f32 %v1712_v58, %v1654_v39  ;;  %v1727_v51 = vadd.f32 %v1726_v49, %v1656_v25  ;;  %v1686_v43 = vadd.f32 %v1685_v46, %v1658_v19  ;;  %1756 = vst [vmem:[%s231_s27] sm:$0xff] %v1679_v22 }
 0x1d6   : > { %v1700_v34 = vadd.f32 %v1699_v42, %v1660_v2  ;;  %v1707_v28 = vadd.f32 %v1706_v62, %v6861_v24  ;;  %v1721_v0 = vadd.f32 %v1720_v44, %v6863_v9  ;;  %1758 = vst [vmem:[%s231_s27 + $0x10] sm:$0xff] %v1693_v7 }
 0x1d7   : > { %v1714_v16 = vadd.f32 %v1713_v17, %v6862_v5  ;;  %v1728_v20 = vadd.f32 %v1727_v51, %v6864_v41  ;;  %1757 = vst [vmem:[%s231_s27 + $0x8] sm:$0xff] %v1686_v43 }
 0x1d8   : > { %1759 = vst [vmem:[%s231_s27 + $0x18] sm:$0xff] %v1700_v34  ;;  %1760 = vst [vmem:[%s231_s27 + $0x20] sm:$0xff] %v1707_v28 }
 0x1d9   : > { %1761 = vst [vmem:[%s231_s27 + $0x28] sm:$0xff] %v1714_v16  ;;  %1762 = vst [vmem:[%s231_s27 + $0x30] sm:$0xff] %v1721_v0 }
 0x1da   : > { %1763 = vst [vmem:[%s231_s27 + $0x38] sm:$0xff] %v1728_v20 }
 0x1db   : > { %2325 = shalt.err (!%p2322_p10)
}
 0x1dc   : > { %s2326_s30 = scalar_lea.hbm %s5609_s7, 1024  ;;  %s2330_s4 = scalar_lea.hbm %s5672_s2, 2048 }
 0x1dd   : > { %p2327_p11 = scmp.ne.s32.totalorder %s5609_s7, %s2326_s30  ;;  %p2331_p7 = scmp.lt.s32.totalorder %s5609_s7, %s5672_s2 }
 0x1de   : > { %p2332_p6 = scmp.lt.s32.totalorder %s2330_s4, %s2326_s30 }
 0x1df   : > { %p2328_p1 = pnand %p2327_p11, %p6865_p4 }
 0x1e0   : > { %p2333_p5 = por %p2332_p6, %p2331_p7 }
 0x1e1   : > { %p2329_p3 = pneg %p2328_p1 }
 0x1e3   : > { %p2334_p2 = pnand %p2333_p5, %p2329_p3 }
 0x1e5   : > { %2337 = shalt.err (!%p2334_p2)
}
 0x1e6   : > { %s2424_s17 = smov 128   ;;  %s2425_s22 = smov 8  }
 0x1e7   : > { %1909 = dma.vmem_to_hbm [thread:$0]  (%p6865_p4), %s5611_s5, 1024, %s5609_s7, %s5619_s14, %s2424_s17, %s2424_s17, %s2425_s22  }
 0x1e8 PF: > { %s1793_s27 = sand.u32 1, %s2389_s9   ;;  %p6866_p12 = scmp.ne.s32.totalorder %s5860_s26, 0 }
 0x1e9   : > { %p6867_p13 = scmp.ge.s32.totalorder %s2417_s16, 2  ;;  %s1794_s6 = scalar_lea.sflag [#allocation5], %s1793_s27 }
 0x1eb   : > { %p1919_p0 = pnand %p6867_p13, %p6866_p12 }
 0x1ed   : > { %p1920_p8 = pneg %p1919_p0 }
 0x1ef   : > { %2383 = dma.done.wait (%p1920_p8), %s1794_s6, 1024  }
 0x1f0   : > { %2385 = vsyncadd (%p1920_p8), %s1794_s6, 4294966272  ;;  %s21_s16 = sadd.s32 1, %s2417_s16   ;;  %s6868_s9 = smov %s2393_s10 }
 0x1f1   : > { %p18_p9 = scmp.ge.s32.totalorder %s21_s16, 4   ;;  %s6869_s10 = smov %s2397_s11 }
 0x1f2   : > { %s6870_s11 = smov %s2499_s24  ;;  %s6871_s12 = smov %s2405_s13 }
 0x1f3   : > { %s5660_s13 = smov 0   ;;  %s6872_s14 = smov %s2413_s15 }
 0x1f4   : > { %s6873_s15 = smov %s6875_s19  ;;  %20 = sbr.rel (!%p18_p9) target bundleno = 9 (0x9), region = 94 }
 0x1f9   :  { %1799 = vsyncpa [#allocation4], 1 }
 0x1fa   :  { %1801 = vsyncpa [#allocation4 + $0x1], 1 }
 0x1fb   :  { %1802 = vsyncpa [#allocation7], 1 }
 0x1fc   :  { %1804 = vsyncpa [#allocation7 + $0x1], 1 }
 0x1fd   :  { %1805 = vsyncpa [#allocation5], 1 }
 0x1fe   :  { %1807 = vsyncpa [#allocation5 + $0x1], 1 }

</bundles_post_ra>
